<compile_context>
chip_gen: v7x
topology: tpu7x:2x2x1
jax: 0.10.0
libtpu: 0.0.40
codegen_flags: <defaults>
</compile_context>

<pallas_src>
from functools import partial

import numpy as np
import jax
import jax.numpy as jnp
from jax.experimental import pallas as pl
from jax.experimental.pallas import tpu as pltpu

H = W = 28
ROWP = 32                    # per-image row stride inside the kernel (28 padded to 32)
LANE = 128
HWP = 896                    # 28*28 = 784 output positions padded to 7*128 lanes
C1_OUT, K1 = 8, 7            # conv1: 1 -> 8, 7x7   => 22x22
C2_OUT, K2 = 10, 5           # conv2: 8 -> 10, 5x5  => 7x7 (from the 11x11 pooled map)
CONV1_W, POOL1_W = 22, 11
CONV2_W, POOL2_W = 7, 3
FC_HID = 32
MAX_BLOCK_B = 16             # images per grid step


# ---------- host-side structural constants (pure numpy, weight independent) ----------
def _np_shift_sel(k, in_w, out_w):
    """S[kw, j, ow] = 1 iff j == ow + kw (used to build banded conv matrices)."""
    s = np.zeros((k, in_w, out_w), np.float32)
    for kw in range(k):
        for ow in range(out_w):
            s[kw, ow + kw, ow] = 1.0
    return s


def _np_col_pool_cat(n_ch, in_w, out_w, rows):
    """Fused 2x2-width column selection: [rows, 256]; the two pool offsets sit
    side by side with each half 128-lane aligned (so the max is pure VPU)."""
    m = np.zeros((rows, 2 * LANE), np.float32)
    for d in range(2):
        for c in range(n_ch):
            for pw in range(out_w):
                m[c * in_w + 2 * pw + d, d * LANE + c * out_w + pw] = 1.0
    return m


_S1 = _np_shift_sel(K1, H, CONV1_W)                       # [7, 28, 22]
_S2 = _np_shift_sel(K2, POOL1_W, CONV2_W)                 # [5, 11, 7]
_CP1 = _np_col_pool_cat(C1_OUT, CONV1_W, POOL1_W, C1_OUT * CONV1_W)   # [176, 256]
_CP2 = _np_col_pool_cat(C2_OUT, CONV2_W, POOL2_W, LANE)               # [128, 256]

_pp = np.arange(HWP)
_GRID_X = ((2.0 * (_pp % W) + 1.0) / W - 1.0).astype(np.float32).reshape(1, HWP)
_GRID_Y = ((2.0 * (_pp // W) + 1.0) / H - 1.0).astype(np.float32).reshape(1, HWP)


# ------------------------------- fused Pallas kernel -------------------------------
def _stn_kernel(B, x_ref, band1_ref, bias1_ref, cp1_ref, band2_ref, bias2_ref,
                cp2_ref, wfc_ref, fc1b_ref, fc2w_ref, fc2b_ref, gx_ref, gy_ref,
                out_ref):
    f32 = jnp.float32
    m0 = B * ROWP            # stacked image rows for this tile (row = b*32 + h)
    m2 = m0 - 7              # pooled1 rows  (valid at b*32 + 2*ph,  ph  in [0, 11))
    m3 = m0 - 15             # conv2 rows    (valid at b*32 + 2*oh2, oh2 in [0, 7))
    m4 = m0 - 17             # pooled2 rows  (valid at b*32 + 4*ph2, ph2 in [0, 3))
    m5 = m0 - 25             # hidden rows   (valid at b*32)

    # ---- conv1: ONE matmul over the rows-only im2col (K = 7*32), batch folded
    #      into M, (channel, x) on lanes.  No post-matmul shifted adds. ----
    c1 = jnp.dot(x_ref[...], band1_ref[...],
                 preferred_element_type=f32) + bias1_ref[...]           # [m0, 176]

    # ---- maxpool1 + ReLU: one fused column-pair selection matmul (both 2x2
    #      width offsets, halves 128-lane aligned), then a shifted VPU row max.
    #      Rows stay uncompacted; later stages use the known 2x/4x strides. ----
    y1 = jnp.dot(c1, cp1_ref[...], preferred_element_type=f32)          # [m0, 256]
    wp = jnp.maximum(y1[:, 0:LANE], y1[:, LANE:2 * LANE])
    p1 = jnp.maximum(jnp.maximum(wp[0:m2, :], wp[1:m2 + 1, :]), 0.0)    # [m2, 128]

    # ---- conv2: one wide matmul over all 5 kh bands (each band N-padded to a
    #      128-lane block so the shifted accumulation slices are vreg aligned) ----
    y2 = jnp.dot(p1, band2_ref[...], preferred_element_type=f32)        # [m2, 640]
    c2 = y2[0:m3, 0:LANE]
    for kh in range(1, K2):
        c2 = c2 + y2[2 * kh:2 * kh + m3, kh * LANE:(kh + 1) * LANE]
    c2 = c2 + bias2_ref[...]                                            # [m3, 128]

    # ---- maxpool2 + ReLU ----
    y3 = jnp.dot(c2, cp2_ref[...], preferred_element_type=f32)          # [m3, 256]
    wp2 = jnp.maximum(y3[:, 0:LANE], y3[:, LANE:2 * LANE])
    p2 = jnp.maximum(jnp.maximum(wp2[0:m4, :], wp2[2:m4 + 2, :]), 0.0)  # [m4, 128]

    # ---- fc_loc: Linear(90,32) as ONE wide matmul (3 pooled-row blocks on the
    #      lane axis), ReLU, one-hot gather of the B per-image rows, Linear(32,6) ----
    y4 = jnp.dot(p2, wfc_ref[...], preferred_element_type=f32)          # [m4, 384]
    hid = y4[0:m5, 0:FC_HID]
    for ph in range(1, POOL2_W):
        hid = hid + y4[4 * ph:4 * ph + m5, ph * LANE:ph * LANE + FC_HID]
    hid = jnp.maximum(hid + fc1b_ref[...], 0.0)                         # [m5, 32]

    BP = max(B, 8)
    sel = (jax.lax.broadcasted_iota(jnp.int32, (BP, m5), 1) ==
           ROWP * jax.lax.broadcasted_iota(jnp.int32, (BP, m5), 0)).astype(f32)
    hidB = jnp.dot(sel, hid, preferred_element_type=f32)                # [BP, 32]
    theta = jnp.dot(hidB, fc2w_ref[...],
                    preferred_element_type=f32) + fc2b_ref[...]         # [BP, 6]

    # ---- affine_grid (align_corners=False), batched over all images at once ----
    xb = gx_ref[...]                                                    # [1, 896]
    yb = gy_ref[...]
    gx = xb * theta[:, 0:1] + yb * theta[:, 1:2] + theta[:, 2:3]        # [BP, 896]
    gy = xb * theta[:, 3:4] + yb * theta[:, 4:5] + theta[:, 5:6]
    ix = (gx + 1.0) * (W * 0.5) - 0.5
    iy = (gy + 1.0) * (H * 0.5) - 0.5
    x0f = jnp.floor(ix)
    y0f = jnp.floor(iy)
    fx = ix - x0f
    fy = iy - y0f
    x0 = x0f.astype(jnp.int32)
    y0 = y0f.astype(jnp.int32)

    # ---- bilinear grid_sample (zeros padding): factored weights.
    #      out[p] = sum_r (img @ WX)[r, p] * WY[r, p]  -> one MXU push/image.
    #      Out-of-range indices match no row/col -> zeros padding. ----
    qio = jax.lax.broadcasted_iota(jnp.int32, (H, HWP), 0)              # [28, 896]
    for i in range(B):
        x0i, fxi = x0[i:i + 1, :], fx[i:i + 1, :]
        y0i, fyi = y0[i:i + 1, :], fy[i:i + 1, :]
        wx = (jnp.where(qio == x0i, 1.0 - fxi, 0.0) +
              jnp.where(qio == x0i + 1, fxi, 0.0))                      # [28, 896]
        wy = (jnp.where(qio == y0i, 1.0 - fyi, 0.0) +
              jnp.where(qio == y0i + 1, fyi, 0.0))
        img = x_ref[i * ROWP:i * ROWP + H, 0:W]                         # [28, 28]
        colsw = jnp.dot(img, wx, preferred_element_type=f32)            # [28, 896]
        out_ref[0, i:i + 1, :] = jnp.sum(colsw * wy, axis=0, keepdims=True)


# ------------------------------------ wrapper ------------------------------------
def spatial_transformer(x, params, max_block_b=MAX_BLOCK_B):
    """x: [N, 1, 28, 28] float32 (NCHW). Returns [N, 1, 28, 28]."""
    N = x.shape[0]
    w1, b1, w2, b2, fc1_w, fc1_b, fc2_w, fc2_b = params

    # Tile choice: as many images per grid step as allowed (per-tile working set
    # is only a few MiB, far under any generation's VMEM).  For large N keep the
    # tile count even so the "parallel" grid axis balances across v7x's 2 TCs.
    tiles = max(1, -(-N // max_block_b))
    if N > max_block_b and tiles % 2:
        tiles += 1
    B = -(-N // tiles)
    tiles = -(-N // B)
    Np = tiles * B

    # rows-only im2col: 7 row-shifted copies of each image stacked on lanes,
    # each copy padded 28->32 rows and 28->32 cols -> [Np*32, 224].  Block kh=0
    # is the raw image (reused by the sampler inside the kernel).
    imgs = jnp.pad(x.reshape(N, H, W),
                   ((0, Np - N), (0, ROWP + K1 - 1 - H), (0, ROWP - W)))
    xcol = jnp.stack([imgs[:, kh:kh + ROWP, :] for kh in range(K1)], axis=2)
    xcol = xcol.reshape(Np * ROWP, K1 * ROWP)

    # ---- re-pack weights into fused banded / selection matrices (layout only) ----
    # band1[kh*32 + j, c*22 + ow] = w1[c, 0, kh, j - ow] (zero outside the band)
    band1 = jnp.einsum('chw,wjo->hjco', w1[:, 0], jnp.asarray(_S1)) \
               .reshape(K1, H, C1_OUT * CONV1_W)
    band1 = jnp.pad(band1, ((0, 0), (0, ROWP - H), (0, 0))) \
               .reshape(K1 * ROWP, C1_OUT * CONV1_W)
    bias1 = jnp.repeat(b1, CONV1_W).reshape(1, C1_OUT * CONV1_W)

    # band2: 5 bands concatenated on lanes, each in its own 128-lane block
    b2k = jnp.einsum('oihw,wjp->hijop', w2, jnp.asarray(_S2)) \
             .reshape(K2, C1_OUT * POOL1_W, C2_OUT * CONV2_W)
    band2 = jnp.zeros((K2, LANE, LANE), jnp.float32) \
               .at[:, :C1_OUT * POOL1_W, :C2_OUT * CONV2_W].set(b2k)
    band2 = band2.transpose(1, 0, 2).reshape(LANE, K2 * LANE)
    bias2 = jnp.zeros((1, LANE), jnp.float32) \
               .at[0, :C2_OUT * CONV2_W].set(jnp.repeat(b2, CONV2_W))

    # fc1: one [128, 32] block per pooled row ph, concatenated on lanes (torch
    # flatten order c*9 + ph*3 + pw is absorbed here).
    wfc = fc1_w.reshape(FC_HID, C2_OUT, POOL2_W, POOL2_W).transpose(2, 1, 3, 0) \
               .reshape(POOL2_W, C2_OUT * POOL2_W, FC_HID)
    wfc = jnp.zeros((POOL2_W, LANE, LANE), jnp.float32) \
             .at[:, :C2_OUT * POOL2_W, :FC_HID].set(wfc)
    wfc = wfc.transpose(1, 0, 2).reshape(LANE, POOL2_W * LANE)
    fc1b = fc1_b.reshape(1, FC_HID)
    fc2wT = fc2_w.T                                                    # [32, 6]
    fc2b = fc2_b.reshape(1, 6)

    cp1 = jnp.asarray(_CP1)
    cp2 = jnp.asarray(_CP2)
    gx = jnp.asarray(_GRID_X)
    gy = jnp.asarray(_GRID_Y)

    const = lambda shape: pl.BlockSpec(shape, lambda n: (0,) * len(shape))

    out = pl.pallas_call(
        partial(_stn_kernel, B),
        out_shape=jax.ShapeDtypeStruct((tiles, B, HWP), jnp.float32),
        grid=(tiles,),
        in_specs=[
            pl.BlockSpec((B * ROWP, K1 * ROWP), lambda n: (n, 0)),     # im2col images
            const((K1 * ROWP, C1_OUT * CONV1_W)),                      # band1
            const((1, C1_OUT * CONV1_W)),                              # bias1
            const((C1_OUT * CONV1_W, 2 * LANE)),                       # cp1 (fused)
            const((LANE, K2 * LANE)),                                  # band2 (fused)
            const((1, LANE)),                                          # bias2
            const((LANE, 2 * LANE)),                                   # cp2 (fused)
            const((LANE, POOL2_W * LANE)),                             # wfc (fused)
            const((1, FC_HID)),                                        # fc1 bias
            const((FC_HID, 6)),                                        # fc2 weight
            const((1, 6)),                                             # fc2 bias
            const((1, HWP)),                                           # grid x
            const((1, HWP)),                                           # grid y
        ],
        out_specs=pl.BlockSpec((1, B, HWP), lambda n: (n, 0, 0)),
        compiler_params=pltpu.CompilerParams(dimension_semantics=("parallel",)),
    )(xcol, band1, bias1, cp1, band2, bias2, cp2, wfc, fc1b, fc2wT, fc2b, gx, gy)

    return out.reshape(Np, HWP)[:N, :H * W].reshape(N, 1, H, W)


# ------------------------- pure-JAX reference (for self-check) -------------------------
def _reference_forward(x, params):
    w1, b1, w2, b2, fc1_w, fc1_b, fc2_w, fc2_b = params
    hi = jax.lax.Precision.HIGHEST
    dn = ('NCHW', 'OIHW', 'NCHW')
    c1 = jax.lax.conv_general_dilated(x, w1, (1, 1), 'VALID',
                                      dimension_numbers=dn, precision=hi)
    c1 = c1 + b1[None, :, None, None]
    p1 = jax.lax.reduce_window(c1, -jnp.inf, jax.lax.max,
                               (1, 1, 2, 2), (1, 1, 2, 2), 'VALID')
    p1 = jnp.maximum(p1, 0.0)
    c2 = jax.lax.conv_general_dilated(p1, w2, (1, 1), 'VALID',
                                      dimension_numbers=dn, precision=hi)
    c2 = c2 + b2[None, :, None, None]
    p2 = jax.lax.reduce_window(c2, -jnp.inf, jax.lax.max,
                               (1, 1, 2, 2), (1, 1, 2, 2), 'VALID')
    p2 = jnp.maximum(p2, 0.0)
    xs = p2.reshape(x.shape[0], -1)
    hid = jnp.maximum(jnp.dot(xs, fc1_w.T, precision=hi) + fc1_b, 0.0)
    theta = jnp.dot(hid, fc2_w.T, precision=hi) + fc2_b                # [N, 6]

    xb = jnp.asarray(_GRID_X)[0, :H * W]
    yb = jnp.asarray(_GRID_Y)[0, :H * W]
    gxx = theta[:, 0:1] * xb[None, :] + theta[:, 1:2] * yb[None, :] + theta[:, 2:3]
    gyy = theta[:, 3:4] * xb[None, :] + theta[:, 4:5] * yb[None, :] + theta[:, 5:6]
    ix = (gxx + 1.0) * (W * 0.5) - 0.5
    iy = (gyy + 1.0) * (H * 0.5) - 0.5

    def sample_one(img, ixr, iyr):
        x0 = jnp.floor(ixr)
        y0 = jnp.floor(iyr)
        out = jnp.zeros_like(ixr)
        for dy in (0, 1):
            for dx in (0, 1):
                xs_ = x0 + dx
                ys_ = y0 + dy
                wgt = (1.0 - jnp.abs(ixr - xs_)) * (1.0 - jnp.abs(iyr - ys_))
                xi = xs_.astype(jnp.int32)
                yi = ys_.astype(jnp.int32)
                ok = (xi >= 0) & (xi < W) & (yi >= 0) & (yi < H)
                xi = jnp.clip(xi, 0, W - 1)
                yi = jnp.clip(yi, 0, H - 1)
                out = out + wgt * jnp.where(ok, img[yi, xi], 0.0)
        return out

    sampled = jax.vmap(sample_one)(x[:, 0], ix, iy)                    # [N, 784]
    return sampled.reshape(x.shape[0], 1, H, W)


if __name__ == "__main__":
    key = jax.random.PRNGKey(0)
    ks = jax.random.split(key, 8)
    # Deterministic synthetic parameters (same shapes as the PyTorch module).
    w1 = 0.1 * jax.random.normal(ks[0], (C1_OUT, 1, K1, K1), jnp.float32)
    b1 = 0.1 * jax.random.normal(ks[1], (C1_OUT,), jnp.float32)
    w2 = 0.1 * jax.random.normal(ks[2], (C2_OUT, C1_OUT, K2, K2), jnp.float32)
    b2 = 0.1 * jax.random.normal(ks[3], (C2_OUT,), jnp.float32)
    fc1_w = 0.05 * jax.random.normal(ks[4], (FC_HID, C2_OUT * POOL2_W * POOL2_W), jnp.float32)
    fc1_b = 0.05 * jax.random.normal(ks[5], (FC_HID,), jnp.float32)
    fc2_w = 0.01 * jax.random.normal(ks[6], (6, FC_HID), jnp.float32)
    # identity affine init (standard STN) so the sampled grid stays in-image.
    fc2_b = jnp.array([1.0, 0.0, 0.0, 0.0, 1.0, 0.0], jnp.float32)
    params = (w1, b1, w2, b2, fc1_w, fc1_b, fc2_w, fc2_b)

    # Smooth deterministic input (plus small noise) on a batch of 2 images.
    N = 2
    rr = jnp.arange(H, dtype=jnp.float32)
    cc = jnp.arange(W, dtype=jnp.float32)
    base = jnp.sin(rr[:, None] * 0.37 + 0.5) * jnp.cos(cc[None, :] * 0.23)
    noise = 0.1 * jax.random.normal(ks[7], (N, 1, H, W), jnp.float32)
    x = base[None, None, :, :] + noise

    out = jax.jit(spatial_transformer)(x, params)
    out = jax.block_until_ready(out)
    assert out.shape == (N, 1, H, W)
    assert bool(jnp.all(jnp.isfinite(out)))

    ref = _reference_forward(x, params)
    err = float(jnp.max(jnp.abs(out - ref)))
    assert err < 2e-2, f"mismatch vs pure-JAX reference: max abs err = {err}"
    print("KERNEL_OK")
</pallas_src>

<mosaic_0001>
module attributes {stable_mosaic.version = 11 : i64} {
  func.func @_stn_kernel(%arg0: i32, %arg1: memref<64x224xf32, #tpu.memory_space<vmem>>, %arg2: memref<224x176xf32, #tpu.memory_space<vmem>>, %arg3: memref<1x176xf32, #tpu.memory_space<vmem>>, %arg4: memref<176x256xf32, #tpu.memory_space<vmem>>, %arg5: memref<128x640xf32, #tpu.memory_space<vmem>>, %arg6: memref<1x128xf32, #tpu.memory_space<vmem>>, %arg7: memref<128x256xf32, #tpu.memory_space<vmem>>, %arg8: memref<128x384xf32, #tpu.memory_space<vmem>>, %arg9: memref<1x32xf32, #tpu.memory_space<vmem>>, %arg10: memref<32x6xf32, #tpu.memory_space<vmem>>, %arg11: memref<1x6xf32, #tpu.memory_space<vmem>>, %arg12: memref<1x896xf32, #tpu.memory_space<vmem>>, %arg13: memref<1x896xf32, #tpu.memory_space<vmem>>, %arg14: memref<1x2x896xf32, #tpu.memory_space<vmem>>) attributes {dimension_semantics = [#tpu.dimension_semantics<parallel>], iteration_bounds = array<i64: 1>, scalar_prefetch = 0 : i64, scratch_operands = 0 : i64, tpu.core_type = #tpu.core_type<tc>, window_params = [{transform_indices = @transform_0, window_bounds = array<i64: 64, 224>}, {pipeline_mode = #tpu.pipeline_mode<synchronous>, transform_indices = @transform_1, window_bounds = array<i64: 224, 176>}, {pipeline_mode = #tpu.pipeline_mode<synchronous>, transform_indices = @transform_2, window_bounds = array<i64: 1, 176>}, {pipeline_mode = #tpu.pipeline_mode<synchronous>, transform_indices = @transform_3, window_bounds = array<i64: 176, 256>}, {pipeline_mode = #tpu.pipeline_mode<synchronous>, transform_indices = @transform_4, window_bounds = array<i64: 128, 640>}, {pipeline_mode = #tpu.pipeline_mode<synchronous>, transform_indices = @transform_5, window_bounds = array<i64: 1, 128>}, {pipeline_mode = #tpu.pipeline_mode<synchronous>, transform_indices = @transform_6, window_bounds = array<i64: 128, 256>}, {pipeline_mode = #tpu.pipeline_mode<synchronous>, transform_indices = @transform_7, window_bounds = array<i64: 128, 384>}, {pipeline_mode = #tpu.pipeline_mode<synchronous>, transform_indices = @transform_8, window_bounds = array<i64: 1, 32>}, {pipeline_mode = #tpu.pipeline_mode<synchronous>, transform_indices = @transform_9, window_bounds = array<i64: 32, 6>}, {pipeline_mode = #tpu.pipeline_mode<synchronous>, transform_indices = @transform_10, window_bounds = array<i64: 1, 6>}, {pipeline_mode = #tpu.pipeline_mode<synchronous>, transform_indices = @transform_11, window_bounds = array<i64: 1, 896>}, {pipeline_mode = #tpu.pipeline_mode<synchronous>, transform_indices = @transform_12, window_bounds = array<i64: 1, 896>}, {transform_indices = @transform_13, window_bounds = array<i64: 1, 2, 896>}]} {
    %c0 = arith.constant 0 : index
    %c0_0 = arith.constant 0 : index
    %0 = vector.load %arg1[%c0, %c0_0] : memref<64x224xf32, #tpu.memory_space<vmem>>, vector<64x224xf32>
    %c0_1 = arith.constant 0 : index
    %c0_2 = arith.constant 0 : index
    %1 = vector.load %arg2[%c0_1, %c0_2] : memref<224x176xf32, #tpu.memory_space<vmem>>, vector<224x176xf32>
    %cst = arith.constant dense<0.000000e+00> : vector<64x176xf32>
    %2 = tpu.matmul %0, %1, %cst {dimension_numbers = #tpu.dot_dimension_numbers<[1], [0], [0], [1], [0, 0, 1, 1], [], []>} : vector<64x224xf32>, vector<224x176xf32>, vector<64x176xf32> -> vector<64x176xf32>
    %c0_3 = arith.constant 0 : index
    %c0_4 = arith.constant 0 : index
    %3 = vector.load %arg3[%c0_3, %c0_4] : memref<1x176xf32, #tpu.memory_space<vmem>>, vector<1x176xf32>
    %4 = vector.broadcast %3 : vector<1x176xf32> to vector<64x176xf32>
    %5 = arith.addf %2, %4 : vector<64x176xf32>
    %c0_5 = arith.constant 0 : index
    %c0_6 = arith.constant 0 : index
    %6 = vector.load %arg4[%c0_5, %c0_6] : memref<176x256xf32, #tpu.memory_space<vmem>>, vector<176x256xf32>
    %cst_7 = arith.constant dense<0.000000e+00> : vector<64x256xf32>
    %7 = tpu.matmul %5, %6, %cst_7 {dimension_numbers = #tpu.dot_dimension_numbers<[1], [0], [0], [1], [0, 0, 1, 1], [], []>} : vector<64x176xf32>, vector<176x256xf32>, vector<64x256xf32> -> vector<64x256xf32>
    %8 = vector.extract_strided_slice %7 {offsets = [0, 0], sizes = [64, 128], strides = [1, 1]} : vector<64x256xf32> to vector<64x128xf32>
    %9 = vector.extract_strided_slice %7 {offsets = [0, 128], sizes = [64, 128], strides = [1, 1]} : vector<64x256xf32> to vector<64x128xf32>
    %10 = arith.maximumf %8, %9 : vector<64x128xf32>
    %11 = vector.extract_strided_slice %10 {offsets = [0, 0], sizes = [57, 128], strides = [1, 1]} : vector<64x128xf32> to vector<57x128xf32>
    %12 = vector.extract_strided_slice %10 {offsets = [1, 0], sizes = [57, 128], strides = [1, 1]} : vector<64x128xf32> to vector<57x128xf32>
    %13 = arith.maximumf %11, %12 : vector<57x128xf32>
    %cst_8 = arith.constant 0.000000e+00 : f32
    %14 = vector.broadcast %cst_8 : f32 to vector<57x128xf32>
    %15 = arith.maximumf %13, %14 : vector<57x128xf32>
    %c0_9 = arith.constant 0 : index
    %c0_10 = arith.constant 0 : index
    %16 = vector.load %arg5[%c0_9, %c0_10] : memref<128x640xf32, #tpu.memory_space<vmem>>, vector<128x640xf32>
    %cst_11 = arith.constant dense<0.000000e+00> : vector<57x640xf32>
    %17 = tpu.matmul %15, %16, %cst_11 {dimension_numbers = #tpu.dot_dimension_numbers<[1], [0], [0], [1], [0, 0, 1, 1], [], []>} : vector<57x128xf32>, vector<128x640xf32>, vector<57x640xf32> -> vector<57x640xf32>
    %18 = vector.extract_strided_slice %17 {offsets = [0, 0], sizes = [49, 128], strides = [1, 1]} : vector<57x640xf32> to vector<49x128xf32>
    %19 = vector.extract_strided_slice %17 {offsets = [2, 128], sizes = [49, 128], strides = [1, 1]} : vector<57x640xf32> to vector<49x128xf32>
    %20 = arith.addf %18, %19 : vector<49x128xf32>
    %21 = vector.extract_strided_slice %17 {offsets = [4, 256], sizes = [49, 128], strides = [1, 1]} : vector<57x640xf32> to vector<49x128xf32>
    %22 = arith.addf %20, %21 : vector<49x128xf32>
    %23 = vector.extract_strided_slice %17 {offsets = [6, 384], sizes = [49, 128], strides = [1, 1]} : vector<57x640xf32> to vector<49x128xf32>
    %24 = arith.addf %22, %23 : vector<49x128xf32>
    %25 = vector.extract_strided_slice %17 {offsets = [8, 512], sizes = [49, 128], strides = [1, 1]} : vector<57x640xf32> to vector<49x128xf32>
    %26 = arith.addf %24, %25 : vector<49x128xf32>
    %c0_12 = arith.constant 0 : index
    %c0_13 = arith.constant 0 : index
    %27 = vector.load %arg6[%c0_12, %c0_13] : memref<1x128xf32, #tpu.memory_space<vmem>>, vector<1x128xf32>
    %28 = vector.broadcast %27 : vector<1x128xf32> to vector<49x128xf32>
    %29 = arith.addf %26, %28 : vector<49x128xf32>
    %c0_14 = arith.constant 0 : index
    %c0_15 = arith.constant 0 : index
    %30 = vector.load %arg7[%c0_14, %c0_15] : memref<128x256xf32, #tpu.memory_space<vmem>>, vector<128x256xf32>
    %cst_16 = arith.constant dense<0.000000e+00> : vector<49x256xf32>
    %31 = tpu.matmul %29, %30, %cst_16 {dimension_numbers = #tpu.dot_dimension_numbers<[1], [0], [0], [1], [0, 0, 1, 1], [], []>} : vector<49x128xf32>, vector<128x256xf32>, vector<49x256xf32> -> vector<49x256xf32>
    %32 = vector.extract_strided_slice %31 {offsets = [0, 0], sizes = [49, 128], strides = [1, 1]} : vector<49x256xf32> to vector<49x128xf32>
    %33 = vector.extract_strided_slice %31 {offsets = [0, 128], sizes = [49, 128], strides = [1, 1]} : vector<49x256xf32> to vector<49x128xf32>
    %34 = arith.maximumf %32, %33 : vector<49x128xf32>
    %35 = vector.extract_strided_slice %34 {offsets = [0, 0], sizes = [47, 128], strides = [1, 1]} : vector<49x128xf32> to vector<47x128xf32>
    %36 = vector.extract_strided_slice %34 {offsets = [2, 0], sizes = [47, 128], strides = [1, 1]} : vector<49x128xf32> to vector<47x128xf32>
    %37 = arith.maximumf %35, %36 : vector<47x128xf32>
    %cst_17 = arith.constant 0.000000e+00 : f32
    %38 = vector.broadcast %cst_17 : f32 to vector<47x128xf32>
    %39 = arith.maximumf %37, %38 : vector<47x128xf32>
    %c0_18 = arith.constant 0 : index
    %c0_19 = arith.constant 0 : index
    %40 = vector.load %arg8[%c0_18, %c0_19] : memref<128x384xf32, #tpu.memory_space<vmem>>, vector<128x384xf32>
    %cst_20 = arith.constant dense<0.000000e+00> : vector<47x384xf32>
    %41 = tpu.matmul %39, %40, %cst_20 {dimension_numbers = #tpu.dot_dimension_numbers<[1], [0], [0], [1], [0, 0, 1, 1], [], []>} : vector<47x128xf32>, vector<128x384xf32>, vector<47x384xf32> -> vector<47x384xf32>
    %42 = vector.extract_strided_slice %41 {offsets = [0, 0], sizes = [39, 32], strides = [1, 1]} : vector<47x384xf32> to vector<39x32xf32>
    %43 = vector.extract_strided_slice %41 {offsets = [4, 128], sizes = [39, 32], strides = [1, 1]} : vector<47x384xf32> to vector<39x32xf32>
    %44 = arith.addf %42, %43 : vector<39x32xf32>
    %45 = vector.extract_strided_slice %41 {offsets = [8, 256], sizes = [39, 32], strides = [1, 1]} : vector<47x384xf32> to vector<39x32xf32>
    %46 = arith.addf %44, %45 : vector<39x32xf32>
    %c0_21 = arith.constant 0 : index
    %c0_22 = arith.constant 0 : index
    %47 = vector.load %arg9[%c0_21, %c0_22] : memref<1x32xf32, #tpu.memory_space<vmem>>, vector<1x32xf32>
    %48 = vector.broadcast %47 : vector<1x32xf32> to vector<39x32xf32>
    %49 = arith.addf %46, %48 : vector<39x32xf32>
    %cst_23 = arith.constant 0.000000e+00 : f32
    %50 = vector.broadcast %cst_23 : f32 to vector<39x32xf32>
    %51 = arith.maximumf %49, %50 : vector<39x32xf32>
    %52 = tpu.iota {dimensions = array<i32: 1>} : vector<8x39xi32>
    %53 = tpu.iota {dimensions = array<i32: 0>} : vector<8x39xi32>
    %c32_i32 = arith.constant 32 : i32
    %54 = vector.broadcast %c32_i32 : i32 to vector<8x39xi32>
    %55 = arith.muli %54, %53 : vector<8x39xi32>
    %56 = arith.cmpi eq, %52, %55 : vector<8x39xi32>
    %57 = arith.extui %56 : vector<8x39xi1> to vector<8x39xi32>
    %58 = arith.sitofp %57 : vector<8x39xi32> to vector<8x39xf32>
    %cst_24 = arith.constant dense<0.000000e+00> : vector<8x32xf32>
    %59 = tpu.matmul %58, %51, %cst_24 {dimension_numbers = #tpu.dot_dimension_numbers<[1], [0], [0], [1], [0, 0, 1, 1], [], []>} : vector<8x39xf32>, vector<39x32xf32>, vector<8x32xf32> -> vector<8x32xf32>
    %c0_25 = arith.constant 0 : index
    %c0_26 = arith.constant 0 : index
    %60 = vector.load %arg10[%c0_25, %c0_26] : memref<32x6xf32, #tpu.memory_space<vmem>>, vector<32x6xf32>
    %cst_27 = arith.constant dense<0.000000e+00> : vector<8x6xf32>
    %61 = tpu.matmul %59, %60, %cst_27 {dimension_numbers = #tpu.dot_dimension_numbers<[1], [0], [0], [1], [0, 0, 1, 1], [], []>} : vector<8x32xf32>, vector<32x6xf32>, vector<8x6xf32> -> vector<8x6xf32>
    %c0_28 = arith.constant 0 : index
    %c0_29 = arith.constant 0 : index
    %62 = vector.load %arg11[%c0_28, %c0_29] : memref<1x6xf32, #tpu.memory_space<vmem>>, vector<1x6xf32>
    %63 = vector.broadcast %62 : vector<1x6xf32> to vector<8x6xf32>
    %64 = arith.addf %61, %63 : vector<8x6xf32>
    %c0_30 = arith.constant 0 : index
    %c0_31 = arith.constant 0 : index
    %65 = vector.load %arg12[%c0_30, %c0_31] : memref<1x896xf32, #tpu.memory_space<vmem>>, vector<1x896xf32>
    %c0_32 = arith.constant 0 : index
    %c0_33 = arith.constant 0 : index
    %66 = vector.load %arg13[%c0_32, %c0_33] : memref<1x896xf32, #tpu.memory_space<vmem>>, vector<1x896xf32>
    %67 = vector.extract_strided_slice %64 {offsets = [0, 0], sizes = [8, 1], strides = [1, 1]} : vector<8x6xf32> to vector<8x1xf32>
    %68 = vector.broadcast %65 : vector<1x896xf32> to vector<8x896xf32>
    %69 = vector.broadcast %67 : vector<8x1xf32> to vector<8x896xf32>
    %70 = arith.mulf %68, %69 : vector<8x896xf32>
    %71 = vector.extract_strided_slice %64 {offsets = [0, 1], sizes = [8, 1], strides = [1, 1]} : vector<8x6xf32> to vector<8x1xf32>
    %72 = vector.broadcast %66 : vector<1x896xf32> to vector<8x896xf32>
    %73 = vector.broadcast %71 : vector<8x1xf32> to vector<8x896xf32>
    %74 = arith.mulf %72, %73 : vector<8x896xf32>
    %75 = arith.addf %70, %74 : vector<8x896xf32>
    %76 = vector.extract_strided_slice %64 {offsets = [0, 2], sizes = [8, 1], strides = [1, 1]} : vector<8x6xf32> to vector<8x1xf32>
    %77 = vector.broadcast %76 : vector<8x1xf32> to vector<8x896xf32>
    %78 = arith.addf %75, %77 : vector<8x896xf32>
    %79 = vector.extract_strided_slice %64 {offsets = [0, 3], sizes = [8, 1], strides = [1, 1]} : vector<8x6xf32> to vector<8x1xf32>
    %80 = vector.broadcast %65 : vector<1x896xf32> to vector<8x896xf32>
    %81 = vector.broadcast %79 : vector<8x1xf32> to vector<8x896xf32>
    %82 = arith.mulf %80, %81 : vector<8x896xf32>
    %83 = vector.extract_strided_slice %64 {offsets = [0, 4], sizes = [8, 1], strides = [1, 1]} : vector<8x6xf32> to vector<8x1xf32>
    %84 = vector.broadcast %66 : vector<1x896xf32> to vector<8x896xf32>
    %85 = vector.broadcast %83 : vector<8x1xf32> to vector<8x896xf32>
    %86 = arith.mulf %84, %85 : vector<8x896xf32>
    %87 = arith.addf %82, %86 : vector<8x896xf32>
    %88 = vector.extract_strided_slice %64 {offsets = [0, 5], sizes = [8, 1], strides = [1, 1]} : vector<8x6xf32> to vector<8x1xf32>
    %89 = vector.broadcast %88 : vector<8x1xf32> to vector<8x896xf32>
    %90 = arith.addf %87, %89 : vector<8x896xf32>
    %cst_34 = arith.constant 1.000000e+00 : f32
    %91 = vector.broadcast %cst_34 : f32 to vector<8x896xf32>
    %92 = arith.addf %78, %91 : vector<8x896xf32>
    %cst_35 = arith.constant 1.400000e+01 : f32
    %93 = vector.broadcast %cst_35 : f32 to vector<8x896xf32>
    %94 = arith.mulf %92, %93 : vector<8x896xf32>
    %cst_36 = arith.constant 5.000000e-01 : f32
    %95 = vector.broadcast %cst_36 : f32 to vector<8x896xf32>
    %96 = arith.subf %94, %95 : vector<8x896xf32>
    %cst_37 = arith.constant 1.000000e+00 : f32
    %97 = vector.broadcast %cst_37 : f32 to vector<8x896xf32>
    %98 = arith.addf %90, %97 : vector<8x896xf32>
    %cst_38 = arith.constant 1.400000e+01 : f32
    %99 = vector.broadcast %cst_38 : f32 to vector<8x896xf32>
    %100 = arith.mulf %98, %99 : vector<8x896xf32>
    %cst_39 = arith.constant 5.000000e-01 : f32
    %101 = vector.broadcast %cst_39 : f32 to vector<8x896xf32>
    %102 = arith.subf %100, %101 : vector<8x896xf32>
    %103 = math.floor %96 : vector<8x896xf32>
    %104 = math.floor %102 : vector<8x896xf32>
    %105 = arith.subf %96, %103 : vector<8x896xf32>
    %106 = arith.subf %102, %104 : vector<8x896xf32>
    %107 = arith.fptosi %103 : vector<8x896xf32> to vector<8x896xi32>
    %108 = arith.fptosi %104 : vector<8x896xf32> to vector<8x896xi32>
    %109 = tpu.iota {dimensions = array<i32: 0>} : vector<28x896xi32>
    %110 = vector.extract_strided_slice %107 {offsets = [0, 0], sizes = [1, 896], strides = [1, 1]} : vector<8x896xi32> to vector<1x896xi32>
    %111 = vector.extract_strided_slice %105 {offsets = [0, 0], sizes = [1, 896], strides = [1, 1]} : vector<8x896xf32> to vector<1x896xf32>
    %112 = vector.extract_strided_slice %108 {offsets = [0, 0], sizes = [1, 896], strides = [1, 1]} : vector<8x896xi32> to vector<1x896xi32>
    %113 = vector.extract_strided_slice %106 {offsets = [0, 0], sizes = [1, 896], strides = [1, 1]} : vector<8x896xf32> to vector<1x896xf32>
    %114 = vector.broadcast %110 : vector<1x896xi32> to vector<28x896xi32>
    %115 = arith.cmpi eq, %109, %114 : vector<28x896xi32>
    %cst_40 = arith.constant 1.000000e+00 : f32
    %116 = vector.broadcast %cst_40 : f32 to vector<1x896xf32>
    %117 = arith.subf %116, %111 : vector<1x896xf32>
    %cst_41 = arith.constant 0.000000e+00 : f32
    %118 = vector.shape_cast %117 : vector<1x896xf32> to vector<1x896xf32>
    %119 = vector.broadcast %118 : vector<1x896xf32> to vector<28x896xf32>
    %120 = vector.broadcast %cst_41 : f32 to vector<28x896xf32>
    %121 = arith.select %115, %119, %120 : vector<28x896xi1>, vector<28x896xf32>
    %c1_i32 = arith.constant 1 : i32
    %122 = vector.broadcast %c1_i32 : i32 to vector<1x896xi32>
    %123 = arith.addi %110, %122 : vector<1x896xi32>
    %124 = vector.broadcast %123 : vector<1x896xi32> to vector<28x896xi32>
    %125 = arith.cmpi eq, %109, %124 : vector<28x896xi32>
    %cst_42 = arith.constant 0.000000e+00 : f32
    %126 = vector.shape_cast %111 : vector<1x896xf32> to vector<1x896xf32>
    %127 = vector.broadcast %126 : vector<1x896xf32> to vector<28x896xf32>
    %128 = vector.broadcast %cst_42 : f32 to vector<28x896xf32>
    %129 = arith.select %125, %127, %128 : vector<28x896xi1>, vector<28x896xf32>
    %130 = arith.addf %121, %129 : vector<28x896xf32>
    %131 = vector.broadcast %112 : vector<1x896xi32> to vector<28x896xi32>
    %132 = arith.cmpi eq, %109, %131 : vector<28x896xi32>
    %cst_43 = arith.constant 1.000000e+00 : f32
    %133 = vector.broadcast %cst_43 : f32 to vector<1x896xf32>
    %134 = arith.subf %133, %113 : vector<1x896xf32>
    %cst_44 = arith.constant 0.000000e+00 : f32
    %135 = vector.shape_cast %134 : vector<1x896xf32> to vector<1x896xf32>
    %136 = vector.broadcast %135 : vector<1x896xf32> to vector<28x896xf32>
    %137 = vector.broadcast %cst_44 : f32 to vector<28x896xf32>
    %138 = arith.select %132, %136, %137 : vector<28x896xi1>, vector<28x896xf32>
    %c1_i32_45 = arith.constant 1 : i32
    %139 = vector.broadcast %c1_i32_45 : i32 to vector<1x896xi32>
    %140 = arith.addi %112, %139 : vector<1x896xi32>
    %141 = vector.broadcast %140 : vector<1x896xi32> to vector<28x896xi32>
    %142 = arith.cmpi eq, %109, %141 : vector<28x896xi32>
    %cst_46 = arith.constant 0.000000e+00 : f32
    %143 = vector.shape_cast %113 : vector<1x896xf32> to vector<1x896xf32>
    %144 = vector.broadcast %143 : vector<1x896xf32> to vector<28x896xf32>
    %145 = vector.broadcast %cst_46 : f32 to vector<28x896xf32>
    %146 = arith.select %142, %144, %145 : vector<28x896xi1>, vector<28x896xf32>
    %147 = arith.addf %138, %146 : vector<28x896xf32>
    %c0_47 = arith.constant 0 : index
    %c0_48 = arith.constant 0 : index
    %148 = vector.load %arg1[%c0_47, %c0_48] : memref<64x224xf32, #tpu.memory_space<vmem>>, vector<28x28xf32>
    %cst_49 = arith.constant dense<0.000000e+00> : vector<28x896xf32>
    %149 = tpu.matmul %148, %130, %cst_49 {dimension_numbers = #tpu.dot_dimension_numbers<[1], [0], [0], [1], [0, 0, 1, 1], [], []>} : vector<28x28xf32>, vector<28x896xf32>, vector<28x896xf32> -> vector<28x896xf32>
    %150 = arith.mulf %149, %147 : vector<28x896xf32>
    %cst_50 = arith.constant dense<0.000000e+00> : vector<896xf32>
    %151 = vector.multi_reduction <add>, %150, %cst_50 [0] : vector<28x896xf32> to vector<896xf32>
    %152 = vector.shape_cast %151 : vector<896xf32> to vector<1x896xf32>
    %c0_51 = arith.constant 0 : index
    %c0_52 = arith.constant 0 : index
    %c0_53 = arith.constant 0 : index
    %153 = vector.load %arg14[%c0_51, %c0_52, %c0_53] : memref<1x2x896xf32, #tpu.memory_space<vmem>>, vector<1x1x896xf32>
    %154 = vector.shape_cast %153 : vector<1x1x896xf32> to vector<1x896xf32>
    %155 = vector.shape_cast %152 : vector<1x896xf32> to vector<1x1x896xf32>
    tpu.vector_store %arg14[%c0_51, %c0_52, %c0_53], %155 {strides = array<i32>} : memref<1x2x896xf32, #tpu.memory_space<vmem>>, vector<1x1x896xf32>,
    %156 = vector.extract_strided_slice %107 {offsets = [1, 0], sizes = [1, 896], strides = [1, 1]} : vector<8x896xi32> to vector<1x896xi32>
    %157 = vector.extract_strided_slice %105 {offsets = [1, 0], sizes = [1, 896], strides = [1, 1]} : vector<8x896xf32> to vector<1x896xf32>
    %158 = vector.extract_strided_slice %108 {offsets = [1, 0], sizes = [1, 896], strides = [1, 1]} : vector<8x896xi32> to vector<1x896xi32>
    %159 = vector.extract_strided_slice %106 {offsets = [1, 0], sizes = [1, 896], strides = [1, 1]} : vector<8x896xf32> to vector<1x896xf32>
    %160 = vector.broadcast %156 : vector<1x896xi32> to vector<28x896xi32>
    %161 = arith.cmpi eq, %109, %160 : vector<28x896xi32>
    %cst_54 = arith.constant 1.000000e+00 : f32
    %162 = vector.broadcast %cst_54 : f32 to vector<1x896xf32>
    %163 = arith.subf %162, %157 : vector<1x896xf32>
    %cst_55 = arith.constant 0.000000e+00 : f32
    %164 = vector.shape_cast %163 : vector<1x896xf32> to vector<1x896xf32>
    %165 = vector.broadcast %164 : vector<1x896xf32> to vector<28x896xf32>
    %166 = vector.broadcast %cst_55 : f32 to vector<28x896xf32>
    %167 = arith.select %161, %165, %166 : vector<28x896xi1>, vector<28x896xf32>
    %c1_i32_56 = arith.constant 1 : i32
    %168 = vector.broadcast %c1_i32_56 : i32 to vector<1x896xi32>
    %169 = arith.addi %156, %168 : vector<1x896xi32>
    %170 = vector.broadcast %169 : vector<1x896xi32> to vector<28x896xi32>
    %171 = arith.cmpi eq, %109, %170 : vector<28x896xi32>
    %cst_57 = arith.constant 0.000000e+00 : f32
    %172 = vector.shape_cast %157 : vector<1x896xf32> to vector<1x896xf32>
    %173 = vector.broadcast %172 : vector<1x896xf32> to vector<28x896xf32>
    %174 = vector.broadcast %cst_57 : f32 to vector<28x896xf32>
    %175 = arith.select %171, %173, %174 : vector<28x896xi1>, vector<28x896xf32>
    %176 = arith.addf %167, %175 : vector<28x896xf32>
    %177 = vector.broadcast %158 : vector<1x896xi32> to vector<28x896xi32>
    %178 = arith.cmpi eq, %109, %177 : vector<28x896xi32>
    %cst_58 = arith.constant 1.000000e+00 : f32
    %179 = vector.broadcast %cst_58 : f32 to vector<1x896xf32>
    %180 = arith.subf %179, %159 : vector<1x896xf32>
    %cst_59 = arith.constant 0.000000e+00 : f32
    %181 = vector.shape_cast %180 : vector<1x896xf32> to vector<1x896xf32>
    %182 = vector.broadcast %181 : vector<1x896xf32> to vector<28x896xf32>
    %183 = vector.broadcast %cst_59 : f32 to vector<28x896xf32>
    %184 = arith.select %178, %182, %183 : vector<28x896xi1>, vector<28x896xf32>
    %c1_i32_60 = arith.constant 1 : i32
    %185 = vector.broadcast %c1_i32_60 : i32 to vector<1x896xi32>
    %186 = arith.addi %158, %185 : vector<1x896xi32>
    %187 = vector.broadcast %186 : vector<1x896xi32> to vector<28x896xi32>
    %188 = arith.cmpi eq, %109, %187 : vector<28x896xi32>
    %cst_61 = arith.constant 0.000000e+00 : f32
    %189 = vector.shape_cast %159 : vector<1x896xf32> to vector<1x896xf32>
    %190 = vector.broadcast %189 : vector<1x896xf32> to vector<28x896xf32>
    %191 = vector.broadcast %cst_61 : f32 to vector<28x896xf32>
    %192 = arith.select %188, %190, %191 : vector<28x896xi1>, vector<28x896xf32>
    %193 = arith.addf %184, %192 : vector<28x896xf32>
    %c32 = arith.constant 32 : index
    %c0_62 = arith.constant 0 : index
    %194 = vector.load %arg1[%c32, %c0_62] : memref<64x224xf32, #tpu.memory_space<vmem>>, vector<28x28xf32>
    %cst_63 = arith.constant dense<0.000000e+00> : vector<28x896xf32>
    %195 = tpu.matmul %194, %176, %cst_63 {dimension_numbers = #tpu.dot_dimension_numbers<[1], [0], [0], [1], [0, 0, 1, 1], [], []>} : vector<28x28xf32>, vector<28x896xf32>, vector<28x896xf32> -> vector<28x896xf32>
    %196 = arith.mulf %195, %193 : vector<28x896xf32>
    %cst_64 = arith.constant dense<0.000000e+00> : vector<896xf32>
    %197 = vector.multi_reduction <add>, %196, %cst_64 [0] : vector<28x896xf32> to vector<896xf32>
    %198 = vector.shape_cast %197 : vector<896xf32> to vector<1x896xf32>
    %c0_65 = arith.constant 0 : index
    %c1 = arith.constant 1 : index
    %c0_66 = arith.constant 0 : index
    %199 = vector.load %arg14[%c0_65, %c1, %c0_66] : memref<1x2x896xf32, #tpu.memory_space<vmem>>, vector<1x1x896xf32>
    %200 = vector.shape_cast %199 : vector<1x1x896xf32> to vector<1x896xf32>
    %201 = vector.shape_cast %198 : vector<1x896xf32> to vector<1x1x896xf32>
    tpu.vector_store %arg14[%c0_65, %c1, %c0_66], %201 {strides = array<i32>} : memref<1x2x896xf32, #tpu.memory_space<vmem>>, vector<1x1x896xf32>,
    return
  }
  func.func @transform_0(%arg0: i32) -> (i32, i32) {
    %c0_i32 = arith.constant 0 : i32
    %c0_i32_0 = arith.constant 0 : i32
    return %arg0, %c0_i32 : i32, i32
  }
  func.func @transform_1(%arg0: i32) -> (i32, i32) {
    %c0_i32 = arith.constant 0 : i32
    %c0_i32_0 = arith.constant 0 : i32
    %c0_i32_1 = arith.constant 0 : i32
    return %c0_i32, %c0_i32_0 : i32, i32
  }
  func.func @transform_2(%arg0: i32) -> (i32, i32) {
    %c0_i32 = arith.constant 0 : i32
    %c0_i32_0 = arith.constant 0 : i32
    %c0_i32_1 = arith.constant 0 : i32
    return %c0_i32, %c0_i32_0 : i32, i32
  }
  func.func @transform_3(%arg0: i32) -> (i32, i32) {
    %c0_i32 = arith.constant 0 : i32
    %c0_i32_0 = arith.constant 0 : i32
    %c0_i32_1 = arith.constant 0 : i32
    return %c0_i32, %c0_i32_0 : i32, i32
  }
  func.func @transform_4(%arg0: i32) -> (i32, i32) {
    %c0_i32 = arith.constant 0 : i32
    %c0_i32_0 = arith.constant 0 : i32
    %c0_i32_1 = arith.constant 0 : i32
    return %c0_i32, %c0_i32_0 : i32, i32
  }
  func.func @transform_5(%arg0: i32) -> (i32, i32) {
    %c0_i32 = arith.constant 0 : i32
    %c0_i32_0 = arith.constant 0 : i32
    %c0_i32_1 = arith.constant 0 : i32
    return %c0_i32, %c0_i32_0 : i32, i32
  }
  func.func @transform_6(%arg0: i32) -> (i32, i32) {
    %c0_i32 = arith.constant 0 : i32
    %c0_i32_0 = arith.constant 0 : i32
    %c0_i32_1 = arith.constant 0 : i32
    return %c0_i32, %c0_i32_0 : i32, i32
  }
  func.func @transform_7(%arg0: i32) -> (i32, i32) {
    %c0_i32 = arith.constant 0 : i32
    %c0_i32_0 = arith.constant 0 : i32
    %c0_i32_1 = arith.constant 0 : i32
    return %c0_i32, %c0_i32_0 : i32, i32
  }
  func.func @transform_8(%arg0: i32) -> (i32, i32) {
    %c0_i32 = arith.constant 0 : i32
    %c0_i32_0 = arith.constant 0 : i32
    %c0_i32_1 = arith.constant 0 : i32
    return %c0_i32, %c0_i32_0 : i32, i32
  }
  func.func @transform_9(%arg0: i32) -> (i32, i32) {
    %c0_i32 = arith.constant 0 : i32
    %c0_i32_0 = arith.constant 0 : i32
    %c0_i32_1 = arith.constant 0 : i32
    return %c0_i32, %c0_i32_0 : i32, i32
  }
  func.func @transform_10(%arg0: i32) -> (i32, i32) {
    %c0_i32 = arith.constant 0 : i32
    %c0_i32_0 = arith.constant 0 : i32
    %c0_i32_1 = arith.constant 0 : i32
    return %c0_i32, %c0_i32_0 : i32, i32
  }
  func.func @transform_11(%arg0: i32) -> (i32, i32) {
    %c0_i32 = arith.constant 0 : i32
    %c0_i32_0 = arith.constant 0 : i32
    %c0_i32_1 = arith.constant 0 : i32
    return %c0_i32, %c0_i32_0 : i32, i32
  }
  func.func @transform_12(%arg0: i32) -> (i32, i32) {
    %c0_i32 = arith.constant 0 : i32
    %c0_i32_0 = arith.constant 0 : i32
    %c0_i32_1 = arith.constant 0 : i32
    return %c0_i32, %c0_i32_0 : i32, i32
  }
  func.func @transform_13(%arg0: i32) -> (i32, i32, i32) {
    %c0_i32 = arith.constant 0 : i32
    %c0_i32_0 = arith.constant 0 : i32
    %c0_i32_1 = arith.constant 0 : i32
    return %arg0, %c0_i32, %c0_i32_0 : i32, i32, i32
  }
}

</mosaic_0001>

<bundles_post_ra>
// kernel: spatial_transformer.1
= control target key start
LH: loop header
LB: loop body
LE: loop exit
PB: predicated region body
PF: predicated region fallthrough
CT: control target
= control target key end

     0   :  { %vm128_vm0 = vcmask 785408   ;;  %vm310_vm1 = vcmask 392192   ;;  %vm464_vm2 = vcmask 1046528   ;;  %vm952_vm3 = vcmask 1043456   ;;  %s7475_s1 = inlined_call_operand.vmem [shape: f32[224,176], index: 1, kind: input, shape index: {}]   ;;  %s7476_s0 = inlined_call_operand.vmem [shape: f32[64,224], index: 0, kind: input, shape index: {}]   ;;  %s7477_s3 = inlined_call_operand.vmem [shape: f32[176,256], index: 3, kind: input, shape index: {}]   ;;  %s7478_s4 = inlined_call_operand.vmem [shape: f32[128,640], index: 4, kind: input, shape index: {}]   ;;  %s7479_s2 = inlined_call_operand.vmem [shape: f32[1,176], index: 2, kind: input, shape index: {}]   ;;  %s7480_s6 = inlined_call_operand.vmem [shape: f32[128,256], index: 6, kind: input, shape index: {}]   ;;  %s7481_s7 = inlined_call_operand.vmem [shape: f32[128,384], index: 7, kind: input, shape index: {}]   ;;  %s7482_s5 = inlined_call_operand.vmem [shape: f32[1,128], index: 5, kind: input, shape index: {}]   ;;  %s7483_s9 = inlined_call_operand.vmem [shape: f32[32,6], index: 9, kind: input, shape index: {}]   ;;  %s7484_s8 = inlined_call_operand.vmem [shape: f32[1,32], index: 8, kind: input, shape index: {}]   ;;  %s7485_s10 = inlined_call_operand.vmem [shape: f32[1,6], index: 10, kind: input, shape index: {}]   ;;  %s7486_s11 = inlined_call_operand.vmem [shape: f32[1,896], index: 11, kind: input, shape index: {}]   ;;  %s7487_s12 = inlined_call_operand.vmem [shape: f32[1,896], index: 12, kind: input, shape index: {}]   ;;  %s7488_s13 = inlined_call_operand.vmem [shape: f32[1,2,896], index: 13, kind: output, shape index: {}]  }
   0x1   :  { %v61_v0 = vld [vmem:[%s7475_s1 + $0x8] sm:$0xff]  ;;  %v63_v1 = vld [vmem:[%s7475_s1 + $0x18] sm:$0xff]  ;;  %v60_v2 = vld [vmem:[%s7475_s1] sm:$0xff]  ;;  %vm917_vm4 = vcmask 1045504   ;;  %vm987_vm5 = vcmask 1041408   ;;  %vm4782_vm6 = vmmov 0  }
   0x2   :  { %v4351_v3 = vpack.c.bf16 %v63_v1, %v61_v0  ;;  %v62_v4 = vld [vmem:[%s7475_s1 + $0x10] sm:$0xff]  ;;  %v65_v5 = vld [vmem:[%s7475_s1 + $0x28] sm:$0xff]  ;;  %v67_v6 = vld [vmem:[%s7475_s1 + $0x38] sm:$0xff]  ;;  %vm1519_vm8 = vcmask 318464   ;;  %vm1607_vm9 = vcmask 261120  }
   0x3   :  { %v4353_v7 = vpack.c.bf16 %v62_v4, %v60_v2  ;;  %v4355_v8 = vpack.c.bf16 %v67_v6, %v65_v5  ;;  %v64_v9 = vld [vmem:[%s7475_s1 + $0x20] sm:$0xff]  ;;  %v66_v10 = vld [vmem:[%s7475_s1 + $0x30] sm:$0xff]  ;;  %v69_v11 = vld [vmem:[%s7475_s1 + $0x48] sm:$0xff] }
   0x4   :  { %4352 = vmatprep.subr.bf16.mxu0 %v4351_v3  ;;  %v71_v12 = vld [vmem:[%s7475_s1 + $0x58] sm:$0xff]  ;;  %v4357_v13 = vpack.c.bf16 %v66_v10, %v64_v9  ;;  %v68_v15 = vld [vmem:[%s7475_s1 + $0x40] sm:$0xff]  ;;  %v70_v16 = vld [vmem:[%s7475_s1 + $0x50] sm:$0xff] }
   0x5   :  { %4354 = vmatpush1.bf16.msra.mxu0 %v4353_v7  ;;  %v4359_v14 = vpack.c.bf16 %v71_v12, %v69_v11  ;;  %v73_v17 = vld [vmem:[%s7475_s1 + $0x68] sm:$0xff]  ;;  %v75_v18 = vld [vmem:[%s7475_s1 + $0x78] sm:$0xff]  ;;  %v4361_v19 = vpack.c.bf16 %v70_v16, %v68_v15  ;;  %v72_v21 = vld [vmem:[%s7475_s1 + $0x60] sm:$0xff] }
   0x6   :  { %4356 = vmatprep.subr.bf16.mxu0 %v4355_v8  ;;  %v4363_v20 = vpack.c.bf16 %v75_v18, %v73_v17  ;;  %v74_v22 = vld [vmem:[%s7475_s1 + $0x70] sm:$0xff]  ;;  %v77_v23 = vld [vmem:[%s7475_s1 + $0x88] sm:$0xff]  ;;  %v79_v24 = vld [vmem:[%s7475_s1 + $0x98] sm:$0xff] }
   0x7   :  { %v4365_v25 = vpack.c.bf16 %v74_v22, %v72_v21  ;;  %v4367_v26 = vpack.c.bf16 %v79_v24, %v77_v23  ;;  %v76_v27 = vld [vmem:[%s7475_s1 + $0x80] sm:$0xff]  ;;  %v78_v28 = vld [vmem:[%s7475_s1 + $0x90] sm:$0xff]  ;;  %v81_v29 = vld [vmem:[%s7475_s1 + $0xa8] sm:$0xff] }
   0x8   :  { %v83_v30 = vld [vmem:[%s7475_s1 + $0xb8] sm:$0xff]  ;;  %v4369_v31 = vpack.c.bf16 %v78_v28, %v76_v27  ;;  %v80_v33 = vld [vmem:[%s7475_s1 + $0xa0] sm:$0xff]  ;;  %v82_v34 = vld [vmem:[%s7475_s1 + $0xb0] sm:$0xff] }
   0x9   :  { %4358 = vmatpush1.bf16.msra.mxu0 %v4357_v13  ;;  %v4371_v32 = vpack.c.bf16 %v83_v30, %v81_v29  ;;  %v85_v35 = vld [vmem:[%s7475_s1 + $0xc8] sm:$0xff]  ;;  %v87_v36 = vld [vmem:[%s7475_s1 + $0xd8] sm:$0xff]  ;;  %v4373_v38 = vpack.c.bf16 %v82_v34, %v80_v33  ;;  %v84_v40 = vld [vmem:[%s7475_s1 + $0xc0] sm:$0xff] }
   0xa   :  { %4360 = vmatprep.subr.bf16.mxu0 %v4359_v14  ;;  %v45_v37 = vld [vmem:[%s7476_s0 + $0x8] sm:$0xff]  ;;  %v4375_v39 = vpack.c.bf16 %v87_v36, %v85_v35  ;;  %v86_v41 = vld [vmem:[%s7475_s1 + $0xd0] sm:$0xff]  ;;  %v91_v43 = vld [vmem:[%s7475_s1 + $0xf8] sm:$0xff] }
   0xb   :  { %4057 = vmatprep.mubr.msk.f32.mxu0 %vm128_vm0, %v45_v37  ;;  %v89_v42 = vld [vmem:[%s7475_s1 + $0xe8] sm:$0xff]  ;;  %v88_v44 = vld [vmem:[%s7475_s1 + $0xe0] sm:$0xff]  ;;  %v90_v45 = vld [vmem:[%s7475_s1 + $0xf0] sm:$0xff]  ;;  %v4377_v46 = vpack.c.bf16 %v86_v41, %v84_v40 }
   0xc   :  { %v93_v47 = vld [vmem:[%s7475_s1 + $0x108] sm:$0xff]  ;;  %v95_v48 = vld [vmem:[%s7475_s1 + $0x118] sm:$0xff]  ;;  %v266_v51 = vld [vmem:[%s7477_s3] sm:$0xff]  ;;  %v4379_v52 = vpack.c.bf16 %v91_v43, %v89_v42  ;;  %v4381_v63 = vpack.c.bf16 %v90_v45, %v88_v44 }
   0xd   :  { %4362 = vmatpush1.bf16.msra.mxu0 %v4361_v19  ;;  %v267_v49 = vld [vmem:[%s7477_s3 + $0x8] sm:$0xff]  ;;  %v269_v50 = vld [vmem:[%s7477_s3 + $0x18] sm:$0xff]  ;;  %v268_v54 = vld [vmem:[%s7477_s3 + $0x10] sm:$0xff]  ;;  %v4383_v3 = vpack.c.bf16 %v95_v48, %v93_v47 }
   0xe   :  { %4364 = vmatprep.subr.bf16.mxu0 %v4363_v20  ;;  %v4407_v53 = vpack.c.bf16 %v269_v50, %v267_v49  ;;  %v271_v55 = vld [vmem:[%s7477_s3 + $0x28] sm:$0xff]  ;;  %v273_v56 = vld [vmem:[%s7477_s3 + $0x38] sm:$0xff]  ;;  %v4409_v57 = vpack.c.bf16 %v268_v54, %v266_v51  ;;  %v270_v59 = vld [vmem:[%s7477_s3 + $0x20] sm:$0xff] }
   0xf   :  { %v4411_v58 = vpack.c.bf16 %v273_v56, %v271_v55  ;;  %v272_v60 = vld [vmem:[%s7477_s3 + $0x30] sm:$0xff]  ;;  %v275_v61 = vld [vmem:[%s7477_s3 + $0x48] sm:$0xff]  ;;  %v277_v62 = vld [vmem:[%s7477_s3 + $0x58] sm:$0xff] }
  0x10   :  { %4408 = vmatprep.subr.bf16.mxu1 %v4407_v53  ;;  %v92_v0 = vld [vmem:[%s7475_s1 + $0x100] sm:$0xff]  ;;  %v94_v1 = vld [vmem:[%s7475_s1 + $0x110] sm:$0xff]  ;;  %v4413_v2 = vpack.c.bf16 %v272_v60, %v270_v59  ;;  %v97_v4 = vld [vmem:[%s7475_s1 + $0x128] sm:$0xff]  ;;  %v4415_v5 = vpack.c.bf16 %v277_v62, %v275_v61 }
  0x11   :  { %4366 = vmatpush1.bf16.msra.mxu0 %v4365_v25  ;;  %4410 = vmatpush1.bf16.msra.mxu1 %v4409_v57  ;;  %v274_v6 = vld [vmem:[%s7477_s3 + $0x40] sm:$0xff]  ;;  %v276_v7 = vld [vmem:[%s7477_s3 + $0x50] sm:$0xff]  ;;  %v99_v8 = vld [vmem:[%s7475_s1 + $0x138] sm:$0xff]  ;;  %v4385_v11 = vpack.c.bf16 %v94_v1, %v92_v0 }
  0x12   :  { %4368 = vmatprep.subr.bf16.mxu0 %v4367_v26  ;;  %4412 = vmatprep.subr.bf16.mxu1 %v4411_v58  ;;  %v279_v9 = vld [vmem:[%s7477_s3 + $0x68] sm:$0xff]  ;;  %v281_v10 = vld [vmem:[%s7477_s3 + $0x78] sm:$0xff]  ;;  %v96_v12 = vld [vmem:[%s7475_s1 + $0x120] sm:$0xff]  ;;  %v4417_v14 = vpack.c.bf16 %v276_v7, %v274_v6  ;;  %v4387_v15 = vpack.c.bf16 %v99_v8, %v97_v4 }
  0x13   :  { %v98_v13 = vld [vmem:[%s7475_s1 + $0x130] sm:$0xff]  ;;  %v101_v16 = vld [vmem:[%s7475_s1 + $0x148] sm:$0xff]  ;;  %v4419_v17 = vpack.c.bf16 %v281_v10, %v279_v9  ;;  %v278_v18 = vld [vmem:[%s7477_s3 + $0x60] sm:$0xff] }
  0x14   :  { %v280_v19 = vld [vmem:[%s7477_s3 + $0x70] sm:$0xff]  ;;  %v103_v20 = vld [vmem:[%s7475_s1 + $0x158] sm:$0xff]  ;;  %v283_v21 = vld [vmem:[%s7477_s3 + $0x88] sm:$0xff]  ;;  %v4389_v23 = vpack.c.bf16 %v98_v13, %v96_v12 }
  0x15   :  { %4370 = vmatpush1.bf16.msra.mxu0 %v4369_v31  ;;  %4414 = vmatpush1.bf16.msra.mxu1 %v4413_v2  ;;  %v285_v22 = vld [vmem:[%s7477_s3 + $0x98] sm:$0xff]  ;;  %v100_v24 = vld [vmem:[%s7475_s1 + $0x140] sm:$0xff]  ;;  %v102_v25 = vld [vmem:[%s7475_s1 + $0x150] sm:$0xff]  ;;  %v4421_v26 = vpack.c.bf16 %v280_v19, %v278_v18  ;;  %v4391_v27 = vpack.c.bf16 %v103_v20, %v101_v16 }
  0x16   :  { %4372 = vmatprep.subr.bf16.mxu0 %v4371_v32  ;;  %4416 = vmatprep.subr.bf16.mxu1 %v4415_v5  ;;  %v105_v28 = vld [vmem:[%s7475_s1 + $0x168] sm:$0xff]  ;;  %v4423_v29 = vpack.c.bf16 %v285_v22, %v283_v21  ;;  %v282_v30 = vld [vmem:[%s7477_s3 + $0x80] sm:$0xff]  ;;  %v284_v31 = vld [vmem:[%s7477_s3 + $0x90] sm:$0xff]  ;;  %v4393_v35 = vpack.c.bf16 %v102_v25, %v100_v24 }
  0x17   :  { %v107_v32 = vld [vmem:[%s7475_s1 + $0x178] sm:$0xff]  ;;  %v287_v33 = vld [vmem:[%s7477_s3 + $0xa8] sm:$0xff]  ;;  %v104_v36 = vld [vmem:[%s7475_s1 + $0x160] sm:$0xff] }
  0x18   :  { %v289_v34 = vld [vmem:[%s7477_s3 + $0xb8] sm:$0xff]  ;;  %v106_v37 = vld [vmem:[%s7475_s1 + $0x170] sm:$0xff]  ;;  %v109_v40 = vld [vmem:[%s7475_s1 + $0x188] sm:$0xff] }
  0x19   :  { %4374 = vmatpush1.bf16.msra.mxu0 %v4373_v38  ;;  %4418 = vmatpush1.bf16.msra.mxu1 %v4417_v14  ;;  %v4425_v38 = vpack.c.bf16 %v284_v31, %v282_v30  ;;  %v4427_v41 = vpack.c.bf16 %v289_v34, %v287_v33  ;;  %v286_v42 = vld [vmem:[%s7477_s3 + $0xa0] sm:$0xff]  ;;  %v288_v43 = vld [vmem:[%s7477_s3 + $0xb0] sm:$0xff]  ;;  %v111_v44 = vld [vmem:[%s7475_s1 + $0x198] sm:$0xff]  ;;  %v4397_v47 = vpack.c.bf16 %v106_v37, %v104_v36 }
  0x1a   :  { %4376 = vmatprep.subr.bf16.mxu0 %v4375_v39  ;;  %4420 = vmatprep.subr.bf16.mxu1 %v4419_v17  ;;  %v4395_v39 = vpack.c.bf16 %v107_v32, %v105_v28  ;;  %v291_v45 = vld [vmem:[%s7477_s3 + $0xc8] sm:$0xff]  ;;  %v108_v48 = vld [vmem:[%s7475_s1 + $0x180] sm:$0xff]  ;;  %v110_v49 = vld [vmem:[%s7475_s1 + $0x190] sm:$0xff]  ;;  %v4429_v50 = vpack.c.bf16 %v288_v43, %v286_v42  ;;  %v4399_v51 = vpack.c.bf16 %v111_v44, %v109_v40 }
  0x1b   :  { %v290_v54 = vld [vmem:[%s7477_s3 + $0xc0] sm:$0xff]  ;;  %v292_v55 = vld [vmem:[%s7477_s3 + $0xd0] sm:$0xff]  ;;  %v115_v56 = vld [vmem:[%s7475_s1 + $0x1b8] sm:$0xff]  ;;  %v4401_v59 = vpack.c.bf16 %v110_v49, %v108_v48 }
  0x1c   :  { %v295_v57 = vld [vmem:[%s7477_s3 + $0xe8] sm:$0xff]  ;;  %v297_v58 = vld [vmem:[%s7477_s3 + $0xf8] sm:$0xff]  ;;  %v112_v60 = vld [vmem:[%s7475_s1 + $0x1a0] sm:$0xff]  ;;  %v4433_v61 = vpack.c.bf16 %v292_v55, %v290_v54 }
  0x1d   :  { %4378 = vmatpush1.bf16.msra.mxu0 %v4377_v46  ;;  %4422 = vmatpush1.bf16.msra.mxu1 %v4421_v26  ;;  %v293_v46 = vld [vmem:[%s7477_s3 + $0xd8] sm:$0xff]  ;;  %v4435_v0 = vpack.c.bf16 %v297_v58, %v295_v57  ;;  %v294_v1 = vld [vmem:[%s7477_s3 + $0xe0] sm:$0xff]  ;;  %v296_v2 = vld [vmem:[%s7477_s3 + $0xf0] sm:$0xff] }
  0x1e   :  { %4380 = vmatprep.subr.bf16.mxu0 %v4379_v52  ;;  %4424 = vmatprep.subr.bf16.mxu1 %v4423_v29  ;;  %v113_v52 = vld [vmem:[%s7475_s1 + $0x1a8] sm:$0xff]  ;;  %v4431_v53 = vpack.c.bf16 %v293_v46, %v291_v45  ;;  %v301_v4 = vld [vmem:[%s7477_s3 + $0x118] sm:$0xff]  ;;  %v4437_v6 = vpack.c.bf16 %v296_v2, %v294_v1  ;;  %v298_v8 = vld [vmem:[%s7477_s3 + $0x100] sm:$0xff] }
  0x1f   :  { %v4403_v62 = vpack.c.bf16 %v115_v56, %v113_v52  ;;  %v300_v9 = vld [vmem:[%s7477_s3 + $0x110] sm:$0xff]  ;;  %v303_v10 = vld [vmem:[%s7477_s3 + $0x128] sm:$0xff]  ;;  %v44_v12 = vld [vmem:[%s7476_s0] sm:$0xff] }
  0x20   :  { %v4441_v13 = vpack.c.bf16 %v300_v9, %v298_v8  ;;  %v47_v14 = vld [vmem:[%s7476_s0 + $0x18] sm:$0xff]  ;;  %v302_v16 = vld [vmem:[%s7477_s3 + $0x120] sm:$0xff]  ;;  %v304_v17 = vld [vmem:[%s7477_s3 + $0x130] sm:$0xff] }
  0x21   :  { %4382 = vmatpush1.bf16.msra.mxu0 %v4381_v63  ;;  %4426 = vmatpush1.bf16.msra.mxu1 %v4425_v38  ;;  %v114_v63 = vld [vmem:[%s7475_s1 + $0x1b0] sm:$0xff]  ;;  %v4445_v19 = vpack.c.bf16 %v304_v17, %v302_v16  ;;  %v49_v20 = vld [vmem:[%s7476_s0 + $0x28] sm:$0xff]  ;;  %v48_v21 = vld [vmem:[%s7476_s0 + $0x20] sm:$0xff] }
  0x22   :  { %4384 = vmatprep.subr.bf16.mxu0 %v4383_v3  ;;  %4428 = vmatprep.subr.bf16.mxu1 %v4427_v41  ;;  %v299_v3 = vld [vmem:[%s7477_s3 + $0x108] sm:$0xff]  ;;  %v4405_v5 = vpack.c.bf16 %v114_v63, %v112_v60  ;;  %v46_v18 = vld [vmem:[%s7476_s0 + $0x10] sm:$0xff]  ;;  %v51_v22 = vld [vmem:[%s7476_s0 + $0x38] sm:$0xff] }
  0x23   :  { %v4439_v7 = vpack.c.bf16 %v301_v4, %v299_v3  ;;  %v53_v24 = vld [vmem:[%s7476_s0 + $0x48] sm:$0xff]  ;;  %v52_v25 = vld [vmem:[%s7476_s0 + $0x40] sm:$0xff]  ;;  %v55_v26 = vld [vmem:[%s7476_s0 + $0x58] sm:$0xff]  ;;  %v7489_v4 = vlaneseq }
  0x24   :  { %v57_v28 = vld [vmem:[%s7476_s0 + $0x68] sm:$0xff]  ;;  %v56_v29 = vld [vmem:[%s7476_s0 + $0x60] sm:$0xff]  ;;  %v59_v30 = vld [vmem:[%s7476_s0 + $0x78] sm:$0xff] }
  0x25   :  { %4386 = vmatpush1.bf16.msra.mxu0 %v4385_v11  ;;  %4430 = vmatpush1.bf16.msra.mxu1 %v4429_v50  ;;  %v305_v11 = vld [vmem:[%s7477_s3 + $0x138] sm:$0xff]  ;;  %v58_v31 = vld [vmem:[%s7476_s0 + $0x70] sm:$0xff]  ;;  %v307_v32 = vld [vmem:[%s7477_s3 + $0x148] sm:$0xff] }
  0x26   :  { %4388 = vmatprep.subr.bf16.mxu0 %v4387_v15  ;;  %4432 = vmatprep.subr.bf16.mxu1 %v4431_v53  ;;  %v4443_v15 = vpack.c.bf16 %v305_v11, %v303_v10  ;;  %v309_v33 = vld [vmem:[%s7477_s3 + $0x158] sm:$0xff]  ;;  %v308_v36 = vld [vmem:[%s7477_s3 + $0x150] sm:$0xff]  ;;  %v505_v38 = vld [vmem:[%s7478_s4 + $0x8] sm:$0xff] }
  0x27   :  { %v4447_v34 = vpack.c.bf16 %v309_v33, %v307_v32  ;;  %v507_v40 = vld [vmem:[%s7478_s4 + $0x18] sm:$0xff]  ;;  %v512_v42 = vld [vmem:[%s7478_s4 + $0x40] sm:$0xff]  ;;  %v506_v44 = vld [vmem:[%s7478_s4 + $0x10] sm:$0xff] }
  0x28   :  { %v4483_v43 = vpack.c.bf16 %v512_v42, %v507_v40  ;;  %v511_v45 = vld [vmem:[%s7478_s4 + $0x38] sm:$0xff]  ;;  %v522_v48 = vld [vmem:[%s7478_s4 + $0x90] sm:$0xff]  ;;  %v516_v50 = vld [vmem:[%s7478_s4 + $0x60] sm:$0xff] }
  0x29   :  { %4390 = vmatpush1.bf16.msra.mxu0 %v4389_v23  ;;  %4434 = vmatpush1.bf16.msra.mxu1 %v4433_v61  ;;  %v50_v23 = vld [vmem:[%s7476_s0 + $0x30] sm:$0xff]  ;;  %v4485_v46 = vpack.c.bf16 %v511_v45, %v506_v44  ;;  %v527_v53 = vld [vmem:[%s7478_s4 + $0xb8] sm:$0xff]  ;;  %v532_v54 = vld [vmem:[%s7478_s4 + $0xe0] sm:$0xff] }
  0x2a   :  { %4392 = vmatprep.subr.bf16.mxu0 %v4391_v27  ;;  %4436 = vmatprep.subr.bf16.mxu1 %v4435_v0  ;;  %v54_v27 = vld [vmem:[%s7476_s0 + $0x50] sm:$0xff]  ;;  %v4491_v55 = vpack.c.bf16 %v532_v54, %v527_v53  ;;  %v531_v57 = vld [vmem:[%s7478_s4 + $0xd8] sm:$0xff]  ;;  %v537_v58 = vld [vmem:[%s7478_s4 + $0x108] sm:$0xff] }
  0x2b   :  { %v526_v56 = vld [vmem:[%s7478_s4 + $0xb0] sm:$0xff]  ;;  %v541_v63 = vld [vmem:[%s7478_s4 + $0x128] sm:$0xff]  ;;  %v547_v0 = vld [vmem:[%s7478_s4 + $0x158] sm:$0xff] }
  0x2c   :  { %v542_v60 = vld [vmem:[%s7478_s4 + $0x130] sm:$0xff]  ;;  %v552_v1 = vld [vmem:[%s7478_s4 + $0x180] sm:$0xff]  ;;  %v529_v32 = vld [vmem:[%s7478_s4 + $0xc8] sm:$0xff] }
  0x2d   :  { %4394 = vmatpush1.bf16.msra.mxu0 %v4393_v35  ;;  %4438 = vmatpush1.bf16.msra.mxu1 %v4437_v6  ;;  %v306_v35 = vld [vmem:[%s7477_s3 + $0x140] sm:$0xff]  ;;  %v4495_v61 = vpack.c.bf16 %v542_v60, %v537_v58  ;;  %v4499_v3 = vpack.c.bf16 %v552_v1, %v547_v0  ;;  %v539_v42 = vld [vmem:[%s7478_s4 + $0x118] sm:$0xff]  ;;  %v545_v44 = vld [vmem:[%s7478_s4 + $0x148] sm:$0xff] }
  0x2e   :  { %4396 = vmatprep.subr.bf16.mxu0 %v4395_v39  ;;  %4440 = vmatprep.subr.bf16.mxu1 %v4439_v7  ;;  %v4449_v37 = vpack.c.bf16 %v308_v36, %v306_v35  ;;  %v510_v39 = vld [vmem:[%s7478_s4 + $0x30] sm:$0xff]  ;;  %v116_v7 = vld [vmem:[%s7479_s2] sm:$0x3] }
  0x2f   :  { %v4451_v41 = vpack.c.bf16 %v510_v39, %v505_v38  ;;  %v504_v11 = vld [vmem:[%s7478_s4] sm:$0xff]  ;;  %v550_v45 = vld [vmem:[%s7478_s4 + $0x170] sm:$0xff] }
  0x30   :  { %v540_v35 = vld [vmem:[%s7478_s4 + $0x120] sm:$0xff] }
  0x31   :  { %4398 = vmatpush1.bf16.msra.mxu0 %v4397_v47  ;;  %4442 = vmatpush1.bf16.msra.mxu1 %v4441_v13  ;;  %v517_v47 = vld [vmem:[%s7478_s4 + $0x68] sm:$0xff] }
  0x32   :  { %4400 = vmatprep.subr.bf16.mxu0 %v4399_v51  ;;  %4444 = vmatprep.subr.bf16.mxu1 %v4443_v15  ;;  %v4487_v49 = vpack.c.bf16 %v522_v48, %v517_v47  ;;  %v521_v51 = vld [vmem:[%s7478_s4 + $0x88] sm:$0xff]  ;;  %v520_v15 = vld [vmem:[%s7478_s4 + $0x80] sm:$0xff] }
  0x33   :  { %v4489_v52 = vpack.c.bf16 %v521_v51, %v516_v50  ;;  %v4467_v50 = vpack.c.bf16 %v550_v45, %v545_v44 }
  0x35   :  { %4402 = vmatpush1.bf16.msra.mxu0 %v4401_v59  ;;  %4446 = vmatpush1.bf16.msra.mxu1 %v4445_v19  ;;  %v4493_v59 = vpack.c.bf16 %v531_v57, %v526_v56 }
  0x36   :  { %4404 = vmatprep.subr.bf16.mxu0 %v4403_v62  ;;  %4448 = vmatprep.subr.bf16.mxu1 %v4447_v34  ;;  %v536_v62 = vld [vmem:[%s7478_s4 + $0x100] sm:$0xff]  ;;  %v535_v34 = vld [vmem:[%s7478_s4 + $0xf8] sm:$0xff] }
  0x37   :  { %v4497_v2 = vpack.c.bf16 %v541_v63, %v536_v62  ;;  %v4463_v40 = vpack.c.bf16 %v540_v35, %v535_v34  ;;  %v566_v34 = vld [vmem:[%s7478_s4 + $0x1f0] sm:$0xff]  ;;  %v571_v35 = vld [vmem:[%s7478_s4 + $0x218] sm:$0xff] }
  0x39   :  { %4406 = vmatpush1.bf16.msra.mxu0 %v4405_v5  ;;  %4450 = vmatpush1.bf16.msra.mxu1 %v4449_v37  ;;  %v5278_v5 = vshrl.u32 %v7489_v4, 7 }
  0x3a   :  { %4452 = vmatprep.subr.bf16.mxu1 %v4451_v41  ;;  %4484 = vmatprep.subr.bf16.mxu0 %v4483_v43  ;;  %v534_v41 = vld [vmem:[%s7478_s4 + $0xf0] sm:$0xff] }
  0x3b   :  { %v5281_v6 = vsub.s32 1, %v5278_v5  ;;  %v5287_v8 = vsub.s32 0, %v5278_v5  ;;  %v4465_v48 = vpack.c.bf16 %v539_v42, %v534_v41  ;;  %v582_v41 = vld [vmem:[%s7478_s4 + $0x270] sm:$0xff] }
  0x3c   :  { %218 = vmatmul.mubr.f32.vlgmr.msra.gmra.mrb[0].mxu0 %v44_v12  ;;  %v509_v12 = vld [vmem:[%s7478_s4 + $0x28] sm:$0xff]  ;;  %v574_v42 = vld [vmem:[%s7478_s4 + $0x230] sm:$0xff] }
  0x3d   :  { %4058 = vmatprep.mubr.msk.f32.mxu0 %vm128_vm0, %v47_v14  ;;  %4486 = vmatpush1.bf16.msra.mxu0 %v4485_v46  ;;  %v5290_v9 = vrot.slane %v116_v7, %v5281_v6  ;;  %v5293_v10 = vrot.slane %v116_v7, %v5287_v8  ;;  %v515_v14 = vld [vmem:[%s7478_s4 + $0x58] sm:$0xff]  ;;  %v549_v7 = vld [vmem:[%s7478_s4 + $0x168] sm:$0xff] }
  0x3e   :  { %4488 = vmatprep.subr.bf16.mxu0 %v4487_v49 }
  0x40   :  { %224 = vmatmul.mubr.f32.gmra.mrb[2].mxu0 %v46_v18  ;;  %v4453_v18 = vpack.c.bf16 %v509_v12, %v504_v11  ;;  %v546_v11 = vld [vmem:[%s7478_s4 + $0x150] sm:$0xff] }
  0x41   :  { %4059 = vmatprep.mubr.msk.f32.mxu0 %vm128_vm0, %v49_v20  ;;  %4490 = vmatpush1.bf16.msra.mxu0 %v4489_v52  ;;  %v4455_v20 = vpack.c.bf16 %v520_v15, %v515_v14  ;;  %v560_v14 = vld [vmem:[%s7478_s4 + $0x1c0] sm:$0xff]  ;;  %v557_v15 = vld [vmem:[%s7478_s4 + $0x1a8] sm:$0xff] }
  0x42   :  { %4492 = vmatprep.subr.bf16.mxu0 %v4491_v55 }
  0x44   :  { %230 = vmatmul.mubr.f32.gmra.mrb[4].mxu0 %v48_v21  ;;  %v514_v21 = vld [vmem:[%s7478_s4 + $0x50] sm:$0xff] }
  0x45   :  { %4060 = vmatprep.mubr.msk.f32.mxu0 %vm128_vm0, %v51_v22  ;;  %4494 = vmatpush1.bf16.msra.mxu0 %v4493_v59  ;;  %v519_v22 = vld [vmem:[%s7478_s4 + $0x78] sm:$0xff] }
  0x46   :  { %4496 = vmatprep.subr.bf16.mxu0 %v4495_v61 }
  0x48   :  { %236 = vmatmul.mubr.f32.gmra.mrb[6].mxu0 %v50_v23 }
  0x49   :  { %4061 = vmatprep.mubr.msk.f32.mxu0 %vm128_vm0, %v53_v24  ;;  %4498 = vmatpush1.bf16.msra.mxu0 %v4497_v2  ;;  %v525_v24 = vld [vmem:[%s7478_s4 + $0xa8] sm:$0xff] }
  0x4a   :  { %4500 = vmatprep.subr.bf16.mxu0 %v4499_v3  ;;  %v544_v3 = vld [vmem:[%s7478_s4 + $0x140] sm:$0xff] }
  0x4b   :  { %v4469_v12 = vpack.c.bf16 %v549_v7, %v544_v3 }
  0x4c   :  { %242 = vmatmul.mubr.f32.gmra.mrb[8].mxu0 %v52_v25  ;;  %v530_v25 = vld [vmem:[%s7478_s4 + $0xd0] sm:$0xff] }
  0x4d   :  { %4062 = vmatprep.mubr.msk.f32.mxu0 %vm128_vm0, %v55_v26 }
  0x50   :  { %248 = vmatmul.mubr.f32.gmra.mrb[10].mxu0 %v54_v27 }
  0x51   :  { %4063 = vmatprep.mubr.msk.f32.mxu0 %vm128_vm0, %v57_v28  ;;  %v4457_v28 = vpack.c.bf16 %v519_v22, %v514_v21  ;;  %v556_v22 = vld [vmem:[%s7478_s4 + $0x1a0] sm:$0xff] }
  0x54   :  { %254 = vmatmul.mubr.f32.gmra.mrb[12].mxu0 %v56_v29 }
  0x55   :  { %4064 = vmatprep.mubr.msk.f32.mxu0 %vm128_vm0, %v59_v30  ;;  %v4459_v30 = vpack.c.bf16 %v530_v25, %v525_v24  ;;  %v565_v25 = vld [vmem:[%s7478_s4 + $0x1e8] sm:$0xff] }
  0x58   :  { %260 = vmatmul.mubr.f32.gmra.mrb[14].mxu0 %v58_v31  ;;  %v524_v31 = vld [vmem:[%s7478_s4 + $0xa0] sm:$0xff] }
  0x59   :  { %v4461_v38 = vpack.c.bf16 %v529_v32, %v524_v31  ;;  %v569_v31 = vld [vmem:[%s7478_s4 + $0x208] sm:$0xff] }
 0x10f   :  { %v219_v13 = vpop.f32.mrb[0].mxu0 }
 0x110   :  { %v221_v16 = vpop.f32.mrb[1].mxu0  ;;  %v220_v19 = vadd.f32 %v219_v13, %v5293_v10  ;;  %v555_v13 = vld [vmem:[%s7478_s4 + $0x198] sm:$0xff] }
 0x111   :  { %v222_v17 = vadd.f32 %v221_v16, %v5290_v9  ;;  %v4471_v16 = vpack.c.bf16 %v560_v14, %v555_v13 }
 0x113   :  { %v225_v23 = vpop.f32.mrb[2].mxu0  ;;  %4065 = vmatprep.mubr.msk.f32.mxu1 %vm310_vm1, %v222_v17  ;;  %v562_v17 = vld [vmem:[%s7478_s4 + $0x1d0] sm:$0xff] }
 0x114   :  { %v227_v26 = vpop.f32.mrb[3].mxu0  ;;  %400 = vmatmul.mubr.f32.vlgmr.msra.gmra.mrb[0].mxu1 %v220_v19  ;;  %v226_v29 = vadd.f32 %v225_v23, %v5293_v10  ;;  %v559_v19 = vld [vmem:[%s7478_s4 + $0x1b8] sm:$0xff]  ;;  %v561_v23 = vld [vmem:[%s7478_s4 + $0x1c8] sm:$0xff] }
 0x115   :  { %v228_v27 = vadd.f32 %v227_v26, %v5290_v9  ;;  %4454 = vmatpush1.bf16.msra.mxu1 %v4453_v18  ;;  %v554_v18 = vld [vmem:[%s7478_s4 + $0x190] sm:$0xff]  ;;  %v4505_v24 = vpack.c.bf16 %v561_v23, %v556_v22 }
 0x116   :  { %4456 = vmatprep.subr.bf16.mxu1 %v4455_v20  ;;  %v4503_v20 = vpack.c.bf16 %v562_v17, %v557_v15  ;;  %v4473_v21 = vpack.c.bf16 %v559_v19, %v554_v18  ;;  %v570_v26 = vld [vmem:[%s7478_s4 + $0x210] sm:$0xff]  ;;  %v528_v15 = vld [vmem:[%s7478_s4 + $0xc0] sm:$0xff] }
 0x117   :  { %v231_v33 = vpop.f32.mrb[4].mxu0  ;;  %4066 = vmatprep.mubr.msk.f32.mxu1 %vm310_vm1, %v228_v27  ;;  %v567_v27 = vld [vmem:[%s7478_s4 + $0x1f8] sm:$0xff] }
 0x118   :  { %v233_v36 = vpop.f32.mrb[5].mxu0  ;;  %406 = vmatmul.mubr.f32.gmra.mrb[2].mxu1 %v226_v29  ;;  %v232_v39 = vadd.f32 %v231_v33, %v5293_v10  ;;  %v572_v29 = vld [vmem:[%s7478_s4 + $0x220] sm:$0xff] }
 0x119   :  { %v234_v37 = vadd.f32 %v233_v36, %v5290_v9  ;;  %4458 = vmatpush1.bf16.msra.mxu1 %v4457_v28  ;;  %v4475_v28 = vpack.c.bf16 %v570_v26, %v565_v25  ;;  %v4507_v32 = vpack.c.bf16 %v572_v29, %v567_v27  ;;  %v4509_v36 = vpack.c.bf16 %v571_v35, %v566_v34  ;;  %v538_v25 = vld [vmem:[%s7478_s4 + $0x110] sm:$0xff]  ;;  %v543_v26 = vld [vmem:[%s7478_s4 + $0x138] sm:$0xff]  ;;  %v548_v35 = vld [vmem:[%s7478_s4 + $0x160] sm:$0xff] }
 0x11a   :  { %4460 = vmatprep.subr.bf16.mxu1 %v4459_v30  ;;  %v564_v30 = vld [vmem:[%s7478_s4 + $0x1e0] sm:$0xff] }
 0x11b   :  { %v237_v43 = vpop.f32.mrb[6].mxu0  ;;  %4067 = vmatprep.mubr.msk.f32.mxu1 %vm310_vm1, %v234_v37  ;;  %v4477_v33 = vpack.c.bf16 %v569_v31, %v564_v30  ;;  %v575_v37 = vld [vmem:[%s7478_s4 + $0x238] sm:$0xff] }
 0x11c   :  { %v239_v46 = vpop.f32.mrb[7].mxu0  ;;  %412 = vmatmul.mubr.f32.gmra.mrb[4].mxu1 %v232_v39  ;;  %v238_v49 = vadd.f32 %v237_v43, %v5293_v10  ;;  %v577_v39 = vld [vmem:[%s7478_s4 + $0x248] sm:$0xff]  ;;  %v579_v43 = vld [vmem:[%s7478_s4 + $0x258] sm:$0xff] }
 0x11d   :  { %v240_v47 = vadd.f32 %v239_v46, %v5290_v9  ;;  %4462 = vmatpush1.bf16.msra.mxu1 %v4461_v38  ;;  %v580_v38 = vld [vmem:[%s7478_s4 + $0x260] sm:$0xff]  ;;  %v4511_v44 = vpack.c.bf16 %v582_v41, %v577_v39  ;;  %v4481_v45 = vpack.c.bf16 %v579_v43, %v574_v42 }
 0x11e   :  { %4464 = vmatprep.subr.bf16.mxu1 %v4463_v40  ;;  %v4479_v40 = vpack.c.bf16 %v580_v38, %v575_v37  ;;  %v576_v46 = vld [vmem:[%s7478_s4 + $0x240] sm:$0xff] }
 0x11f   :  { %v243_v51 = vpop.f32.mrb[8].mxu0  ;;  %4068 = vmatprep.mubr.msk.f32.mxu1 %vm310_vm1, %v240_v47  ;;  %v581_v47 = vld [vmem:[%s7478_s4 + $0x268] sm:$0xff] }
 0x120   :  { %v245_v52 = vpop.f32.mrb[9].mxu0  ;;  %418 = vmatmul.mubr.f32.gmra.mrb[6].mxu1 %v238_v49  ;;  %v244_v54 = vadd.f32 %v243_v51, %v5293_v10  ;;  %v508_v49 = vld [vmem:[%s7478_s4 + $0x20] sm:$0xff] }
 0x121   :  { %v246_v53 = vadd.f32 %v245_v52, %v5290_v9  ;;  %4466 = vmatpush1.bf16.msra.mxu1 %v4465_v48  ;;  %v4513_v48 = vpack.c.bf16 %v581_v47, %v576_v46  ;;  %v4780_v52 = vmov 0.0   ;;  %v563_v46 = vld [vmem:[%s7478_s4 + $0x1d8] sm:$0xff] }
 0x122   :  { %4468 = vmatprep.subr.bf16.mxu1 %v4467_v50  ;;  %v513_v50 = vld [vmem:[%s7478_s4 + $0x48] sm:$0xff]  ;;  %759 = vmatprep.mubr.f32.mxu0 %v4780_v52 }
 0x123   :  { %v249_v55 = vpop.f32.mrb[10].mxu0  ;;  %4069 = vmatprep.mubr.msk.f32.mxu1 %vm310_vm1, %v246_v53  ;;  %v4515_v51 = vpack.c.bf16 %v513_v50, %v508_v49 }
 0x124   :  { %v251_v56 = vpop.f32.mrb[11].mxu0  ;;  %424 = vmatmul.mubr.f32.gmra.mrb[8].mxu1 %v244_v54  ;;  %v250_v58 = vadd.f32 %v249_v55, %v5293_v10 }
 0x125   :  { %v252_v57 = vadd.f32 %v251_v56, %v5290_v9  ;;  %4470 = vmatpush1.bf16.msra.mxu1 %v4469_v12 }
 0x126   :  { %4472 = vmatprep.subr.bf16.mxu1 %v4471_v16  ;;  %v533_v16 = vld [vmem:[%s7478_s4 + $0xe8] sm:$0xff] }
 0x127   :  { %v255_v59 = vpop.f32.mrb[12].mxu0  ;;  %4070 = vmatprep.mubr.msk.f32.mxu1 %vm310_vm1, %v252_v57  ;;  %v4523_v22 = vpack.c.bf16 %v533_v16, %v528_v15  ;;  %v1041_v16 = vld [vmem:[%s7480_s6 + $0x28] sm:$0xff] }
 0x128   :  { %v257_v60 = vpop.f32.mrb[13].mxu0  ;;  %430 = vmatmul.mubr.f32.gmra.mrb[10].mxu1 %v250_v58  ;;  %v256_v62 = vadd.f32 %v255_v59, %v5293_v10 }
 0x129   :  { %v258_v61 = vadd.f32 %v257_v60, %v5290_v9  ;;  %4474 = vmatpush1.bf16.msra.mxu1 %v4473_v21 }
 0x12a   :  { %4476 = vmatprep.subr.bf16.mxu1 %v4475_v28 }
 0x12b   :  { %v261_v63 = vpop.f32.mrb[14].mxu0  ;;  %4071 = vmatprep.mubr.msk.f32.mxu1 %vm310_vm1, %v258_v61 }
 0x12c   :  { %v263_v0 = vpop.f32.mrb[15].mxu0  ;;  %436 = vmatmul.mubr.f32.gmra.mrb[12].mxu1 %v256_v62  ;;  %v262_v2 = vadd.f32 %v261_v63, %v5293_v10 }
 0x12d   :  { %v264_v1 = vadd.f32 %v263_v0, %v5290_v9  ;;  %v551_v9 = vld [vmem:[%s7478_s4 + $0x178] sm:$0xff]  ;;  %4478 = vmatpush1.bf16.msra.mxu1 %v4477_v33 }
 0x12e   :  { %v4501_v10 = vpack.c.bf16 %v551_v9, %v546_v11  ;;  %4480 = vmatprep.subr.bf16.mxu1 %v4479_v40 }
 0x12f   :  { %4072 = vmatprep.mubr.msk.f32.mxu1 %vm310_vm1, %v264_v1  ;;  %v518_v1 = vld [vmem:[%s7478_s4 + $0x70] sm:$0xff] }
 0x130   :  { %442 = vmatmul.mubr.f32.gmra.mrb[14].mxu1 %v262_v2  ;;  %4502 = vmatpush1.bf16.msra.mxu0 %v4501_v10  ;;  %v523_v2 = vld [vmem:[%s7478_s4 + $0x98] sm:$0xff] }
 0x131   :  { %4504 = vmatprep.subr.bf16.mxu0 %v4503_v20  ;;  %4482 = vmatpush1.bf16.msra.mxu1 %v4481_v45  ;;  %v4519_v10 = vpack.c.bf16 %v523_v2, %v518_v1  ;;  %v558_v45 = vld [vmem:[%s7478_s4 + $0x1b0] sm:$0xff] }
 0x132   :  { %648 = vmatprep.mubr.f32.mxu1 %v4780_v52  ;;  %4516 = vmatprep.subr.bf16.mxu1 %v4515_v51 }
 0x134   :  { %4506 = vmatpush1.bf16.msra.mxu0 %v4505_v24 }
 0x135   :  { %4508 = vmatprep.subr.bf16.mxu0 %v4507_v32  ;;  %v4527_v32 = vpack.c.bf16 %v543_v26, %v538_v25  ;;  %v1044_v25 = vld [vmem:[%s7480_s6 + $0x40] sm:$0xff]  ;;  %v1046_v26 = vld [vmem:[%s7480_s6 + $0x50] sm:$0xff] }
 0x138   :  { %4510 = vmatpush1.bf16.msra.mxu0 %v4509_v36  ;;  %v553_v36 = vld [vmem:[%s7478_s4 + $0x188] sm:$0xff] }
 0x139   :  { %4512 = vmatprep.subr.bf16.mxu0 %v4511_v44  ;;  %v4531_v42 = vpack.c.bf16 %v553_v36, %v548_v35  ;;  %v1055_v35 = vld [vmem:[%s7480_s6 + $0x98] sm:$0xff] }
 0x13c   :  { %4514 = vmatpush1.bf16.msra.mxu0 %v4513_v48 }
 0x1e7   :  { %v401_v53 = vpop.f32.mrb[0].mxu1 }
 0x1e8   :  { %v403_v54 = vpop.f32.mrb[1].mxu1 }
 0x1e9   :  { %v448_v55 = vmax.f32 %v401_v53, %v403_v54  ;;  %v4535_v53 = vpack.c.bf16 %v563_v46, %v558_v45  ;;  %v1061_v46 = vld [vmem:[%s7480_s6 + $0xc8] sm:$0xff] }
 0x1eb   :  { %v407_v56 = vpop.f32.mrb[2].mxu1  ;;  %v465_v59 = vrot.slane %v448_v55, 1 }
 0x1ec   :  { %v409_v57 = vpop.f32.mrb[3].mxu1 }
 0x1ed   :  { %v449_v58 = vmax.f32 %v407_v56, %v409_v57  ;;  %v568_v56 = vld [vmem:[%s7478_s4 + $0x200] sm:$0xff]  ;;  %v573_v57 = vld [vmem:[%s7478_s4 + $0x228] sm:$0xff] }
 0x1ef   :  { %v466_v60 = vrot.slane %v449_v58, 1  ;;  %v413_v61 = vpop.f32.mrb[4].mxu1 }
 0x1f0   :  { %v415_v62 = vpop.f32.mrb[5].mxu1 }
 0x1f1   :  { %v467_v63 = vsel %vm464_vm2, %v465_v59, %v466_v60  ;;  %v450_v0 = vmax.f32 %v413_v61, %v415_v62  ;;  %v4539_v61 = vpack.c.bf16 %v573_v57, %v568_v56  ;;  %v1064_v56 = vld [vmem:[%s7480_s6 + $0xe0] sm:$0xff]  ;;  %v1066_v57 = vld [vmem:[%s7480_s6 + $0xf0] sm:$0xff] }
 0x1f2   :  { %v488_v3 = vmax.f32 %v448_v55, %v467_v63  ;;  %v578_v63 = vld [vmem:[%s7478_s4 + $0x250] sm:$0xff] }
 0x1f3   :  { %v468_v7 = vrot.slane %v450_v0, 1  ;;  %v419_v11 = vpop.f32.mrb[6].mxu1 }
 0x1f4   :  { %v5466_v12 = vmax.f32 %v488_v3, 0.0  ;;  %v421_v9 = vpop.f32.mrb[7].mxu1 }
 0x1f5   :  { %v451_v13 = vmax.f32 %v419_v11, %v421_v9  ;;  %v469_v14 = vsel %vm464_vm2, %v466_v60, %v468_v7  ;;  %v1037_v9 = vld [vmem:[%s7480_s6 + $0x8] sm:$0xff] }
 0x1f6   :  { %649 = vmatmul.mubr.f32.vlgmr.msra.gmra.mrb[16].mxu1 %v5466_v12  ;;  %760 = vmatmul.mubr.f32.vlgmr.msra.gmra.mrb[16].mxu0 %v5466_v12  ;;  %v489_v17 = vmax.f32 %v449_v58, %v469_v14  ;;  %v1038_v14 = vld [vmem:[%s7480_s6 + $0x10] sm:$0xff] }
 0x1f7   :  { %v470_v18 = vrot.slane %v451_v13, 1  ;;  %v425_v19 = vpop.f32.mrb[8].mxu1  ;;  %4518 = vmatpush3.bf16.msra.mxu1 %v4515_v51  ;;  %654 = vmatprep.mubr.f32.mxu1 %v4780_v52 }
 0x1f8   :  { %v427_v20 = vpop.f32.mrb[9].mxu1  ;;  %765 = vmatprep.mubr.f32.mxu0 %v4780_v52  ;;  %v5479_v21 = vmax.f32 %v489_v17, 0.0  ;;  %4520 = vmatprep.subr.bf16.mxu1 %v4519_v10  ;;  %v1043_v17 = vld [vmem:[%s7480_s6 + $0x38] sm:$0xff] }
 0x1f9   :  { %v452_v23 = vmax.f32 %v425_v19, %v427_v20  ;;  %v471_v24 = vsel %vm464_vm2, %v468_v7, %v470_v18  ;;  %v1040_v19 = vld [vmem:[%s7480_s6 + $0x20] sm:$0xff]  ;;  %v1042_v20 = vld [vmem:[%s7480_s6 + $0x30] sm:$0xff] }
 0x1fa   :  { %655 = vmatmul.mubr.f32.gmra.mrb[18].mxu1 %v5479_v21  ;;  %766 = vmatmul.mubr.f32.gmra.mrb[18].mxu0 %v5479_v21  ;;  %v490_v27 = vmax.f32 %v450_v0, %v471_v24  ;;  %v583_v0 = vld [vmem:[%s7478_s4 + $0x278] sm:$0xff] }
 0x1fb   :  { %v472_v28 = vrot.slane %v452_v23, 1  ;;  %v431_v29 = vpop.f32.mrb[10].mxu1  ;;  %4522 = vmatpush3.bf16.msra.mxu1 %v4519_v10  ;;  %660 = vmatprep.mubr.f32.mxu1 %v4780_v52  ;;  %v4543_v7 = vpack.c.bf16 %v583_v0, %v578_v63  ;;  %v1223_v63 = vld [vmem:[%s7481_s7 + $0x18] sm:$0xff] }
 0x1fc   :  { %v433_v30 = vpop.f32.mrb[11].mxu1  ;;  %771 = vmatprep.mubr.f32.mxu0 %v4780_v52  ;;  %v5492_v31 = vmax.f32 %v490_v27, 0.0  ;;  %4524 = vmatprep.subr.bf16.mxu1 %v4523_v22  ;;  %v4557_v27 = vpack.c.bf16 %v1046_v26, %v1044_v25  ;;  %v1227_v0 = vld [vmem:[%s7481_s7 + $0x38] sm:$0xff] }
 0x1fd   :  { %v453_v33 = vmax.f32 %v431_v29, %v433_v30  ;;  %v473_v34 = vsel %vm464_vm2, %v470_v18, %v472_v28  ;;  %v4551_v18 = vpack.c.bf16 %v1043_v17, %v1041_v16  ;;  %v1051_v29 = vld [vmem:[%s7480_s6 + $0x78] sm:$0xff]  ;;  %v1232_v17 = vld [vmem:[%s7481_s7 + $0x60] sm:$0xff] }
 0x1fe   :  { %661 = vmatmul.mubr.f32.gmra.mrb[20].mxu1 %v5492_v31  ;;  %772 = vmatmul.mubr.f32.gmra.mrb[20].mxu0 %v5492_v31  ;;  %v491_v37 = vmax.f32 %v451_v13, %v473_v34  ;;  %v1036_v13 = vld [vmem:[%s7480_s6] sm:$0xff]  ;;  %v1053_v34 = vld [vmem:[%s7480_s6 + $0x88] sm:$0xff] }
 0x1ff   :  { %v474_v38 = vrot.slane %v453_v33, 1  ;;  %v437_v39 = vpop.f32.mrb[12].mxu1  ;;  %4526 = vmatpush3.bf16.msra.mxu1 %v4523_v22  ;;  %666 = vmatprep.mubr.f32.mxu1 %v4780_v52  ;;  %v4549_v15 = vpack.c.bf16 %v1038_v14, %v1036_v13  ;;  %v1045_v22 = vld [vmem:[%s7480_s6 + $0x48] sm:$0xff]  ;;  %v4563_v36 = vpack.c.bf16 %v1055_v35, %v1053_v34  ;;  %v1236_v14 = vld [vmem:[%s7481_s7 + $0x80] sm:$0xff] }
 0x200   :  { %v439_v40 = vpop.f32.mrb[13].mxu1  ;;  %777 = vmatprep.mubr.f32.mxu0 %v4780_v52  ;;  %v499_v41 = vmax.f32 %v491_v37, 0.0  ;;  %4528 = vmatprep.subr.bf16.mxu1 %v4527_v32  ;;  %v1052_v37 = vld [vmem:[%s7480_s6 + $0x80] sm:$0xff]  ;;  %v1233_v13 = vld [vmem:[%s7481_s7 + $0x68] sm:$0xff] }
 0x201   :  { %v454_v43 = vmax.f32 %v437_v39, %v439_v40  ;;  %v475_v44 = vsel %vm464_vm2, %v472_v28, %v474_v38  ;;  %v1049_v28 = vld [vmem:[%s7480_s6 + $0x68] sm:$0xff]  ;;  %v4587_v16 = vpack.c.bf16 %v1236_v14, %v1233_v13 }
 0x202   :  { %667 = vmatmul.mubr.f32.gmra.mrb[22].mxu1 %v499_v41  ;;  %778 = vmatmul.mubr.f32.gmra.mrb[22].mxu0 %v499_v41  ;;  %v492_v47 = vmax.f32 %v452_v23, %v475_v44  ;;  %v1047_v23 = vld [vmem:[%s7480_s6 + $0x58] sm:$0xff]  ;;  %v4559_v30 = vpack.c.bf16 %v1051_v29, %v1049_v28  ;;  %v1057_v40 = vld [vmem:[%s7480_s6 + $0xa8] sm:$0xff]  ;;  %v1058_v44 = vld [vmem:[%s7480_s6 + $0xb0] sm:$0xff] }
 0x203   :  { %v476_v48 = vrot.slane %v454_v43, 1  ;;  %v443_v49 = vpop.f32.mrb[14].mxu1  ;;  %4530 = vmatpush3.bf16.msra.mxu1 %v4527_v32  ;;  %672 = vmatprep.mubr.f32.mxu1 %v4780_v52  ;;  %v4555_v24 = vpack.c.bf16 %v1047_v23, %v1045_v22  ;;  %v1050_v32 = vld [vmem:[%s7480_s6 + $0x70] sm:$0xff] }
 0x204   :  { %v445_v50 = vpop.f32.mrb[15].mxu1  ;;  %783 = vmatprep.mubr.f32.mxu0 %v4780_v52  ;;  %v500_v51 = vmax.f32 %v492_v47, 0.0  ;;  %4532 = vmatprep.subr.bf16.mxu1 %v4531_v42  ;;  %v1063_v47 = vld [vmem:[%s7480_s6 + $0xd8] sm:$0xff]  ;;  %v1238_v23 = vld [vmem:[%s7481_s7 + $0x90] sm:$0xff] }
 0x205   :  { %v455_v54 = vmax.f32 %v443_v49, %v445_v50  ;;  %v477_v55 = vsel %vm464_vm2, %v474_v38, %v476_v48  ;;  %v1054_v38 = vld [vmem:[%s7480_s6 + $0x90] sm:$0xff]  ;;  %v1060_v49 = vld [vmem:[%s7480_s6 + $0xc0] sm:$0xff] }
 0x206   :  { %673 = vmatmul.mubr.f32.gmra.mrb[24].mxu1 %v500_v51  ;;  %784 = vmatmul.mubr.f32.gmra.mrb[24].mxu0 %v500_v51  ;;  %v493_v58 = vmax.f32 %v453_v33, %v477_v55  ;;  %v4565_v39 = vpack.c.bf16 %v1054_v38, %v1052_v37  ;;  %v1062_v50 = vld [vmem:[%s7480_s6 + $0xd0] sm:$0xff] }
 0x207   :  { %v478_v59 = vrot.slane %v455_v54, 1  ;;  %4534 = vmatpush3.bf16.msra.mxu1 %v4531_v42  ;;  %678 = vmatprep.mubr.f32.mxu1 %v4780_v52 }
 0x208   :  { %789 = vmatprep.mubr.f32.mxu0 %v4780_v52  ;;  %v501_v60 = vmax.f32 %v493_v58, 0.0  ;;  %4536 = vmatprep.subr.bf16.mxu1 %v4535_v53  ;;  %v4577_v58 = vpack.c.bf16 %v1066_v57, %v1064_v56 }
 0x209   :  { %v479_v62 = vsel %vm464_vm2, %v476_v48, %v478_v59  ;;  %v495_v2 = vmax.f32 %v455_v54, %v478_v59  ;;  %v4571_v48 = vpack.c.bf16 %v1063_v47, %v1061_v46  ;;  %v1067_v54 = vld [vmem:[%s7480_s6 + $0xf8] sm:$0xff]  ;;  %v1221_v59 = vld [vmem:[%s7481_s7 + $0x8] sm:$0xff] }
 0x20a   :  { %679 = vmatmul.mubr.f32.gmra.mrb[26].mxu1 %v501_v60  ;;  %790 = vmatmul.mubr.f32.gmra.mrb[26].mxu0 %v501_v60  ;;  %v494_v1 = vmax.f32 %v454_v43, %v479_v62  ;;  %v1056_v43 = vld [vmem:[%s7480_s6 + $0xa0] sm:$0xff] }
 0x20b   :  { %4538 = vmatpush3.bf16.msra.mxu1 %v4535_v53  ;;  %684 = vmatprep.mubr.f32.mxu1 %v4780_v52  ;;  %v503_v11 = vmax.f32 %v495_v2, 0.0  ;;  %v4569_v45 = vpack.c.bf16 %v1058_v44, %v1056_v43  ;;  %v1065_v53 = vld [vmem:[%s7480_s6 + $0xe8] sm:$0xff] }
 0x20c   :  { %795 = vmatprep.mubr.f32.mxu0 %v4780_v52  ;;  %v502_v3 = vmax.f32 %v494_v1, 0.0  ;;  %4540 = vmatprep.subr.bf16.mxu1 %v4539_v61  ;;  %v4575_v55 = vpack.c.bf16 %v1067_v54, %v1065_v53  ;;  %v1230_v1 = vld [vmem:[%s7481_s7 + $0x50] sm:$0xff] }
 0x20e   :  { %685 = vmatmul.mubr.f32.gmra.mrb[28].mxu1 %v502_v3  ;;  %796 = vmatmul.mubr.f32.gmra.mrb[28].mxu0 %v502_v3 }
 0x20f   :  { %4542 = vmatpush3.bf16.msra.mxu1 %v4539_v61  ;;  %690 = vmatprep.mubr.f32.mxu1 %v4780_v52  ;;  %v1220_v61 = vld [vmem:[%s7481_s7] sm:$0xff] }
 0x210   :  { %801 = vmatprep.mubr.f32.mxu0 %v4780_v52  ;;  %4544 = vmatprep.subr.bf16.mxu1 %v4543_v7  ;;  %v4581_v2 = vpack.c.bf16 %v1223_v63, %v1220_v61 }
 0x212   :  { %691 = vmatmul.mubr.f32.gmra.mrb[30].mxu1 %v503_v11  ;;  %802 = vmatmul.mubr.f32.gmra.mrb[30].mxu0 %v503_v11 }
 0x213   :  { %4546 = vmatpush3.bf16.msra.mxu1 %v4543_v7  ;;  %4246 = vmatprep.mubr.f32.mxu1 %v5466_v12  ;;  %v1039_v12 = vld [vmem:[%s7480_s6 + $0x18] sm:$0xff]  ;;  %v1222_v7 = vld [vmem:[%s7481_s7 + $0x10] sm:$0xff] }
 0x214   :  { %1132 = vmatprep.mubr.f32.mxu0 %v4780_v52  ;;  %v4547_v10 = vpack.c.bf16 %v1039_v12, %v1037_v9  ;;  %v1226_v9 = vld [vmem:[%s7481_s7 + $0x30] sm:$0xff] }
 0x216   :  { %4247 = vmatmul.mubr.f32.vlgmr.msra.gmra.mrb[32].mxu1 %v5479_v21  ;;  %4548 = vmatprep.subr.bf16.mxu0 %v4547_v10  ;;  %v4553_v21 = vpack.c.bf16 %v1042_v20, %v1040_v19  ;;  %v1229_v10 = vld [vmem:[%s7481_s7 + $0x48] sm:$0xff]  ;;  %v1239_v19 = vld [vmem:[%s7481_s7 + $0x98] sm:$0xff]  ;;  %v1242_v20 = vld [vmem:[%s7481_s7 + $0xb0] sm:$0xff] }
 0x217   :  { %4249 = vmatprep.mubr.f32.mxu1 %v5492_v31  ;;  %4550 = vmatpush1.bf16.msra.mxu0 %v4549_v15  ;;  %v1048_v31 = vld [vmem:[%s7480_s6 + $0x60] sm:$0xff]  ;;  %v4585_v15 = vpack.c.bf16 %v1229_v10, %v1226_v9  ;;  %v4591_v22 = vpack.c.bf16 %v1242_v20, %v1239_v19 }
 0x218   :  { %4552 = vmatprep.subr.bf16.mxu0 %v4551_v18  ;;  %v4561_v33 = vpack.c.bf16 %v1050_v32, %v1048_v31  ;;  %v1235_v18 = vld [vmem:[%s7481_s7 + $0x78] sm:$0xff] }
 0x21a   :  { %4250 = vmatmul.mubr.f32.gmra.mrb[34].mxu1 %v499_v41  ;;  %v1059_v41 = vld [vmem:[%s7480_s6 + $0xb8] sm:$0xff] }
 0x21b   :  { %4252 = vmatprep.mubr.f32.mxu1 %v500_v51  ;;  %4554 = vmatpush1.bf16.msra.mxu0 %v4553_v21  ;;  %v4567_v42 = vpack.c.bf16 %v1059_v41, %v1057_v40  ;;  %v4573_v51 = vpack.c.bf16 %v1062_v50, %v1060_v49  ;;  %v4589_v21 = vpack.c.bf16 %v1235_v18, %v1232_v17 }
 0x21c   :  { %4556 = vmatprep.subr.bf16.mxu0 %v4555_v24  ;;  %v1241_v24 = vld [vmem:[%s7481_s7 + $0xa8] sm:$0xff] }
 0x21d   :  { %v4593_v25 = vpack.c.bf16 %v1241_v24, %v1238_v23 }
 0x21e   :  { %4253 = vmatmul.mubr.f32.gmra.mrb[36].mxu1 %v501_v60  ;;  %v1224_v60 = vld [vmem:[%s7481_s7 + $0x20] sm:$0xff] }
 0x21f   :  { %4255 = vmatprep.mubr.f32.mxu1 %v502_v3  ;;  %4558 = vmatpush1.bf16.msra.mxu0 %v4557_v27  ;;  %v4579_v62 = vpack.c.bf16 %v1224_v60, %v1221_v59  ;;  %v4583_v3 = vpack.c.bf16 %v1230_v1, %v1227_v0 }
 0x220   :  { %4560 = vmatprep.subr.bf16.mxu0 %v4559_v30 }
 0x221   :  { %4580 = vmatprep.subr.bf16.mxu1 %v4579_v62 }
 0x222   :  { %4256 = vmatmul.mubr.f32.gmra.mrb[38].mxu1 %v503_v11  ;;  %v1225_v11 = vld [vmem:[%s7481_s7 + $0x28] sm:$0xff] }
 0x223   :  { %1332 = vmatprep.mubr.f32.mxu1 %v4780_v52  ;;  %4562 = vmatpush1.bf16.msra.mxu0 %v4561_v33  ;;  %v5662_v12 = vpack.c.bf16 %v1225_v11, %v1222_v7 }
 0x224   :  { %4564 = vmatprep.subr.bf16.mxu0 %v4563_v36  ;;  %4582 = vmatpush1.bf16.msra.mxu1 %v4581_v2 }
 0x225   :  { %4584 = vmatprep.subr.bf16.mxu1 %v4583_v3 }
 0x227   :  { %4566 = vmatpush1.bf16.msra.mxu0 %v4565_v39 }
 0x228   :  { %4568 = vmatprep.subr.bf16.mxu0 %v4567_v42  ;;  %4586 = vmatpush1.bf16.msra.mxu1 %v4585_v15 }
 0x229   :  { %4588 = vmatprep.subr.bf16.mxu1 %v4587_v16 }
 0x22b   :  { %4570 = vmatpush1.bf16.msra.mxu0 %v4569_v45 }
 0x22c   :  { %4572 = vmatprep.subr.bf16.mxu0 %v4571_v48  ;;  %4590 = vmatpush1.bf16.msra.mxu1 %v4589_v21 }
 0x22d   :  { %4592 = vmatprep.subr.bf16.mxu1 %v4591_v22 }
 0x22f   :  { %4574 = vmatpush1.bf16.msra.mxu0 %v4573_v51 }
 0x230   :  { %4576 = vmatprep.subr.bf16.mxu0 %v4575_v55  ;;  %4594 = vmatpush1.bf16.msra.mxu1 %v4593_v25 }
 0x233   :  { %4578 = vmatpush1.bf16.msra.mxu0 %v4577_v58 }
 0x234   :  { %4612 = vmatprep.subr.bf16.mxu0 %v5662_v12 }
 0x2c9   :  { %v650_v26 = vpop.f32.mrb[16].mxu1  ;;  %v761_v27 = vpop.f32.mrb[16].mxu0 }
 0x2ca   :  { %v652_v28 = vpop.f32.mrb[17].mxu1  ;;  %v763_v29 = vpop.f32.mrb[17].mxu0  ;;  %v953_v32 = vrot.slane %v761_v27, 4 }
 0x2cb   :  { %v918_v36 = vrot.slane %v652_v28, 2  ;;  %v988_v37 = vrot.slane %v763_v29, 6 }
 0x2cd   :  { %v656_v30 = vpop.f32.mrb[18].mxu1  ;;  %v767_v31 = vpop.f32.mrb[18].mxu0 }
 0x2ce   :  { %v954_v33 = vrot.slane %v767_v31, 4  ;;  %v658_v34 = vpop.f32.mrb[19].mxu1  ;;  %v769_v35 = vpop.f32.mrb[19].mxu0 }
 0x2cf   :  { %v919_v38 = vrot.slane %v658_v34, 2  ;;  %v989_v39 = vrot.slane %v769_v35, 6 }
 0x2d0   :  { %v955_v40 = vsel %vm952_vm3, %v953_v32, %v954_v33 }
 0x2d1   :  { %v920_v41 = vsel %vm917_vm4, %v918_v36, %v919_v38  ;;  %v662_v42 = vpop.f32.mrb[20].mxu1  ;;  %v773_v43 = vpop.f32.mrb[20].mxu0  ;;  %v990_v44 = vsel %vm987_vm5, %v988_v37, %v989_v39 }
 0x2d2   :  { %v938_v45 = vadd.f32 %v920_v41, %v650_v26  ;;  %v956_v46 = vrot.slane %v773_v43, 4  ;;  %v664_v47 = vpop.f32.mrb[21].mxu1  ;;  %v775_v48 = vpop.f32.mrb[21].mxu0 }
 0x2d3   :  { %v921_v49 = vrot.slane %v664_v47, 2  ;;  %v991_v50 = vrot.slane %v775_v48, 6 }
 0x2d4   :  { %v957_v51 = vsel %vm952_vm3, %v954_v33, %v956_v46  ;;  %v973_v53 = vadd.f32 %v955_v40, %v938_v45 }
 0x2d5   :  { %v922_v54 = vsel %vm917_vm4, %v919_v38, %v921_v49  ;;  %v668_v55 = vpop.f32.mrb[22].mxu1  ;;  %v779_v56 = vpop.f32.mrb[22].mxu0  ;;  %v992_v57 = vsel %vm987_vm5, %v989_v39, %v991_v50 }
 0x2d6   :  { %v939_v58 = vadd.f32 %v922_v54, %v656_v30  ;;  %v958_v59 = vrot.slane %v779_v56, 4  ;;  %v670_v60 = vpop.f32.mrb[23].mxu1  ;;  %v781_v61 = vpop.f32.mrb[23].mxu0  ;;  %v1008_v62 = vadd.f32 %v990_v44, %v973_v53 }
 0x2d7   :  { %v923_v63 = vrot.slane %v670_v60, 2  ;;  %v993_v0 = vrot.slane %v781_v61, 6  ;;  %v4073_v60 = vld [vmem:[%s7482_s5] ss:$0 sm:$0xff] }
 0x2d8   :  { %v959_v1 = vsel %vm952_vm3, %v956_v46, %v958_v59  ;;  %v974_v2 = vadd.f32 %v957_v51, %v939_v58 }
 0x2d9   :  { %v924_v3 = vsel %vm917_vm4, %v921_v49, %v923_v63  ;;  %v674_v7 = vpop.f32.mrb[24].mxu1  ;;  %v785_v11 = vpop.f32.mrb[24].mxu0  ;;  %v994_v9 = vsel %vm987_vm5, %v991_v50, %v993_v0 }
 0x2da   :  { %v940_v10 = vadd.f32 %v924_v3, %v662_v42  ;;  %v960_v13 = vrot.slane %v785_v11, 4  ;;  %v676_v14 = vpop.f32.mrb[25].mxu1  ;;  %v787_v15 = vpop.f32.mrb[25].mxu0  ;;  %v1009_v16 = vadd.f32 %v992_v57, %v974_v2 }
 0x2db   :  { %v925_v17 = vrot.slane %v676_v14, 2  ;;  %v995_v18 = vrot.slane %v787_v15, 6  ;;  %v1234_v14 = vld [vmem:[%s7481_s7 + $0x70] sm:$0xff]  ;;  %v1237_v15 = vld [vmem:[%s7481_s7 + $0x88] sm:$0xff] }
 0x2dc   :  { %v961_v19 = vsel %vm952_vm3, %v958_v59, %v960_v13  ;;  %v975_v20 = vadd.f32 %v959_v1, %v940_v10 }
 0x2dd   :  { %v926_v21 = vsel %vm917_vm4, %v923_v63, %v925_v17  ;;  %v680_v22 = vpop.f32.mrb[26].mxu1  ;;  %v791_v23 = vpop.f32.mrb[26].mxu0  ;;  %v996_v24 = vsel %vm987_vm5, %v993_v0, %v995_v18  ;;  %v1228_v63 = vld [vmem:[%s7481_s7 + $0x40] sm:$0xff]  ;;  %v1231_v0 = vld [vmem:[%s7481_s7 + $0x58] sm:$0xff] }
 0x2de   :  { %v941_v25 = vadd.f32 %v926_v21, %v668_v55  ;;  %v962_v26 = vrot.slane %v791_v23, 4  ;;  %v682_v27 = vpop.f32.mrb[27].mxu1  ;;  %v793_v28 = vpop.f32.mrb[27].mxu0  ;;  %v1010_v29 = vadd.f32 %v994_v9, %v975_v20  ;;  %v4615_v11 = vpack.c.bf16 %v1231_v0, %v1228_v63  ;;  %v1261_v63 = vld [vmem:[%s7481_s7 + $0x148] sm:$0xff]  ;;  %v1262_v0 = vld [vmem:[%s7481_s7 + $0x150] sm:$0xff] }
 0x2df   :  { %v927_v30 = vrot.slane %v682_v27, 2  ;;  %v997_v31 = vrot.slane %v793_v28, 6 }
 0x2e0   :  { %v963_v32 = vsel %vm952_vm3, %v960_v13, %v962_v26  ;;  %v976_v33 = vadd.f32 %v961_v19, %v941_v25  ;;  %v4619_v19 = vpack.c.bf16 %v1237_v15, %v1234_v14 }
 0x2e1   :  { %v928_v34 = vsel %vm917_vm4, %v925_v17, %v927_v30  ;;  %v686_v35 = vpop.f32.mrb[28].mxu1  ;;  %v797_v36 = vpop.f32.mrb[28].mxu0  ;;  %v998_v37 = vsel %vm987_vm5, %v995_v18, %v997_v31 }
 0x2e2   :  { %v942_v38 = vadd.f32 %v928_v34, %v674_v7  ;;  %v964_v39 = vrot.slane %v797_v36, 4  ;;  %v688_v40 = vpop.f32.mrb[29].mxu1  ;;  %v799_v41 = vpop.f32.mrb[29].mxu0  ;;  %v1011_v42 = vadd.f32 %v996_v24, %v976_v33  ;;  %v1243_v34 = vld [vmem:[%s7481_s7 + $0xb8] sm:$0xff] }
 0x2e3   :  { %v929_v43 = vrot.slane %v688_v40, 2  ;;  %v999_v44 = vrot.slane %v799_v41, 6  ;;  %v1247_v36 = vld [vmem:[%s7481_s7 + $0xd8] sm:$0xff]  ;;  %v1254_v40 = vld [vmem:[%s7481_s7 + $0x110] sm:$0xff] }
 0x2e4   :  { %v965_v45 = vsel %vm952_vm3, %v962_v26, %v964_v39  ;;  %v977_v46 = vadd.f32 %v963_v32, %v942_v38  ;;  %v1240_v32 = vld [vmem:[%s7481_s7 + $0xa0] sm:$0xff]  ;;  %v1246_v41 = vld [vmem:[%s7481_s7 + $0xd0] sm:$0xff] }
 0x2e5   :  { %v930_v47 = vsel %vm917_vm4, %v927_v30, %v929_v43  ;;  %v944_v48 = vadd.f32 %v929_v43, %v686_v35  ;;  %v692_v49 = vpop.f32.mrb[30].mxu1  ;;  %v803_v50 = vpop.f32.mrb[30].mxu0  ;;  %v1000_v51 = vsel %vm987_vm5, %v997_v31, %v999_v44  ;;  %v1245_v30 = vld [vmem:[%s7481_s7 + $0xc8] sm:$0xff]  ;;  %v1248_v31 = vld [vmem:[%s7481_s7 + $0xe0] sm:$0xff] }
 0x2e6   :  { %v943_v53 = vadd.f32 %v930_v47, %v680_v22  ;;  %v693_v54 = vpop.f32.mrb[31].mxu1  ;;  %v804_v55 = vpop.f32.mrb[31].mxu0  ;;  %v1012_v56 = vadd.f32 %v998_v37, %v977_v46  ;;  %v4595_v33 = vpack.c.bf16 %v1248_v31, %v1245_v30  ;;  %v1244_v35 = vld [vmem:[%s7481_s7 + $0xc0] sm:$0xff]  ;;  %v4623_v37 = vpack.c.bf16 %v1243_v34, %v1240_v32  ;;  %v1249_v43 = vld [vmem:[%s7481_s7 + $0xe8] sm:$0xff] }
 0x2e7   :  { %v979_v57 = vadd.f32 %v964_v39, %v944_v48  ;;  %v4597_v38 = vpack.c.bf16 %v1247_v36, %v1244_v35  ;;  %v1251_v39 = vld [vmem:[%s7481_s7 + $0xf8] sm:$0xff]  ;;  %v4627_v46 = vpack.c.bf16 %v1249_v43, %v1246_v41  ;;  %v1257_v48 = vld [vmem:[%s7481_s7 + $0x128] sm:$0xff]  ;;  %v1260_v49 = vld [vmem:[%s7481_s7 + $0x140] sm:$0xff] }
 0x2e8   :  { %v978_v58 = vadd.f32 %v965_v45, %v943_v53  ;;  %4596 = vmatprep.subr.bf16.mxu1 %v4595_v33  ;;  %v1253_v45 = vld [vmem:[%s7481_s7 + $0x108] sm:$0xff]  ;;  %v1252_v50 = vld [vmem:[%s7481_s7 + $0x100] sm:$0xff]  ;;  %v1255_v53 = vld [vmem:[%s7481_s7 + $0x118] sm:$0xff] }
 0x2e9   :  { %v4248_v59 = vpop.f32.mrb[32].mxu1  ;;  %v1014_v61 = vadd.f32 %v999_v44, %v979_v57  ;;  %4598 = vmatpush1.bf16.msra.mxu1 %v4597_v38  ;;  %v1250_v44 = vld [vmem:[%s7481_s7 + $0xf0] sm:$0xff]  ;;  %v1256_v54 = vld [vmem:[%s7481_s7 + $0x120] sm:$0xff]  ;;  %v1259_v55 = vld [vmem:[%s7481_s7 + $0x138] sm:$0xff] }
 0x2ea   :  { %v1015_v1 = vadd.f32 %v4248_v59, %v1008_v62  ;;  %v872_v2 = vpop.f32.mrb[33].mxu1  ;;  %v1013_v3 = vadd.f32 %v1000_v51, %v978_v58  ;;  %v4601_v47 = vpack.c.bf16 %v1253_v45, %v1250_v44  ;;  %v4603_v51 = vpack.c.bf16 %v1260_v49, %v1257_v48  ;;  %v1263_v58 = vld [vmem:[%s7481_s7 + $0x158] sm:$0xff]  ;;  %v1266_v59 = vld [vmem:[%s7481_s7 + $0x170] sm:$0xff] }
 0x2eb   :  { %v4605_v57 = vpack.c.bf16 %v1259_v55, %v1256_v54 }
 0x2ec   :  { %v1029_v7 = vadd.f32 %v4073_v60, %v1015_v1  ;;  %v1265_v1 = vld [vmem:[%s7481_s7 + $0x168] sm:$0xff] }
 0x2ed   :  { %v4251_v9 = vpop.f32.mrb[34].mxu1 }
 0x2ee   :  { %v1017_v10 = vadd.f32 %v4251_v9, %v1010_v29  ;;  %v881_v13 = vpop.f32.mrb[35].mxu1  ;;  %1133 = vmatmul.mubr.f32.vlgmr.msra.gmra.mrb[32].mxu0 %v1029_v7  ;;  %v1264_v7 = vld [vmem:[%s7481_s7 + $0x160] sm:$0xff] }
 0x2ef   :  { %v1016_v17 = vadd.f32 %v1009_v16, %v881_v13  ;;  %1138 = vmatprep.mubr.f32.mxu0 %v4780_v52  ;;  %4614 = vmatpush3.bf16.msra.mxu0 %v5662_v12 }
 0x2f0   :  { %4616 = vmatprep.subr.bf16.mxu0 %v4615_v11  ;;  %v1031_v23 = vadd.f32 %v4073_v60, %v1017_v10 }
 0x2f1   :  { %v1030_v62 = vadd.f32 %v4073_v60, %v1016_v17  ;;  %v4254_v18 = vpop.f32.mrb[36].mxu1 }
 0x2f2   :  { %v1019_v20 = vadd.f32 %v4254_v18, %v1012_v56  ;;  %v891_v21 = vpop.f32.mrb[37].mxu1  ;;  %v4631_v56 = vpack.c.bf16 %v1255_v53, %v1252_v50 }
 0x2f3   :  { %v1018_v22 = vadd.f32 %v1011_v42, %v891_v21  ;;  %1139 = vmatmul.mubr.f32.gmra.mrb[34].mxu0 %v1030_v62  ;;  %v4599_v42 = vpack.c.bf16 %v1254_v40, %v1251_v39 }
 0x2f4   :  { %1144 = vmatprep.mubr.f32.mxu0 %v4780_v52  ;;  %4618 = vmatpush3.bf16.msra.mxu0 %v4615_v11  ;;  %v1033_v27 = vadd.f32 %v4073_v60, %v1019_v20  ;;  %v1267_v11 = vld [vmem:[%s7481_s7 + $0x178] sm:$0xff] }
 0x2f5   :  { %v4257_v24 = vpop.f32.mrb[38].mxu1  ;;  %4620 = vmatprep.subr.bf16.mxu0 %v4619_v19  ;;  %v1032_v12 = vadd.f32 %v4073_v60, %v1018_v22  ;;  %4600 = vmatprep.subr.bf16.mxu1 %v4599_v42  ;;  %v4639_v9 = vpack.c.bf16 %v1267_v11, %v1264_v7 }
 0x2f6   :  { %v1021_v25 = vadd.f32 %v4257_v24, %v1014_v61  ;;  %v901_v16 = vpop.f32.mrb[39].mxu1  ;;  %4602 = vmatpush1.bf16.msra.mxu1 %v4601_v47  ;;  %v4607_v61 = vpack.c.bf16 %v1266_v59, %v1263_v58  ;;  %v1596_v58 = vld [vmem:[%s7483_s9] sm:$0xff]  ;;  %v1597_v59 = vld [vmem:[%s7483_s9 + $0x8] sm:$0xff] }
 0x2f7   :  { %v1020_v26 = vadd.f32 %v1013_v3, %v901_v16  ;;  %1145 = vmatmul.mubr.f32.gmra.mrb[36].mxu0 %v1031_v23  ;;  %4604 = vmatprep.subr.bf16.mxu1 %v4603_v51  ;;  %v4609_v3 = vpack.c.bf16 %v1265_v1, %v1262_v0 }
 0x2f8   :  { %1150 = vmatprep.mubr.f32.mxu0 %v4780_v52  ;;  %4622 = vmatpush3.bf16.msra.mxu0 %v4619_v19  ;;  %v1035_v29 = vadd.f32 %v4073_v60, %v1021_v25 }
 0x2f9   :  { %v1034_v28 = vadd.f32 %v4073_v60, %v1020_v26  ;;  %4624 = vmatprep.subr.bf16.mxu0 %v4623_v37  ;;  %v1258_v60 = vld [vmem:[%s7481_s7 + $0x130] sm:$0xff] }
 0x2fa   :  { %4606 = vmatpush1.bf16.msra.mxu1 %v4605_v57  ;;  %v4635_v2 = vpack.c.bf16 %v1261_v63, %v1258_v60  ;;  %v4781_v57 = vmov 0.0|0.0   ;;  %v1598_v60 = vld [vmem:[%s7483_s9 + $0x10] sm:$0xff]  ;;  %v1599_v63 = vld [vmem:[%s7483_s9 + $0x18] sm:$0xff] }
 0x2fb   :  { %1151 = vmatmul.mubr.f32.gmra.mrb[38].mxu0 %v1032_v12  ;;  %4608 = vmatprep.subr.bf16.mxu1 %v4607_v61  ;;  %v4650_v61 = vpack.c.bf16 %v1597_v59, %v1596_v58  ;;  %v4653_v0 = vpack.c.bf16 %v1599_v63, %v1598_v60  ;;  %v4783_v63 = vmov 2  }
 0x2fc   :  { %1156 = vmatprep.mubr.f32.mxu0 %v4780_v52  ;;  %4626 = vmatpush3.bf16.msra.mxu0 %v4623_v37 }
 0x2fd   :  { %4628 = vmatprep.subr.bf16.mxu0 %v4627_v46  ;;  %4776 = vset.pattern.permute.xlu1 %v4783_v63 }
 0x2fe   :  { %4610 = vmatpush1.bf16.msra.mxu1 %v4609_v3 }
 0x2ff   :  { %1157 = vmatmul.mubr.f32.gmra.mrb[40].mxu0 %v1033_v27  ;;  %4649 = vmatprep.subr.bf16.mxu1 %v4781_v57 }
 0x300   :  { %1162 = vmatprep.mubr.f32.mxu0 %v4780_v52  ;;  %4630 = vmatpush3.bf16.msra.mxu0 %v4627_v46 }
 0x301   :  { %4632 = vmatprep.subr.bf16.mxu0 %v4631_v56 }
 0x303   :  { %1163 = vmatmul.mubr.f32.gmra.mrb[42].mxu0 %v1034_v28 }
 0x304   :  { %1168 = vmatprep.mubr.f32.mxu0 %v4780_v52  ;;  %4634 = vmatpush3.bf16.msra.mxu0 %v4631_v56 }
 0x305   :  { %4636 = vmatprep.subr.bf16.mxu0 %v4635_v2 }
 0x307   :  { %1169 = vmatmul.mubr.f32.gmra.mrb[44].mxu0 %v1035_v29 }
 0x308   :  { %4638 = vmatpush3.bf16.msra.mxu0 %v4635_v2 }
 0x309   :  { %4640 = vmatprep.subr.bf16.mxu0 %v4639_v9 }
 0x30c   :  { %4642 = vmatpush3.bf16.msra.mxu0 %v4639_v9 }
 0x30d   :  { %4643 = vmatprep.subr.bf16.mxu0 %v4781_v57 }
 0x3c1   :  { %v1134_v10 = vpop.f32.mrb[32].mxu0 }
 0x3c2   :  { %v1136_v13 = vpop.f32.mrb[33].mxu0 }
 0x3c3   :  { %v1175_v14 = vmax.f32 %v1134_v10, %v1136_v13 }
 0x3c5   :  { %v1189_v18 = vrot.slane %v1175_v14, 2 }
 0x3c6   :  { %v1140_v15 = vpop.f32.mrb[34].mxu0 }
 0x3c7   :  { %v1142_v17 = vpop.f32.mrb[35].mxu0 }
 0x3c8   :  { %v1176_v62 = vmax.f32 %v1140_v15, %v1142_v17 }
 0x3ca   :  { %v1190_v19 = vrot.slane %v1176_v62, 2  ;;  %v1146_v20 = vpop.f32.mrb[36].mxu0 }
 0x3cb   :  { %v1148_v21 = vpop.f32.mrb[37].mxu0 }
 0x3cc   :  { %v1191_v22 = vsel %vm917_vm4, %v1189_v18, %v1190_v19  ;;  %v1177_v23 = vmax.f32 %v1146_v20, %v1148_v21 }
 0x3cd   :  { %v1208_v24 = vmax.f32 %v1175_v14, %v1191_v22 }
 0x3ce   :  { %v1192_v25 = vrot.slane %v1177_v23, 2  ;;  %v1152_v16 = vpop.f32.mrb[38].mxu0 }
 0x3cf   :  { %v1214_v26 = vmax.f32 %v1208_v24, 0.0  ;;  %v1154_v12 = vpop.f32.mrb[39].mxu0 }
 0x3d0   :  { %v1178_v27 = vmax.f32 %v1152_v16, %v1154_v12  ;;  %v1193_v28 = vsel %vm917_vm4, %v1190_v19, %v1192_v25 }
 0x3d1   :  { %1333 = vmatmul.mubr.f32.vlgmr.msra.gmra.mrb[40].mxu1 %v1214_v26  ;;  %4290 = vmatprep.mubr.f32.mxu0 %v1214_v26  ;;  %v1209_v29 = vmax.f32 %v1176_v62, %v1193_v28 }
 0x3d2   :  { %v1194_v30 = vrot.slane %v1178_v27, 2  ;;  %v1158_v31 = vpop.f32.mrb[40].mxu0  ;;  %1338 = vmatprep.mubr.f32.mxu1 %v4780_v52  ;;  %4651 = vmatpush3.bf16.msra.mxu1 %v4650_v61 }
 0x3d3   :  { %v1160_v32 = vpop.f32.mrb[41].mxu0  ;;  %v1215_v33 = vmax.f32 %v1209_v29, 0.0  ;;  %4652 = vmatprep.subr.bf16.mxu1 %v4781_v57 }
 0x3d4   :  { %v1179_v34 = vmax.f32 %v1158_v31, %v1160_v32  ;;  %v1195_v35 = vsel %vm917_vm4, %v1192_v25, %v1194_v30 }
 0x3d5   :  { %1339 = vmatmul.mubr.f32.gmra.mrb[42].mxu1 %v1215_v33  ;;  %4291 = vmatmul.mubr.f32.vlgmr.msra.gmra.mrb[46].mxu0 %v1215_v33  ;;  %v1210_v36 = vmax.f32 %v1177_v23, %v1195_v35  ;;  %v4074_v23 = vld [vmem:[%s7484_s8] ss:$0 sm:$0xff] }
 0x3d6   :  { %v1196_v37 = vrot.slane %v1179_v34, 2  ;;  %v1164_v38 = vpop.f32.mrb[42].mxu0  ;;  %1344 = vmatprep.mubr.f32.mxu1 %v4780_v52  ;;  %4654 = vmatpush3.bf16.msra.mxu1 %v4653_v0  ;;  %v4784_v0 = vmov 0  }
 0x3d7   :  { %v1166_v39 = vpop.f32.mrb[43].mxu0  ;;  %v1216_v40 = vmax.f32 %v1210_v36, 0.0  ;;  %4774 = vset.pattern.permute.xlu0 %v4784_v0 }
 0x3d8   :  { %v1180_v41 = vmax.f32 %v1164_v38, %v1166_v39  ;;  %v1197_v42 = vsel %vm917_vm4, %v1194_v30, %v1196_v37 }
 0x3d9   :  { %1345 = vmatmul.mubr.f32.gmra.mrb[44].mxu1 %v1216_v40  ;;  %4293 = vmatprep.mubr.f32.mxu0 %v1216_v40  ;;  %v1211_v43 = vmax.f32 %v1178_v27, %v1197_v42 }
 0x3da   :  { %v1198_v44 = vrot.slane %v1180_v41, 2  ;;  %v1170_v45 = vpop.f32.mrb[44].mxu0  ;;  %1350 = vmatprep.mubr.f32.mxu1 %v4780_v52 }
 0x3db   :  { %v1172_v46 = vpop.f32.mrb[45].mxu0  ;;  %v1217_v47 = vmax.f32 %v1211_v43, 0.0 }
 0x3dc   :  { %v1181_v48 = vmax.f32 %v1170_v45, %v1172_v46  ;;  %v1199_v49 = vsel %vm917_vm4, %v1196_v37, %v1198_v44 }
 0x3dd   :  { %1351 = vmatmul.mubr.f32.gmra.mrb[46].mxu1 %v1217_v47  ;;  %4294 = vmatmul.mubr.f32.gmra.mrb[48].mxu0 %v1217_v47  ;;  %v1212_v50 = vmax.f32 %v1179_v34, %v1199_v49 }
 0x3de   :  { %v1200_v51 = vrot.slane %v1181_v48, 2  ;;  %1356 = vmatprep.mubr.f32.mxu1 %v4780_v52 }
 0x3df   :  { %v1218_v53 = vmax.f32 %v1212_v50, 0.0  ;;  %v1512_v50 = vand.u32 127, %v7489_v4 }
 0x3e0   :  { %v1201_v54 = vsel %vm917_vm4, %v1198_v44, %v1200_v51  ;;  %v1515_v51 = vmul.u32 32, %v5278_v5 }
 0x3e1   :  { %1357 = vmatmul.mubr.f32.gmra.mrb[48].mxu1 %v1218_v53  ;;  %4296 = vmatprep.mubr.f32.mxu0 %v1218_v53  ;;  %v1213_v55 = vmax.f32 %v1180_v41, %v1201_v54 }
 0x3e2   :  { %1362 = vmatprep.mubr.f32.mxu1 %v4780_v52  ;;  %vm1516_vm7 = vcmp.eq.s32.totalorder %v1512_v50, %v1515_v51 }
 0x3e3   :  { %v1219_v56 = vmax.f32 %v1213_v55, 0.0  ;;  %v4075_v60 = vsel %vm1516_vm7, 1.0, %v4780_v52 }
 0x3e5   :  { %1363 = vmatmul.mubr.f32.gmra.mrb[50].mxu1 %v1219_v56  ;;  %4297 = vmatmul.mubr.f32.gmra.mrb[50].mxu0 %v1219_v56 }
 0x3e6   :  { %4309 = vmatprep.mubr.msk.f32.mxu0 %vm4782_vm6, %v4780_v52  ;;  %4320 = vmatprep.mubr.msk.f32.mxu1 %vm4782_vm6, %v4780_v52 }
 0x4a4   :  { %v1334_v1 = vpop.f32.mrb[40].mxu1 }
 0x4a5   :  { %v1336_v2 = vpop.f32.mrb[41].mxu1 }
 0x4a6   :  { %v1468_v10 = vrot.slane %v1336_v2, 4 }
 0x4a8   :  { %v1340_v3 = vpop.f32.mrb[42].mxu1  ;;  %v4292_v7 = vpop.f32.mrb[46].mxu0 }
 0x4a9   :  { %v1342_v11 = vpop.f32.mrb[43].mxu1  ;;  %v1434_v9 = vpop.f32.mrb[47].mxu0 }
 0x4aa   :  { %v1469_v13 = vrot.slane %v1342_v11, 4  ;;  %v4785_v11 = vmov 3   ;;  %v4786_v9 = vmov 1  }
 0x4ac   :  { %v1470_v14 = vsel %vm952_vm3, %v1468_v10, %v1469_v13  ;;  %v1346_v15 = vpop.f32.mrb[44].mxu1  ;;  %v4787_v10 = vmov 4  }
 0x4ad   :  { %v1484_v17 = vadd.f32 %v1470_v14, %v1334_v1  ;;  %v1348_v62 = vpop.f32.mrb[45].mxu1  ;;  %v4078_v1 = vld [vmem:[%s7485_s10] ss:$0 sm:$0xff] }
 0x4ae   :  { %v1471_v18 = vrot.slane %v1348_v62, 4  ;;  %v1682_v62 = vld [vmem:[%s7487_s12] sm:$0xff] }
 0x4af   :  { %v1489_v19 = vadd.f32 %v4292_v7, %v1484_v17  ;;  %v1681_v17 = vld [vmem:[%s7486_s11] sm:$0xff] }
 0x4b0   :  { %v1352_v20 = vpop.f32.mrb[46].mxu1  ;;  %v4295_v21 = vpop.f32.mrb[48].mxu0  ;;  %v1472_v22 = vsel %vm952_vm3, %v1469_v13, %v1471_v18  ;;  %v4788_v13 = vmov 5  }
 0x4b1   :  { %v1354_v24 = vpop.f32.mrb[47].mxu1  ;;  %v1443_v25 = vpop.f32.mrb[49].mxu0  ;;  %v1485_v16 = vadd.f32 %v1472_v22, %v1340_v3  ;;  %v1501_v27 = vadd.f32 %v4074_v23, %v1489_v19  ;;  %v1698_v19 = vsub.s32 3, %v5278_v5  ;;  %v1735_v22 = vrot.slane %v1682_v62, %v5287_v8 }
 0x4b2   :  { %v1473_v26 = vrot.slane %v1354_v24, 4  ;;  %v1706_v24 = vsub.s32 5, %v5278_v5 }
 0x4b3   :  { %v1490_v12 = vadd.f32 %v1485_v16, %v1443_v25  ;;  %v1506_v35 = vmax.f32 %v1501_v27, 0.0  ;;  %v1710_v25 = vsub.s32 6, %v5278_v5  ;;  %v1687_v27 = vrot.slane %v1681_v17, %v5287_v8 }
 0x4b4   :  { %v1474_v28 = vsel %vm952_vm3, %v1471_v18, %v1473_v26  ;;  %v1358_v29 = vpop.f32.mrb[48].mxu1  ;;  %v1694_v18 = vsub.s32 2, %v5278_v5 }
 0x4b5   :  { %v1486_v30 = vadd.f32 %v1474_v28, %v1346_v15  ;;  %v1502_v31 = vadd.f32 %v4074_v23, %v1490_v12  ;;  %v1360_v32 = vpop.f32.mrb[49].mxu1 }
 0x4b6   :  { %v1475_v33 = vrot.slane %v1360_v32, 4  ;;  %v1743_v12 = vrot.slane %v1682_v62, %v1694_v18  ;;  %v1695_v28 = vrot.slane %v1681_v17, %v1694_v18 }
 0x4b7   :  { %v1491_v34 = vadd.f32 %v4295_v21, %v1486_v30  ;;  %v1507_v36 = vmax.f32 %v1502_v31, 0.0  ;;  %v1691_v21 = vrot.slane %v1681_v17, %v5281_v6 }
 0x4b8   :  { %v1364_v37 = vpop.f32.mrb[50].mxu1  ;;  %v4298_v38 = vpop.f32.mrb[50].mxu0  ;;  %v1476_v39 = vsel %vm952_vm3, %v1473_v26, %v1475_v33 }
 0x4b9   :  { %v4644_v40 = vpack.c.bf16 %v1507_v36, %v1506_v35  ;;  %v1365_v41 = vpop.f32.mrb[51].mxu1  ;;  %v1453_v42 = vpop.f32.mrb[51].mxu0  ;;  %v1487_v43 = vadd.f32 %v1476_v39, %v1352_v20  ;;  %v1503_v46 = vadd.f32 %v4074_v23, %v1491_v34  ;;  %v1702_v20 = vsub.s32 4, %v5278_v5 }
 0x4ba   :  { %v1477_v44 = vrot.slane %v1365_v41, 4  ;;  %v1707_v36 = vrot.slane %v1681_v17, %v1706_v24  ;;  %v1711_v37 = vrot.slane %v1681_v17, %v1710_v25  ;;  %v1759_v41 = vrot.slane %v1682_v62, %v1710_v25 }
 0x4bb   :  { %v1492_v45 = vadd.f32 %v1487_v43, %v1453_v42  ;;  %4645 = vmatpush3.bf16.msra.mxu0 %v4644_v40  ;;  %v1508_v54 = vmax.f32 %v1503_v46, 0.0  ;;  %v1703_v30 = vrot.slane %v1681_v17, %v1702_v20  ;;  %v1751_v31 = vrot.slane %v1682_v62, %v1702_v20 }
 0x4bc   :  { %v1478_v47 = vsel %vm952_vm3, %v1475_v33, %v1477_v44  ;;  %4646 = vmatprep.subr.bf16.mxu0 %v4781_v57  ;;  %v1747_v33 = vrot.slane %v1682_v62, %v1698_v19  ;;  %v1755_v40 = vrot.slane %v1682_v62, %v1706_v24 }
 0x4bd   :  { %v1488_v48 = vadd.f32 %v1478_v47, %v1358_v29  ;;  %v1504_v49 = vadd.f32 %v4074_v23, %v1492_v45  ;;  %v1699_v29 = vrot.slane %v1681_v17, %v1698_v19 }
 0x4bf   :  { %v1493_v53 = vadd.f32 %v4298_v38, %v1488_v48  ;;  %v1509_v55 = vmax.f32 %v1504_v49, 0.0 }
 0x4c1   :  { %v1505_v56 = vadd.f32 %v4074_v23, %v1493_v53  ;;  %v4647_v58 = vpack.c.bf16 %v1509_v55, %v1508_v54  ;;  %v1739_v23 = vrot.slane %v1682_v62, %v5281_v6 }
 0x4c3   :  { %4648 = vmatpush3.bf16.msra.mxu0 %v4647_v58  ;;  %v1510_v59 = vmax.f32 %v1505_v56, 0.0 }
 0x4c4   :  { %4307 = vmatprep.subr.mxu0 %v4780_v52 }
 0x4c7   :  { %4308 = vmatpush3.msk.msra.mxu0 %vm464_vm2, %v1510_v59 }
 0x4c8   :  { %4310 = vmatmul.mubr.msk.f32.vlgmr.msra.gmra.mrb[52].mxu0 %vm1519_vm8, %v4075_v60 }
 0x4c9   :  { %2557 = vmatprep.mubr.f32.mxu0 %v4780_v52 }
 0x59b   :  { %v1592_v57 = vpop.f32.mrb[52].mxu0 }
 0x59c   :  { %4321 = vmatmul.mubr.msk.f32.vlgmr.msra.gmra.mrb[52].mxu1 %vm1607_vm9, %v1592_v57  ;;  %v4311_v61 = vpop.f32.mrb[53].mxu0 }
 0x59d   :  { %2646 = vmatprep.mubr.f32.mxu1 %v4780_v52 }
 0x66f   :  { %v1677_v2 = vpop.f32.mrb[52].mxu1 }
 0x670   :  { %v1678_v3 = vadd.f32 %v4078_v1, %v1677_v2  ;;  %v4322_v7 = vpop.f32.mrb[53].mxu1 }
 0x672   :  { %1786 = vperm.xlu1 %4776, %v1678_v3   ;;  %1721 = vperm.xlu0 %4774, %v1678_v3  }
 0x676   :  { %4777 = vset.pattern.permute.xlu1 %v4785_v11  ;;  %4775 = vset.pattern.permute.xlu0 %v4786_v9 }
 0x677   :  { %1797 = vperm.xlu1 %4777, %v1678_v3   ;;  %1768 = vperm.xlu0 %4775, %v1678_v3  }
 0x67b   :  { %4778 = vset.pattern.permute.xlu1 %v4787_v10  ;;  %4779 = vset.pattern.permute.xlu0 %v4788_v13 }
 0x67c   :  { %1808 = vperm.xlu1 %4778, %v1678_v3   ;;  %1826 = vperm.xlu0 %4779, %v1678_v3  }
 0x6f1   :  { %v5857_v14 = vpop.permute.xlu1 %1786  ;;  %v1722_v15 = vpop.permute.xlu0 %1721 }
 0x6f2   :  { %v1725_v32 = vmul.f32 %v1722_v15, %v1691_v21  ;;  %v1724_v39 = vmul.f32 %v1722_v15, %v1687_v27  ;;  %v1726_v44 = vmul.f32 %v1722_v15, %v1695_v28  ;;  %v1727_v45 = vmul.f32 %v1722_v15, %v1699_v29 }
 0x6f3   :  { %v1728_v46 = vmul.f32 %v1722_v15, %v1703_v30  ;;  %v1729_v53 = vmul.f32 %v1722_v15, %v1707_v36  ;;  %v1730_v54 = vmul.f32 %v1722_v15, %v1711_v37 }
 0x6f6   :  { %v1798_v16 = vpop.permute.xlu1 %1797  ;;  %v1769_v26 = vpop.permute.xlu0 %1768 }
 0x6f7   :  { %v1771_v34 = vmul.f32 %v1769_v26, %v1735_v22  ;;  %v1772_v35 = vmul.f32 %v1769_v26, %v1739_v23  ;;  %v1773_v38 = vmul.f32 %v1769_v26, %v1743_v12  ;;  %v1775_v47 = vmul.f32 %v1769_v26, %v1751_v31 }
 0x6f8   :  { %v1774_v48 = vmul.f32 %v1769_v26, %v1747_v33  ;;  %v1800_v55 = vmul.f32 %v1798_v16, %v1687_v27  ;;  %v1801_v58 = vmul.f32 %v1798_v16, %v1691_v21  ;;  %v1802_v59 = vmul.f32 %v1798_v16, %v1695_v28 }
 0x6f9   :  { %v1779_v43 = vadd.f32 %v1772_v35, %v1725_v32  ;;  %v1778_v49 = vadd.f32 %v1771_v34, %v1724_v39  ;;  %v1780_v56 = vadd.f32 %v1773_v38, %v1726_v44  ;;  %v1803_v60 = vmul.f32 %v1798_v16, %v1699_v29 }
 0x6fa   :  { %v1776_v61 = vmul.f32 %v1769_v26, %v1755_v40  ;;  %v1777_v63 = vmul.f32 %v1769_v26, %v1759_v41  ;;  %v1782_v0 = vadd.f32 %v1775_v47, %v1728_v46  ;;  %v1781_v2 = vadd.f32 %v1774_v48, %v1727_v45 }
 0x6fb   :  { %v1809_v42 = vpop.permute.xlu1 %1808  ;;  %v1790_v50 = vadd.f32 %v5857_v14, %v1779_v43  ;;  %v1789_v3 = vadd.f32 %v5857_v14, %v1778_v49  ;;  %v1791_v9 = vadd.f32 %v5857_v14, %v1780_v56  ;;  %v1804_v17 = vmul.f32 %v1798_v16, %v1703_v30 }
 0x6fc   :  { %v1811_v51 = vmul.f32 %v1809_v42, %v1735_v22  ;;  %v1812_v57 = vmul.f32 %v1809_v42, %v1739_v23  ;;  %v1813_v7 = vmul.f32 %v1809_v42, %v1743_v12  ;;  %v1814_v10 = vmul.f32 %v1809_v42, %v1747_v33 }
 0x6fd   :  { %v1837_v1 = vadd.f32 1.0, %v1790_v50  ;;  %v1815_v13 = vmul.f32 %v1809_v42, %v1751_v31  ;;  %v1816_v62 = vmul.f32 %v1809_v42, %v1755_v40  ;;  %v1817_v18 = vmul.f32 %v1809_v42, %v1759_v41 }
 0x6fe   :  { %v5876_v11 = vadd.f32 %v1811_v51, %v1800_v55  ;;  %v5879_v19 = vadd.f32 %v1812_v57, %v1801_v58  ;;  %v1805_v20 = vmul.f32 %v1798_v16, %v1707_v36  ;;  %v1783_v21 = vadd.f32 %v1776_v61, %v1729_v53 }
 0x6ff   :  { %v1844_v15 = vmul.f32 14.0, %v1837_v1  ;;  %v1784_v22 = vadd.f32 %v1777_v63, %v1730_v54  ;;  %v1793_v23 = vadd.f32 %v5857_v14, %v1782_v0  ;;  %v1806_v24 = vmul.f32 %v1798_v16, %v1711_v37 }
 0x700   :  { %v1792_v25 = vadd.f32 %v5857_v14, %v1781_v2  ;;  %v5883_v12 = vadd.f32 %v1813_v7, %v1802_v59  ;;  %v1836_v27 = vadd.f32 1.0, %v1789_v3  ;;  %v1838_v28 = vadd.f32 1.0, %v1791_v9 }
 0x701   :  { %v4081_v26 = vadd.f32 -0.5, %v1844_v15  ;;  %v5885_v29 = vadd.f32 %v1814_v10, %v1803_v60  ;;  %v5887_v30 = vadd.f32 %v1815_v13, %v1804_v17  ;;  %v5889_v31 = vadd.f32 %v1816_v62, %v1805_v20 }
 0x702   :  { %v5891_v32 = vadd.f32 %v1817_v18, %v1806_v24  ;;  %v1794_v33 = vadd.f32 %v5857_v14, %v1783_v21  ;;  %v1795_v34 = vadd.f32 %v5857_v14, %v1784_v22  ;;  %v1840_v16 = vadd.f32 1.0, %v1793_v23 }
 0x703   :  { %v1879_v35 = vfloor.f32 %v4081_v26  ;;  %v1839_v36 = vadd.f32 1.0, %v1792_v25  ;;  %v1843_v37 = vmul.f32 14.0, %v1836_v27  ;;  %v1845_v38 = vmul.f32 14.0, %v1838_v28 }
 0x704   :  { %v1841_v39 = vadd.f32 1.0, %v1794_v33  ;;  %v1842_v40 = vadd.f32 1.0, %v1795_v34  ;;  %v1847_v41 = vmul.f32 14.0, %v1840_v16  ;;  %v5905_v54 = vadd.s32 8, %v5278_v5 }
 0x705   :  { %v4737_v42 = vtrunc.f32 %v1879_v35  ;;  %v1846_v43 = vmul.f32 14.0, %v1839_v36  ;;  %v4080_v44 = vadd.f32 -0.5, %v1843_v37  ;;  %v5895_v45 = vadd.f32 -0.5, %v1845_v38 }
 0x706   :  { %v1848_v46 = vmul.f32 14.0, %v1841_v39  ;;  %v1849_v47 = vmul.f32 14.0, %v1842_v40  ;;  %v5897_v48 = vadd.f32 -0.5, %v1847_v41  ;;  %v5899_v49 = vsub.f32 %v4081_v26, %v1879_v35 }
 0x707   :  { %v5901_v14 = vcvt.f32.s32 %v4737_v42  ;;  %v4083_v50 = vadd.f32 -0.5, %v1846_v43  ;;  %v1878_v51 = vfloor.f32 %v4080_v44  ;;  %v1880_v53 = vfloor.f32 %v5895_v45 }
 0x708   :  { %v5908_v55 = vadd.s32 16, %v5278_v5  ;;  %v5910_v56 = vadd.f32 -0.5, %v1848_v46  ;;  %v5912_v58 = vadd.f32 -0.5, %v1849_v47  ;;  %v1882_v59 = vfloor.f32 %v5897_v48 }
 0x709   :  { %v5916_v60 = vadd.s32 24, %v5278_v5  ;;  %v5920_v57 = vrot.slane %v5901_v14, %v5287_v8  ;;  %v7496_v61 = vsub.f32 1.0, %v5899_v49  ;;  %v5924_v63 = vadd.s32 1, %v5901_v14 }
 0x70a   :  { %v5928_v0 = vrot.slane %v5899_v49, %v5287_v8  ;;  %v1881_v1 = vfloor.f32 %v4083_v50  ;;  %v5930_v2 = vsub.f32 %v4080_v44, %v1878_v51  ;;  %v4735_v3 = vtrunc.f32 %v1878_v51 }
 0x70b   :  { %v5933_v7 = vsub.f32 %v5895_v45, %v1880_v53  ;;  %vm1952_vm10 = vcmp.eq.s32.totalorder %v5278_v5, %v5920_v57  ;;  %vm1959_vm11 = vcmp.eq.s32.totalorder %v5905_v54, %v5920_v57  ;;  %v1993_v9 = vrot.slane %v7496_v61, %v5287_v8 }
 0x70c   :  { %v5944_v10 = vrot.slane %v5924_v63, %v5287_v8  ;;  %v5946_v13 = vsub.f32 %v4083_v50, %v1881_v1  ;;  %v4741_v15 = vtrunc.f32 %v1881_v1  ;;  %v5948_v17 = vcvt.f32.s32 %v4735_v3 }
 0x70d   :  { %v7494_v62 = vsub.f32 1.0, %v5930_v2  ;;  %v2015_v18 = vsel %vm1952_vm10, %v1993_v9, 0.0  ;;  %v2022_v20 = vsel %vm1959_vm11, %v1993_v9, 0.0  ;;  %v6014_v44 = vrot.slane %v5930_v2, %v5287_v8 }
 0x70e   :  { %vm2078_vm12 = vcmp.eq.s32.totalorder %v5278_v5, %v5944_v10  ;;  %vm2085_vm13 = vcmp.eq.s32.totalorder %v5905_v54, %v5944_v10  ;;  %v5957_v23 = vcvt.f32.s32 %v4741_v15  ;;  %v7495_v24 = vsub.f32 1.0, %v5946_v13 }
 0x70f   :  { %v2134_v21 = vsel %vm2078_vm12, %v5928_v0, 0.0  ;;  %v2141_v22 = vsel %vm2085_vm13, %v5928_v0, 0.0  ;;  %v5962_v27 = vrot.slane %v5946_v13, %v5287_v8  ;;  %v5966_v28 = vrot.slane %v5948_v17, %v5287_v8 }
 0x710   :  { %v2162_v25 = vadd.f32 %v2134_v21, %v2015_v18  ;;  %v2169_v26 = vadd.f32 %v2141_v22, %v2022_v20  ;;  %v5970_v33 = vrot.slane %v5957_v23, %v5287_v8  ;;  %v5975_v34 = vrot.slane %v7495_v24, %v5287_v8 }
 0x711   :  { %v5978_v16 = vadd.s32 1, %v5957_v23  ;;  %v5983_v35 = vrot.slane %v7494_v62, %v5287_v8  ;;  %vm1951_vm14 = vcmp.eq.s32.totalorder %v5278_v5, %v5966_v28  ;;  %vm1958_vm15 = vcmp.eq.s32.totalorder %v5905_v54, %v5966_v28 }
 0x712   :  { %v4655_v36 = vpack.c.bf16 %v2169_v26, %v2162_v25  ;;  %v5990_v37 = vadd.s32 1, %v5948_v17  ;;  %vm1954_vm0 = vcmp.eq.s32.totalorder %v5278_v5, %v5970_v33  ;;  %vm1961_vm1 = vcmp.eq.s32.totalorder %v5905_v54, %v5970_v33 }
 0x713   :  { %v5998_v38 = vrot.slane %v5978_v16, %v5287_v8  ;;  %v2014_v39 = vsel %vm1951_vm14, %v5983_v35, 0.0  ;;  %v2017_v40 = vsel %vm1954_vm0, %v5975_v34, 0.0  ;;  %v2024_v41 = vsel %vm1961_vm1, %v5975_v34, 0.0 }
 0x714   :  { %4656 = vmatprep.subr.bf16.mxu0 %v4655_v36  ;;  %v2021_v42 = vsel %vm1958_vm15, %v5983_v35, 0.0  ;;  %v6006_v43 = vrot.slane %v5990_v37, %v5287_v8  ;;  %v4739_v45 = vtrunc.f32 %v1880_v53  ;;  %v7493_v53 = vsub.f32 1.0, %v5933_v7 }
 0x715   :  { %vm2080_vm2 = vcmp.eq.s32.totalorder %v5278_v5, %v5998_v38  ;;  %vm2087_vm4 = vcmp.eq.s32.totalorder %v5905_v54, %v5998_v38  ;;  %v6029_v22 = vrot.slane %v5933_v7, %v5287_v8  ;;  %vm1966_vm7 = vcmp.eq.s32.totalorder %v5908_v55, %v5920_v57 }
 0x716   :  { %v2136_v46 = vsel %vm2080_vm2, %v5962_v27, 0.0  ;;  %v2143_v47 = vsel %vm2087_vm4, %v5962_v27, 0.0  ;;  %vm2077_vm5 = vcmp.eq.s32.totalorder %v5278_v5, %v6006_v43  ;;  %vm2084_vm6 = vcmp.eq.s32.totalorder %v5905_v54, %v6006_v43 }
 0x717   :  { %v2164_v50 = vadd.f32 %v2136_v46, %v2017_v40  ;;  %v2171_v51 = vadd.f32 %v2143_v47, %v2024_v41  ;;  %v2133_v1 = vsel %vm2077_vm5, %v6014_v44, 0.0  ;;  %v2140_v3 = vsel %vm2084_vm6, %v6014_v44, 0.0 }
 0x718   :  { %v2161_v15 = vadd.f32 %v2133_v1, %v2014_v39  ;;  %v2168_v18 = vadd.f32 %v2140_v3, %v2021_v42  ;;  %v6024_v20 = vcvt.f32.s32 %v4739_v45  ;;  %vm1973_vm8 = vcmp.eq.s32.totalorder %v5916_v60, %v5920_v57  ;;  %v1827_v1 = vpop.permute.xlu0 %1826 }
 0x719   :  { %v4665_v21 = vpack.c.bf16 %v2171_v51, %v2164_v50  ;;  %v1997_v36 = vrot.slane %v7493_v53, %v5287_v8  ;;  %v2029_v40 = vsel %vm1966_vm7, %v1993_v9, 0.0  ;;  %v2036_v41 = vsel %vm1973_vm8, %v1993_v9, 0.0 }
 0x71a   :  { %v4657_v25 = vpack.c.bf16 %v2168_v18, %v2161_v15  ;;  %v1934_v26 = vrot.slane %v6024_v20, %v5287_v8  ;;  %v6041_v39 = vadd.s32 1, %v6024_v20  ;;  %vm2092_vm9 = vcmp.eq.s32.totalorder %v5908_v55, %v5944_v10 }
 0x71b   :  { %4666 = vmatprep.subr.bf16.mxu1 %v4665_v21  ;;  %vm2099_vm10 = vcmp.eq.s32.totalorder %v5916_v60, %v5944_v10  ;;  %v2148_v42 = vsel %vm2092_vm9, %v5928_v0, 0.0  ;;  %vm1968_vm15 = vcmp.eq.s32.totalorder %v5908_v55, %v5970_v33  ;;  %vm4789_vm0 = vmmov 1  }
 0x71c   :  { %4658 = vmatpush1.bf16.msra.mxu0 %v4657_v25  ;;  %vm1953_vm11 = vcmp.eq.s32.totalorder %v5278_v5, %v1934_v26  ;;  %vm1960_vm12 = vcmp.eq.s32.totalorder %v5905_v54, %v1934_v26  ;;  %v2060_v57 = vrot.slane %v6041_v39, %v5287_v8  ;;  %v2155_v9 = vsel %vm2099_vm10, %v5928_v0, 0.0  ;;  %vm6060_vm1 = vmpackc.low %vm952_vm3, %vm4789_vm0 }
 0x71d   :  { %v2016_v45 = vsel %vm1953_vm11, %v1997_v36, 0.0  ;;  %v2023_v46 = vsel %vm1960_vm12, %v1997_v36, 0.0  ;;  %v2176_v47 = vadd.f32 %v2148_v42, %v2029_v40  ;;  %v2183_v10 = vadd.f32 %v2155_v9, %v2036_v41 }
 0x71e   :  { %vm2079_vm13 = vcmp.eq.s32.totalorder %v5278_v5, %v2060_v57  ;;  %vm2086_vm14 = vcmp.eq.s32.totalorder %v5905_v54, %v2060_v57  ;;  %vm1975_vm2 = vcmp.eq.s32.totalorder %v5916_v60, %v5970_v33  ;;  %v2031_v0 = vsel %vm1968_vm15, %v5975_v34, 0.0 }
 0x71f   :  { %v2135_v50 = vsel %vm2079_vm13, %v6029_v22, 0.0  ;;  %v2142_v51 = vsel %vm2086_vm14, %v6029_v22, 0.0  ;;  %v4659_v18 = vpack.c.bf16 %v2183_v10, %v2176_v47  ;;  %v2038_v21 = vsel %vm1975_vm2, %v5975_v34, 0.0 }
 0x720   :  { %v2163_v3 = vadd.f32 %v2135_v50, %v2016_v45  ;;  %v2170_v15 = vadd.f32 %v2142_v51, %v2023_v46  ;;  %vm2094_vm4 = vcmp.eq.s32.totalorder %v5908_v55, %v5998_v38  ;;  %vm2101_vm5 = vcmp.eq.s32.totalorder %v5916_v60, %v5998_v38 }
 0x721   :  { %vm1965_vm6 = vcmp.eq.s32.totalorder %v5908_v55, %v5966_v28  ;;  %vm1972_vm7 = vcmp.eq.s32.totalorder %v5916_v60, %v5966_v28  ;;  %4661 = vmatprep.subr.msk.bf16.mxu0 %vm6060_vm1, %v4659_v18  ;;  %v2150_v25 = vsel %vm2094_vm4, %v5962_v27, 0.0  ;;  %v2157_v34 = vsel %vm2101_vm5, %v5962_v27, 0.0 }
 0x722   :  { %v4667_v33 = vpack.c.bf16 %v2170_v15, %v2163_v3  ;;  %v2028_v40 = vsel %vm1965_vm6, %v5983_v35, 0.0  ;;  %vm2459_vm8 = vcmask 228352   ;;  %v2178_v41 = vadd.f32 %v2150_v25, %v2031_v0 }
 0x723   :  { %v2185_v42 = vadd.f32 %v2157_v34, %v2038_v21  ;;  %v2035_v38 = vsel %vm1972_vm7, %v5983_v35, 0.0  ;;  %vm2091_vm9 = vcmp.eq.s32.totalorder %v5908_v55, %v6006_v43  ;;  %vm2098_vm10 = vcmp.eq.s32.totalorder %v5916_v60, %v6006_v43  ;;  %v6114_v21 = vld [vmem:[%s7476_s0] sm:$0xff] }
 0x724   :  { %4668 = vmatpush1.bf16.msra.mxu1 %v4667_v33  ;;  %v2147_v28 = vsel %vm2091_vm9, %v6014_v44, 0.0  ;;  %vm1967_vm11 = vcmp.eq.s32.totalorder %v5908_v55, %v1934_v26  ;;  %vm1974_vm12 = vcmp.eq.s32.totalorder %v5916_v60, %v1934_v26  ;;  %v2154_v45 = vsel %vm2098_vm10, %v6014_v44, 0.0 }
 0x725   :  { %v4669_v27 = vpack.c.bf16 %v2185_v42, %v2178_v41  ;;  %v2175_v46 = vadd.f32 %v2147_v28, %v2028_v40  ;;  %v2030_v9 = vsel %vm1967_vm11, %v1997_v36, 0.0  ;;  %v2182_v47 = vadd.f32 %v2154_v45, %v2035_v38 }
 0x726   :  { %v2037_v35 = vsel %vm1974_vm12, %v1997_v36, 0.0  ;;  %vm2093_vm13 = vcmp.eq.s32.totalorder %v5908_v55, %v2060_v57  ;;  %vm2100_vm14 = vcmp.eq.s32.totalorder %v5916_v60, %v2060_v57  ;;  %v1883_v26 = vfloor.f32 %v5910_v56 }
 0x727   :  { %4671 = vmatprep.subr.msk.bf16.mxu1 %vm6060_vm1, %v4669_v27  ;;  %v2149_v43 = vsel %vm2093_vm13, %v6029_v22, 0.0  ;;  %v2156_v10 = vsel %vm2100_vm14, %v6029_v22, 0.0  ;;  %v1884_v50 = vfloor.f32 %v5912_v58  ;;  %v4662_v44 = vpack.c.bf16 %v2182_v47, %v2175_v46 }
 0x728   :  { %v2177_v51 = vadd.f32 %v2149_v43, %v2030_v9  ;;  %v2184_v0 = vadd.f32 %v2156_v10, %v2037_v35  ;;  %v6101_v36 = vsub.f32 %v5897_v48, %v1882_v59  ;;  %v6104_v57 = vsub.f32 %v5910_v56, %v1883_v26  ;;  %v6179_v10 = vld [vmem:[%s7476_s0 + $0x10] sm:$0xff] }
 0x729   :  { %v4745_v3 = vtrunc.f32 %v1883_v26  ;;  %v6107_v15 = vsub.f32 %v5912_v58, %v1884_v50  ;;  %v4747_v22 = vtrunc.f32 %v1884_v50  ;;  %4664 = vmatpush1.bf16.msk.msra.mxu0 %vm6060_vm1, %v4662_v44  ;;  %v4743_v33 = vtrunc.f32 %v1882_v59 }
 0x72a   :  { %v4672_v18 = vpack.c.bf16 %v2184_v0, %v2177_v51  ;;  %v7490_v56 = vsub.f32 1.0, %v6101_v36  ;;  %v6121_v25 = vrot.slane %v6101_v36, %v5287_v8  ;;  %v7492_v34 = vsub.f32 1.0, %v6104_v57 }
 0x72b   :  { %v6123_v58 = vcvt.f32.s32 %v4745_v3  ;;  %v6128_v40 = vrot.slane %v6104_v57, %v5287_v8  ;;  %v6130_v41 = vcvt.f32.s32 %v4747_v22  ;;  %v7491_v48 = vsub.f32 1.0, %v6107_v15 }
 0x72c   :  { %4674 = vmatpush1.bf16.msk.msra.mxu1 %vm6060_vm1, %v4672_v18  ;;  %v6137_v59 = vrot.slane %v6107_v15, %v5287_v8  ;;  %v6139_v42 = vcvt.f32.s32 %v4743_v33  ;;  %v6144_v38 = vrot.slane %v7490_v56, %v5287_v8  ;;  %v2009_v27 = vrot.slane %v7492_v34, %v5287_v8  ;;  %4096 = vmatmul.mubr.msk.f32.vlgmr.msra.gmra.mrb[54].mxu0 %vm2459_vm8, %v6114_v21  ;;  %v6210_v33 = vld [vmem:[%s7476_s0 + $0x20] sm:$0xff] }
 0x72d   :  { %v1946_v28 = vrot.slane %v6123_v58, %v5287_v8  ;;  %v6152_v45 = vadd.s32 1, %v6123_v58  ;;  %v6156_v46 = vrot.slane %v6130_v41, %v5287_v8  ;;  %v6163_v9 = vrot.slane %v7491_v48, %v5287_v8  ;;  %2563 = vmatprep.mubr.f32.mxu0 %v4780_v52 }
 0x72e   :  { %v6166_v47 = vadd.s32 1, %v6130_v41  ;;  %v6170_v35 = vrot.slane %v6139_v42, %v5287_v8  ;;  %v6173_v43 = vadd.s32 1, %v6139_v42 }
 0x72f   :  { %vm1956_vm15 = vcmp.eq.s32.totalorder %v5278_v5, %v1946_v28  ;;  %vm1963_vm0 = vcmp.eq.s32.totalorder %v5905_v54, %v1946_v28  ;;  %v2072_v26 = vrot.slane %v6152_v45, %v5287_v8  ;;  %vm1957_vm2 = vcmp.eq.s32.totalorder %v5278_v5, %v6156_v46  ;;  %4102 = vmatmul.mubr.msk.f32.vlgmr.msra.gmra.mrb[54].mxu1 %vm2459_vm8, %v6114_v21 }
 0x730   :  { %v2019_v50 = vsel %vm1956_vm15, %v2009_v27, 0.0  ;;  %v2026_v44 = vsel %vm1963_vm0, %v2009_v27, 0.0  ;;  %vm1964_vm4 = vcmp.eq.s32.totalorder %v5905_v54, %v6156_v46  ;;  %v2020_v51 = vsel %vm1957_vm2, %v6163_v9, 0.0  ;;  %2652 = vmatprep.mubr.f32.mxu1 %v4780_v52  ;;  %4097 = vmatmul.mubr.msk.f32.gmra.mrb[56].mxu0 %vm2459_vm8, %v6179_v10 }
 0x731   :  { %vm2082_vm5 = vcmp.eq.s32.totalorder %v5278_v5, %v2072_v26  ;;  %vm2089_vm6 = vcmp.eq.s32.totalorder %v5905_v54, %v2072_v26  ;;  %v2027_v0 = vsel %vm1964_vm4, %v6163_v9, 0.0  ;;  %v2076_v3 = vrot.slane %v6166_v47, %v5287_v8  ;;  %2569 = vmatprep.mubr.f32.mxu0 %v4780_v52 }
 0x732   :  { %v2138_v22 = vsel %vm2082_vm5, %v6128_v40, 0.0  ;;  %v2145_v18 = vsel %vm2089_vm6, %v6128_v40, 0.0  ;;  %vm1955_vm7 = vcmp.eq.s32.totalorder %v5278_v5, %v6170_v35  ;;  %vm1962_vm9 = vcmp.eq.s32.totalorder %v5905_v54, %v6170_v35 }
 0x733   :  { %v2166_v4 = vadd.f32 %v2138_v22, %v2019_v50  ;;  %v2173_v56 = vadd.f32 %v2145_v18, %v2026_v44  ;;  %vm2083_vm10 = vcmp.eq.s32.totalorder %v5278_v5, %v2076_v3  ;;  %vm2090_vm11 = vcmp.eq.s32.totalorder %v5905_v54, %v2076_v3  ;;  %4103 = vmatmul.mubr.msk.f32.gmra.mrb[56].mxu1 %vm2459_vm8, %v6179_v10 }
 0x734   :  { %v2139_v48 = vsel %vm2083_vm10, %v6137_v59, 0.0  ;;  %v2146_v34 = vsel %vm2090_vm11, %v6137_v59, 0.0  ;;  %v2018_v53 = vsel %vm1955_vm7, %v6144_v38, 0.0  ;;  %v2025_v62 = vsel %vm1962_vm9, %v6144_v38, 0.0  ;;  %2658 = vmatprep.mubr.f32.mxu1 %v4780_v52  ;;  %4098 = vmatmul.mubr.msk.f32.gmra.mrb[58].mxu0 %vm2459_vm8, %v6210_v33 }
 0x735   :  { %v4675_v24 = vpack.c.bf16 %v2173_v56, %v2166_v4  ;;  %v2167_v50 = vadd.f32 %v2139_v48, %v2020_v51  ;;  %v2174_v44 = vadd.f32 %v2146_v34, %v2027_v0  ;;  %v2068_v22 = vrot.slane %v6173_v43, %v5287_v8  ;;  %2575 = vmatprep.mubr.f32.mxu0 %v4780_v52  ;;  %v6233_v4 = vld [vmem:[%s7476_s0 + $0x30] sm:$0xf] }
 0x736   :  { %vm1970_vm12 = vcmp.eq.s32.totalorder %v5908_v55, %v1946_v28  ;;  %vm1977_vm13 = vcmp.eq.s32.totalorder %v5916_v60, %v1946_v28  ;;  %vm2096_vm14 = vcmp.eq.s32.totalorder %v5908_v55, %v2072_v26  ;;  %vm2103_vm15 = vcmp.eq.s32.totalorder %v5916_v60, %v2072_v26 }
 0x737   :  { %4676 = vmatprep.subr.bf16.mxu0 %v4675_v24  ;;  %v4685_v56 = vpack.c.bf16 %v2174_v44, %v2167_v50  ;;  %vm2081_vm0 = vcmp.eq.s32.totalorder %v5278_v5, %v2068_v22  ;;  %vm2088_vm2 = vcmp.eq.s32.totalorder %v5905_v54, %v2068_v22  ;;  %v2033_v34 = vsel %vm1970_vm12, %v2009_v27, 0.0  ;;  %4104 = vmatmul.mubr.msk.f32.gmra.mrb[58].mxu1 %vm2459_vm8, %v6210_v33 }
 0x738   :  { %v2137_v48 = vsel %vm2081_vm0, %v6121_v25, 0.0  ;;  %v2144_v28 = vsel %vm2088_vm2, %v6121_v25, 0.0  ;;  %v2040_v51 = vsel %vm1977_vm13, %v2009_v27, 0.0  ;;  %v2152_v0 = vsel %vm2096_vm14, %v6128_v40, 0.0  ;;  %2664 = vmatprep.mubr.f32.mxu1 %v4780_v52  ;;  %4099 = vmatmul.mubr.msk.f32.gmra.mrb[60].mxu0 %vm2459_vm8, %v6233_v4 }
 0x739   :  { %4686 = vmatprep.subr.bf16.mxu1 %v4685_v56  ;;  %v2165_v24 = vadd.f32 %v2137_v48, %v2018_v53  ;;  %v2172_v18 = vadd.f32 %v2144_v28, %v2025_v62  ;;  %v2159_v50 = vsel %vm2103_vm15, %v6128_v40, 0.0  ;;  %v2180_v44 = vadd.f32 %v2152_v0, %v2033_v34  ;;  %2735 = vmatprep.mubr.f32.mxu0 %v4780_v52 }
 0x73a   :  { %4688 = vmatpush3.bf16.msra.mxu1 %v4685_v56  ;;  %v2187_v61 = vadd.f32 %v2159_v50, %v2040_v51  ;;  %vm1971_vm4 = vcmp.eq.s32.totalorder %v5908_v55, %v6156_v46  ;;  %vm1978_vm5 = vcmp.eq.s32.totalorder %v5916_v60, %v6156_v46  ;;  %vm2097_vm6 = vcmp.eq.s32.totalorder %v5908_v55, %v2076_v3 }
 0x73b   :  { %v4677_v53 = vpack.c.bf16 %v2172_v18, %v2165_v24  ;;  %v2034_v62 = vsel %vm1971_vm4, %v6163_v9, 0.0  ;;  %v2041_v27 = vsel %vm1978_vm5, %v6163_v9, 0.0  ;;  %vm2104_vm7 = vcmp.eq.s32.totalorder %v5916_v60, %v2076_v3  ;;  %4105 = vmatmul.mubr.msk.f32.gmra.mrb[60].mxu1 %vm2459_vm8, %v6233_v4 }
 0x73c   :  { %v4679_v40 = vpack.c.bf16 %v2187_v61, %v2180_v44  ;;  %v2153_v26 = vsel %vm2097_vm6, %v6137_v59, 0.0  ;;  %v2160_v56 = vsel %vm2104_vm7, %v6137_v59, 0.0  ;;  %vm1969_vm9 = vcmp.eq.s32.totalorder %v5908_v55, %v6170_v35  ;;  %4331 = vmatprep.mubr.msk.f32.mxu1 %vm2459_vm8, %v6114_v21 }
 0x73d   :  { %4678 = vmatpush1.bf16.msra.mxu0 %v4677_v53  ;;  %v2181_v46 = vadd.f32 %v2153_v26, %v2034_v62  ;;  %v2188_v9 = vadd.f32 %v2160_v56, %v2041_v27  ;;  %vm1976_vm10 = vcmp.eq.s32.totalorder %v5916_v60, %v6170_v35  ;;  %v2032_v3 = vsel %vm1969_vm9, %v6144_v38, 0.0 }
 0x73e   :  { %4681 = vmatprep.subr.msk.bf16.mxu0 %vm6060_vm1, %v4679_v40  ;;  %v2039_v61 = vsel %vm1976_vm10, %v6144_v38, 0.0  ;;  %vm2095_vm11 = vcmp.eq.s32.totalorder %v5908_v55, %v2068_v22  ;;  %vm2102_vm12 = vcmp.eq.s32.totalorder %v5916_v60, %v2068_v22  ;;  %v6275_v59 = vrot.slane %v5901_v14, %v5281_v6 }
 0x73f   :  { %v4689_v34 = vpack.c.bf16 %v2188_v9, %v2181_v46  ;;  %v2151_v48 = vsel %vm2095_vm11, %v6121_v25, 0.0  ;;  %v2158_v35 = vsel %vm2102_vm12, %v6121_v25, 0.0  ;;  %v7514_v28 = vsub.f32 1.0, %v5899_v49 }
 0x740   :  { %v2179_v0 = vadd.f32 %v2151_v48, %v2032_v3  ;;  %v2186_v38 = vadd.f32 %v2158_v35, %v2039_v61  ;;  %vm3033_vm13 = vcmp.eq.s32.totalorder %v5278_v5, %v6275_v59  ;;  %vm3040_vm14 = vcmp.eq.s32.totalorder %v5905_v54, %v6275_v59 }
 0x741   :  { %v6282_v51 = vrot.slane %v7514_v28, %v5281_v6  ;;  %4691 = vmatprep.subr.msk.bf16.mxu1 %vm6060_vm1, %v4689_v34  ;;  %v6294_v22 = vrot.slane %v5924_v63, %v5281_v6  ;;  %v6298_v24 = vrot.slane %v5899_v49, %v5281_v6  ;;  %v6304_v50 = vrot.slane %v5957_v23, %v5281_v6 }
 0x742   :  { %v4682_v18 = vpack.c.bf16 %v2186_v38, %v2179_v0  ;;  %4694 = vmatpush3.bf16.msk.msra.mxu1 %vm6060_vm1, %v4689_v34  ;;  %v7515_v44 = vsub.f32 1.0, %v5946_v13  ;;  %v6313_v63 = vrot.slane %v5978_v16, %v5281_v6  ;;  %v6321_v49 = vrot.slane %v5946_v13, %v5281_v6 }
 0x743   :  { %v3089_v14 = vsel %vm3033_vm13, %v6282_v51, 0.0  ;;  %v3096_v25 = vsel %vm3040_vm14, %v6282_v51, 0.0  ;;  %vm3145_vm15 = vcmp.eq.s32.totalorder %v5278_v5, %v6294_v22  ;;  %vm3152_vm0 = vcmp.eq.s32.totalorder %v5905_v54, %v6294_v22 }
 0x744   :  { %v6309_v53 = vrot.slane %v7515_v44, %v5281_v6  ;;  %v6325_v23 = vrot.slane %v5948_v17, %v5281_v6  ;;  %4684 = vmatpush1.bf16.msk.msra.mxu0 %vm6060_vm1, %v4682_v18  ;;  %v3201_v16 = vsel %vm3145_vm15, %v6298_v24, 0.0  ;;  %v3208_v62 = vsel %vm3152_vm0, %v6298_v24, 0.0 }
 0x745   :  { %vm3035_vm2 = vcmp.eq.s32.totalorder %v5278_v5, %v6304_v50  ;;  %vm3042_vm4 = vcmp.eq.s32.totalorder %v5905_v54, %v6304_v50  ;;  %v3229_v27 = vadd.f32 %v3201_v16, %v3089_v14  ;;  %v3236_v13 = vadd.f32 %v3208_v62, %v3096_v25  ;;  %4332 = vmatmul.mubr.msk.f32.vlgmr.msra.gmra.mrb[62].mxu1 %vm2459_vm8, %v6179_v10 }
 0x746   :  { %v3091_v40 = vsel %vm3035_vm2, %v6309_v53, 0.0  ;;  %v3098_v17 = vsel %vm3042_vm4, %v6309_v53, 0.0  ;;  %vm3147_vm5 = vcmp.eq.s32.totalorder %v5278_v5, %v6313_v63  ;;  %vm3154_vm6 = vcmp.eq.s32.totalorder %v5905_v54, %v6313_v63  ;;  %4334 = vmatprep.mubr.msk.f32.mxu1 %vm2459_vm8, %v6210_v33 }
 0x747   :  { %vm3032_vm7 = vcmp.eq.s32.totalorder %v5278_v5, %v6325_v23  ;;  %vm3039_vm9 = vcmp.eq.s32.totalorder %v5905_v54, %v6325_v23  ;;  %v4695_v26 = vpack.c.bf16 %v3236_v13, %v3229_v27  ;;  %v3203_v56 = vsel %vm3147_vm5, %v6321_v49, 0.0  ;;  %4108 = vmatmul.mubr.msk.f32.vlgmr.msra.gmra.mrb[62].mxu0 %vm2459_vm8, %v6114_v21 }
 0x748   :  { %v3210_v46 = vsel %vm3154_vm6, %v6321_v49, 0.0  ;;  %v7516_v9 = vsub.f32 1.0, %v5930_v2  ;;  %v3231_v61 = vadd.f32 %v3203_v56, %v3091_v40  ;;  %v6360_v48 = vrot.slane %v5990_v37, %v5281_v6  ;;  %2741 = vmatprep.mubr.f32.mxu0 %v4780_v52 }
 0x749   :  { %v3238_v34 = vadd.f32 %v3210_v46, %v3098_v17  ;;  %v6364_v35 = vrot.slane %v5930_v2, %v5281_v6  ;;  %4696 = vmatprep.subr.bf16.mxu1 %v4695_v26  ;;  %v6371_v0 = vrot.slane %v6024_v20, %v5281_v6  ;;  %v7517_v38 = vsub.f32 1.0, %v5933_v7  ;;  %4335 = vmatmul.mubr.msk.f32.gmra.mrb[64].mxu1 %vm2459_vm8, %v6233_v4 }
 0x74a   :  { %v6356_v3 = vrot.slane %v7516_v9, %v5281_v6  ;;  %vm3144_vm10 = vcmp.eq.s32.totalorder %v5278_v5, %v6360_v48  ;;  %vm3151_vm11 = vcmp.eq.s32.totalorder %v5905_v54, %v6360_v48  ;;  %v6386_v14 = vrot.slane %v6041_v39, %v5281_v6  ;;  %3609 = vmatprep.mubr.f32.mxu1 %v4780_v52 }
 0x74b   :  { %v6376_v37 = vrot.slane %v7517_v38, %v5281_v6  ;;  %v4705_v2 = vpack.c.bf16 %v3238_v34, %v3231_v61  ;;  %v3200_v20 = vsel %vm3144_vm10, %v6364_v35, 0.0  ;;  %v3207_v25 = vsel %vm3151_vm11, %v6364_v35, 0.0  ;;  %4109 = vmatmul.mubr.msk.f32.gmra.mrb[64].mxu0 %vm2459_vm8, %v6179_v10 }
 0x74c   :  { %v3088_v21 = vsel %vm3032_vm7, %v6356_v3, 0.0  ;;  %v3095_v28 = vsel %vm3039_vm9, %v6356_v3, 0.0  ;;  %vm3034_vm12 = vcmp.eq.s32.totalorder %v5278_v5, %v6371_v0  ;;  %vm3041_vm13 = vcmp.eq.s32.totalorder %v5905_v54, %v6371_v0  ;;  %2747 = vmatprep.mubr.f32.mxu0 %v4780_v52 }
 0x74d   :  { %4706 = vmatprep.subr.bf16.mxu0 %v4705_v2  ;;  %v3228_v18 = vadd.f32 %v3200_v20, %v3088_v21  ;;  %v3235_v44 = vadd.f32 %v3207_v25, %v3095_v28  ;;  %v3090_v39 = vsel %vm3034_vm12, %v6376_v37, 0.0  ;;  %v3097_v16 = vsel %vm3041_vm13, %v6376_v37, 0.0 }
 0x74e   :  { %vm3146_vm14 = vcmp.eq.s32.totalorder %v5278_v5, %v6386_v14  ;;  %vm3153_vm15 = vcmp.eq.s32.totalorder %v5905_v54, %v6386_v14  ;;  %v3183_v62 = vrot.slane %v5933_v7, %v5281_v6  ;;  %vm3047_vm0 = vcmp.eq.s32.totalorder %v5908_v55, %v6275_v59 }
 0x74f   :  { %v4697_v10 = vpack.c.bf16 %v3235_v44, %v3228_v18  ;;  %vm3054_vm2 = vcmp.eq.s32.totalorder %v5916_v60, %v6275_v59  ;;  %v3103_v27 = vsel %vm3047_vm0, %v6282_v51, 0.0  ;;  %vm3159_vm4 = vcmp.eq.s32.totalorder %v5908_v55, %v6294_v22  ;;  %4110 = vmatmul.mubr.msk.f32.gmra.mrb[66].mxu0 %vm2459_vm8, %v6210_v33 }
 0x750   :  { %v3202_v13 = vsel %vm3146_vm14, %v3183_v62, 0.0  ;;  %v3209_v40 = vsel %vm3153_vm15, %v3183_v62, 0.0  ;;  %v3110_v17 = vsel %vm3054_vm2, %v6282_v51, 0.0  ;;  %vm3166_vm5 = vcmp.eq.s32.totalorder %v5916_v60, %v6294_v22  ;;  %2753 = vmatprep.mubr.f32.mxu0 %v4780_v52 }
 0x751   :  { %4698 = vmatpush1.bf16.msra.mxu1 %v4697_v10  ;;  %v3230_v7 = vadd.f32 %v3202_v13, %v3090_v39  ;;  %v3237_v26 = vadd.f32 %v3209_v40, %v3097_v16  ;;  %v3215_v59 = vsel %vm3159_vm4, %v6298_v24, 0.0  ;;  %v3222_v56 = vsel %vm3166_vm5, %v6298_v24, 0.0 }
 0x752   :  { %v3243_v46 = vadd.f32 %v3215_v59, %v3103_v27  ;;  %v3250_v9 = vadd.f32 %v3222_v56, %v3110_v17  ;;  %vm3049_vm6 = vcmp.eq.s32.totalorder %v5908_v55, %v6304_v50  ;;  %vm3056_vm7 = vcmp.eq.s32.totalorder %v5916_v60, %v6304_v50  ;;  %v6519_v59 = vld [vmem:[%s7476_s0 + $0x50] sm:$0xff] }
 0x753   :  { %v4707_v51 = vpack.c.bf16 %v3237_v26, %v3230_v7  ;;  %v3105_v33 = vsel %vm3049_vm6, %v6309_v53, 0.0  ;;  %v3112_v22 = vsel %vm3056_vm7, %v6309_v53, 0.0  ;;  %vm3161_vm9 = vcmp.eq.s32.totalorder %v5908_v55, %v6313_v63  ;;  %4111 = vmatmul.mubr.msk.f32.gmra.mrb[68].mxu0 %vm2459_vm8, %v6233_v4 }
 0x754   :  { %v4699_v61 = vpack.c.bf16 %v3250_v9, %v3243_v46  ;;  %vm3168_vm10 = vcmp.eq.s32.totalorder %v5916_v60, %v6313_v63  ;;  %v3217_v24 = vsel %vm3161_vm9, %v6321_v49, 0.0  ;;  %vm3046_vm11 = vcmp.eq.s32.totalorder %v5908_v55, %v6325_v23  ;;  %3698 = vmatprep.mubr.f32.mxu0 %v4780_v52 }
 0x755   :  { %4708 = vmatpush1.bf16.msra.mxu0 %v4707_v51  ;;  %v3224_v50 = vsel %vm3168_vm10, %v6321_v49, 0.0  ;;  %v3245_v34 = vadd.f32 %v3217_v24, %v3105_v33  ;;  %vm3053_vm12 = vcmp.eq.s32.totalorder %v5916_v60, %v6325_v23  ;;  %v3102_v53 = vsel %vm3046_vm11, %v6356_v3, 0.0 }
 0x756   :  { %4701 = vmatprep.subr.msk.bf16.mxu1 %vm6060_vm1, %v4699_v61  ;;  %v3252_v63 = vadd.f32 %v3224_v50, %v3112_v22  ;;  %v3109_v21 = vsel %vm3053_vm12, %v6356_v3, 0.0  ;;  %vm3158_vm13 = vcmp.eq.s32.totalorder %v5908_v55, %v6360_v48  ;;  %vm3165_vm14 = vcmp.eq.s32.totalorder %v5916_v60, %v6360_v48 }
 0x757   :  { %v3214_v4 = vsel %vm3158_vm13, %v6364_v35, 0.0  ;;  %v3221_v49 = vsel %vm3165_vm14, %v6364_v35, 0.0  ;;  %vm3048_vm15 = vcmp.eq.s32.totalorder %v5908_v55, %v6371_v0  ;;  %vm3055_vm0 = vcmp.eq.s32.totalorder %v5916_v60, %v6371_v0 }
 0x758   :  { %v4709_v23 = vpack.c.bf16 %v3252_v63, %v3245_v34  ;;  %v3242_v28 = vadd.f32 %v3214_v4, %v3102_v53  ;;  %v3249_v38 = vadd.f32 %v3221_v49, %v3109_v21  ;;  %v3104_v3 = vsel %vm3048_vm15, %v6376_v37, 0.0 }
 0x759   :  { %v3111_v2 = vsel %vm3055_vm0, %v6376_v37, 0.0  ;;  %vm3160_vm2 = vcmp.eq.s32.totalorder %v5908_v55, %v6386_v14  ;;  %vm3167_vm4 = vcmp.eq.s32.totalorder %v5916_v60, %v6386_v14  ;;  %v6462_v48 = vrot.slane %v6123_v58, %v5281_v6 }
 0x75a   :  { %4711 = vmatprep.subr.msk.bf16.mxu0 %vm6060_vm1, %v4709_v23  ;;  %v4702_v35 = vpack.c.bf16 %v3249_v38, %v3242_v28  ;;  %v3216_v0 = vsel %vm3160_vm2, %v3183_v62, 0.0  ;;  %v3223_v20 = vsel %vm3167_vm4, %v3183_v62, 0.0  ;;  %v7518_v25 = vsub.f32 1.0, %v6104_v57  ;;  %v6482_v62 = vld [vmem:[%s7476_s0 + $0x40] sm:$0xff] }
 0x75b   :  { %v3244_v18 = vadd.f32 %v3216_v0, %v3104_v3  ;;  %v3251_v44 = vadd.f32 %v3223_v20, %v3111_v2  ;;  %vm3037_vm5 = vcmp.eq.s32.totalorder %v5278_v5, %v6462_v48  ;;  %vm3044_vm6 = vcmp.eq.s32.totalorder %v5905_v54, %v6462_v48  ;;  %v3511_v20 = vld [vmem:[%s7476_s0 + $0x70] sm:$0xf] }
 0x75c   :  { %v3083_v37 = vrot.slane %v7518_v25, %v5281_v6  ;;  %4704 = vmatpush1.bf16.msk.msra.mxu1 %vm6060_vm1, %v4702_v35  ;;  %v3139_v39 = vrot.slane %v6152_v45, %v5281_v6  ;;  %v3195_v16 = vrot.slane %v6104_v57, %v5281_v6  ;;  %v6486_v27 = vrot.slane %v6130_v41, %v5281_v6 }
 0x75d   :  { %v4712_v10 = vpack.c.bf16 %v3251_v44, %v3244_v18  ;;  %v7519_v13 = vsub.f32 1.0, %v6107_v15  ;;  %v6495_v45 = vrot.slane %v6166_v47, %v5281_v6  ;;  %v6501_v57 = vrot.slane %v6107_v15, %v5281_v6 }
 0x75e   :  { %v3093_v58 = vsel %vm3037_vm5, %v3083_v37, 0.0  ;;  %v3100_v14 = vsel %vm3044_vm6, %v3083_v37, 0.0  ;;  %vm3149_vm7 = vcmp.eq.s32.totalorder %v5278_v5, %v3139_v39  ;;  %vm3156_vm9 = vcmp.eq.s32.totalorder %v5905_v54, %v3139_v39 }
 0x75f   :  { %v6491_v40 = vrot.slane %v7519_v13, %v5281_v6  ;;  %v3023_v41 = vrot.slane %v6139_v42, %v5281_v6  ;;  %4714 = vmatpush1.bf16.msk.msra.mxu0 %vm6060_vm1, %v4712_v10  ;;  %v3205_v17 = vsel %vm3149_vm7, %v3195_v16, 0.0  ;;  %v3212_v7 = vsel %vm3156_vm9, %v3195_v16, 0.0  ;;  %4119 = vmatmul.mubr.msk.f32.vlgmr.msra.gmra.mrb[66].mxu1 %vm2459_vm8, %v6482_v62 }
 0x760   :  { %vm3038_vm10 = vcmp.eq.s32.totalorder %v5278_v5, %v6486_v27  ;;  %vm3045_vm11 = vcmp.eq.s32.totalorder %v5905_v54, %v6486_v27  ;;  %v3233_v47 = vadd.f32 %v3205_v17, %v3093_v58  ;;  %v3240_v15 = vadd.f32 %v3212_v7, %v3100_v14  ;;  %3615 = vmatprep.mubr.f32.mxu1 %v4780_v52 }
 0x761   :  { %v3094_v26 = vsel %vm3038_vm10, %v6491_v40, 0.0  ;;  %v3101_v42 = vsel %vm3045_vm11, %v6491_v40, 0.0  ;;  %vm3150_vm12 = vcmp.eq.s32.totalorder %v5278_v5, %v6495_v45  ;;  %vm3157_vm13 = vcmp.eq.s32.totalorder %v5905_v54, %v6495_v45 }
 0x762   :  { %vm3036_vm14 = vcmp.eq.s32.totalorder %v5278_v5, %v3023_v41  ;;  %vm3043_vm15 = vcmp.eq.s32.totalorder %v5905_v54, %v3023_v41  ;;  %v4715_v56 = vpack.c.bf16 %v3240_v15, %v3233_v47  ;;  %v3206_v46 = vsel %vm3150_vm12, %v6501_v57, 0.0  ;;  %4125 = vmatmul.mubr.msk.f32.vlgmr.msra.gmra.mrb[70].mxu0 %vm2459_vm8, %v6482_v62 }
 0x763   :  { %v3213_v9 = vsel %vm3157_vm13, %v6501_v57, 0.0  ;;  %v7520_v51 = vsub.f32 1.0, %v6101_v36  ;;  %v3234_v22 = vadd.f32 %v3206_v46, %v3094_v26  ;;  %v3135_v24 = vrot.slane %v6173_v43, %v5281_v6  ;;  %4120 = vmatmul.mubr.msk.f32.gmra.mrb[68].mxu1 %vm2459_vm8, %v6519_v59  ;;  %v6548_v43 = vld [vmem:[%s7476_s0 + $0x60] sm:$0xff]  ;;  %3704 = vmatprep.mubr.f32.mxu0 %v4780_v52 }
 0x764   :  { %v3241_v61 = vadd.f32 %v3213_v9, %v3101_v42  ;;  %v3191_v50 = vrot.slane %v6101_v36, %v5281_v6  ;;  %4716 = vmatprep.subr.bf16.mxu1 %v4715_v56  ;;  %vm3051_vm0 = vcmp.eq.s32.totalorder %v5908_v55, %v6462_v48  ;;  %vm3058_vm2 = vcmp.eq.s32.totalorder %v5916_v60, %v6462_v48 }
 0x765   :  { %v3079_v33 = vrot.slane %v7520_v51, %v5281_v6  ;;  %3621 = vmatprep.mubr.f32.mxu1 %v4780_v52  ;;  %vm3148_vm4 = vcmp.eq.s32.totalorder %v5278_v5, %v3135_v24  ;;  %vm3155_vm5 = vcmp.eq.s32.totalorder %v5905_v54, %v3135_v24  ;;  %v3107_v63 = vsel %vm3051_vm0, %v3083_v37, 0.0 }
 0x766   :  { %v4725_v36 = vpack.c.bf16 %v3241_v61, %v3234_v22  ;;  %v3204_v21 = vsel %vm3148_vm4, %v3191_v50, 0.0  ;;  %v3211_v4 = vsel %vm3155_vm5, %v3191_v50, 0.0  ;;  %v3114_v49 = vsel %vm3058_vm2, %v3083_v37, 0.0  ;;  %4126 = vmatmul.mubr.msk.f32.gmra.mrb[72].mxu0 %vm2459_vm8, %v6519_v59 }
 0x767   :  { %v3092_v34 = vsel %vm3036_vm14, %v3079_v33, 0.0  ;;  %v3099_v53 = vsel %vm3043_vm15, %v3079_v33, 0.0  ;;  %vm3163_vm6 = vcmp.eq.s32.totalorder %v5908_v55, %v3139_v39  ;;  %vm3170_vm7 = vcmp.eq.s32.totalorder %v5916_v60, %v3139_v39  ;;  %4121 = vmatmul.mubr.msk.f32.gmra.mrb[70].mxu1 %vm2459_vm8, %v6548_v43  ;;  %3710 = vmatprep.mubr.f32.mxu0 %v4780_v52 }
 0x768   :  { %4726 = vmatprep.subr.bf16.mxu0 %v4725_v36  ;;  %v3232_v23 = vadd.f32 %v3204_v21, %v3092_v34  ;;  %v3239_v28 = vadd.f32 %v3211_v4, %v3099_v53  ;;  %v3219_v38 = vsel %vm3163_vm6, %v3195_v16, 0.0  ;;  %v3226_v3 = vsel %vm3170_vm7, %v3195_v16, 0.0  ;;  %3627 = vmatprep.mubr.f32.mxu1 %v4780_v52 }
 0x769   :  { %v3247_v2 = vadd.f32 %v3219_v38, %v3107_v63  ;;  %vm3050_vm9 = vcmp.eq.s32.totalorder %v5908_v55, %v3023_v41  ;;  %vm3057_vm10 = vcmp.eq.s32.totalorder %v5916_v60, %v3023_v41  ;;  %4728 = vmatpush3.bf16.msra.mxu0 %v4725_v36  ;;  %v3254_v35 = vadd.f32 %v3226_v3, %v3114_v49 }
 0x76a   :  { %v4717_v48 = vpack.c.bf16 %v3239_v28, %v3232_v23  ;;  %v3106_v0 = vsel %vm3050_vm9, %v3079_v33, 0.0  ;;  %v3113_v25 = vsel %vm3057_vm10, %v3079_v33, 0.0  ;;  %vm3162_vm11 = vcmp.eq.s32.totalorder %v5908_v55, %v3135_v24  ;;  %4127 = vmatmul.mubr.msk.f32.gmra.mrb[74].mxu0 %vm2459_vm8, %v6548_v43 }
 0x76b   :  { %vm3169_vm12 = vcmp.eq.s32.totalorder %v5916_v60, %v3135_v24  ;;  %vm3052_vm13 = vcmp.eq.s32.totalorder %v5908_v55, %v6486_v27  ;;  %v4719_v37 = vpack.c.bf16 %v3254_v35, %v3247_v2  ;;  %v3218_v18 = vsel %vm3162_vm11, %v3191_v50, 0.0  ;;  %3716 = vmatprep.mubr.f32.mxu0 %v4780_v52  ;;  %4122 = vmatmul.mubr.msk.f32.gmra.mrb[72].mxu1 %vm2459_vm8, %v3511_v20 }
 0x76c   :  { %4718 = vmatpush1.bf16.msra.mxu1 %v4717_v48  ;;  %v3225_v44 = vsel %vm3169_vm12, %v3191_v50, 0.0  ;;  %vm3059_vm14 = vcmp.eq.s32.totalorder %v5916_v60, %v6486_v27  ;;  %v3246_v58 = vadd.f32 %v3218_v18, %v3106_v0  ;;  %vm3164_vm15 = vcmp.eq.s32.totalorder %v5908_v55, %v6495_v45  ;;  %3787 = vmatprep.mubr.f32.mxu1 %v4780_v52 }
 0x76d   :  { %v3253_v14 = vadd.f32 %v3225_v44, %v3113_v25  ;;  %4721 = vmatprep.subr.msk.bf16.mxu1 %vm6060_vm1, %v4719_v37  ;;  %v3108_v39 = vsel %vm3052_vm13, %v6491_v40, 0.0  ;;  %vm3171_vm0 = vcmp.eq.s32.totalorder %v5916_v60, %v6495_v45  ;;  %v3220_v16 = vsel %vm3164_vm15, %v6501_v57, 0.0 }
 0x76e   :  { %v3115_v27 = vsel %vm3059_vm14, %v6491_v40, 0.0  ;;  %v3227_v13 = vsel %vm3171_vm0, %v6501_v57, 0.0  ;;  %v3248_v41 = vadd.f32 %v3220_v16, %v3108_v39  ;;  %4128 = vmatmul.mubr.msk.f32.gmra.mrb[76].mxu0 %vm2459_vm8, %v3511_v20  ;;  %v1831_v40 = vadd.f32 %v1827_v1, %v5883_v12 }
 0x76f   :  { %v4722_v10 = vpack.c.bf16 %v3253_v14, %v3246_v58  ;;  %v3255_v17 = vadd.f32 %v3227_v13, %v3115_v27  ;;  %4345 = vmatprep.mubr.msk.f32.mxu0 %vm2459_vm8, %v6482_v62  ;;  %v1830_v7 = vadd.f32 %v1827_v1, %v5879_v19  ;;  %v1832_v26 = vadd.f32 %v1827_v1, %v5885_v29 }
 0x770   :  { %v1859_v47 = vadd.f32 1.0, %v1831_v40  ;;  %v1833_v51 = vadd.f32 %v1827_v1, %v5887_v30  ;;  %v1834_v33 = vadd.f32 %v1827_v1, %v5889_v31 }
 0x771   :  { %4724 = vmatpush1.bf16.msk.msra.mxu1 %vm6060_vm1, %v4722_v10  ;;  %v4729_v45 = vpack.c.bf16 %v3255_v17, %v3248_v41  ;;  %v1858_v42 = vadd.f32 1.0, %v1830_v7  ;;  %v1860_v46 = vadd.f32 1.0, %v1832_v26 }
 0x772   :  { %v1861_v24 = vadd.f32 1.0, %v1833_v51  ;;  %v1862_v50 = vadd.f32 1.0, %v1834_v33 }
 0x773   :  { %4731 = vmatprep.subr.msk.bf16.mxu0 %vm6060_vm1, %v4729_v45  ;;  %v1865_v9 = vmul.f32 14.0, %v1858_v42  ;;  %v1867_v22 = vmul.f32 14.0, %v1860_v46 }
 0x774   :  { %4131 = vmatmul.mubr.msk.f32.vlgmr.msra.gmra.mrb[74].mxu1 %vm2459_vm8, %v6482_v62  ;;  %4734 = vmatpush3.bf16.msk.msra.mxu0 %vm6060_vm1, %v4729_v45  ;;  %v1829_v62 = vadd.f32 %v1827_v1, %v5876_v11  ;;  %v1835_v11 = vadd.f32 %v1827_v1, %v5891_v32  ;;  %v1868_v63 = vmul.f32 14.0, %v1861_v24  ;;  %v1869_v21 = vmul.f32 14.0, %v1862_v50 }
 0x775   :  { %3793 = vmatprep.mubr.f32.mxu1 %v4780_v52  ;;  %v4088_v61 = vadd.f32 -0.5, %v1865_v9  ;;  %v4090_v53 = vadd.f32 -0.5, %v1867_v22 }
 0x776   :  { %v1857_v57 = vadd.f32 1.0, %v1829_v62  ;;  %v1863_v34 = vadd.f32 1.0, %v1835_v11  ;;  %v4091_v32 = vadd.f32 -0.5, %v1868_v63  ;;  %v4092_v28 = vadd.f32 -0.5, %v1869_v21 }
 0x777   :  { %4346 = vmatmul.mubr.msk.f32.vlgmr.msra.gmra.mrb[78].mxu0 %vm2459_vm8, %v6519_v59  ;;  %v1888_v30 = vfloor.f32 %v4090_v53 }
 0x778   :  { %4132 = vmatmul.mubr.msk.f32.gmra.mrb[76].mxu1 %vm2459_vm8, %v6519_v59  ;;  %4348 = vmatprep.mubr.msk.f32.mxu0 %vm2459_vm8, %v6548_v43  ;;  %v1864_v15 = vmul.f32 14.0, %v1857_v57  ;;  %v1866_v59 = vmul.f32 14.0, %v1859_v47  ;;  %v1870_v4 = vmul.f32 14.0, %v1863_v34  ;;  %v1890_v25 = vfloor.f32 %v4092_v28 }
 0x779   :  { %3799 = vmatprep.mubr.f32.mxu1 %v4780_v52  ;;  %v4755_v48 = vtrunc.f32 %v1888_v30  ;;  %v6640_v14 = vsub.f32 %v4090_v53, %v1888_v30 }
 0x77a   :  { %v4087_v56 = vadd.f32 -0.5, %v1864_v15  ;;  %v4093_v38 = vadd.f32 -0.5, %v1870_v4  ;;  %v6658_v17 = vsub.f32 %v4092_v28, %v1890_v25  ;;  %v6674_v47 = vtrunc.f32 %v1890_v25 }
 0x77b   :  { %4349 = vmatmul.mubr.msk.f32.gmra.mrb[80].mxu0 %vm2459_vm8, %v3511_v20  ;;  %v6654_v13 = vcvt.f32.s32 %v4755_v48  ;;  %v7500_v33 = vsub.f32 1.0, %v6640_v14 }
 0x77c   :  { %4133 = vmatmul.mubr.msk.f32.gmra.mrb[78].mxu1 %vm2459_vm8, %v6548_v43  ;;  %v1885_v12 = vfloor.f32 %v4087_v56  ;;  %v1886_v43 = vfloor.f32 %v4088_v61  ;;  %v1891_v44 = vfloor.f32 %v4093_v38  ;;  %7521 = vst [vmem:[#allocation2_spill] sm:$0xff] %v6658_v17 }
 0x77d   :  { %3805 = vmatprep.mubr.f32.mxu1 %v4780_v52  ;;  %v4089_v52 = vadd.f32 -0.5, %v1866_v59  ;;  %v6694_v59 = vadd.s32 1, %v6654_v13  ;;  %v6747_v53 = vrot.slane %v7500_v33, %v5287_v8 }
 0x77e   :  { %v4749_v29 = vtrunc.f32 %v1885_v12  ;;  %v4751_v31 = vtrunc.f32 %v1886_v43  ;;  %v6625_v2 = vsub.f32 %v4087_v56, %v1885_v12  ;;  %v6632_v37 = vsub.f32 %v4088_v61, %v1886_v43 }
 0x77f   :  { %v1887_v19 = vfloor.f32 %v4089_v52  ;;  %v6662_v62 = vsub.f32 %v4093_v38, %v1891_v44  ;;  %v4761_v51 = vtrunc.f32 %v1891_v44  ;;  %v6724_v61 = vrot.slane %v6654_v13, %v5287_v8 }
 0x780   :  { %4134 = vmatmul.mubr.msk.f32.gmra.mrb[80].mxu1 %vm2459_vm8, %v3511_v20  ;;  %v6618_v49 = vcvt.f32.s32 %v4749_v29  ;;  %v6630_v0 = vcvt.f32.s32 %v4751_v31  ;;  %v1889_v20 = vfloor.f32 %v4091_v32  ;;  %v7503_v39 = vsub.f32 1.0, %v6625_v2 }
 0x781   :  { %v4753_v36 = vtrunc.f32 %v1887_v19  ;;  %v6634_v18 = vsub.f32 %v4089_v52, %v1887_v19  ;;  %v7502_v1 = vsub.f32 1.0, %v6632_v37  ;;  %7522 = vst [vmem:[#allocation3_spill] sm:$0xff] %v6662_v62  ;;  %v6683_v26 = vrot.slane %v6625_v2, %v5287_v8 }
 0x782   :  { %v6623_v3 = vadd.s32 1, %v6618_v49  ;;  %v6645_v16 = vrot.slane %v6618_v49, %v5287_v8  ;;  %v6652_v27 = vadd.s32 1, %v6630_v0  ;;  %v6656_v41 = vsub.f32 %v4091_v32, %v1889_v20 }
 0x783   :  { %v6620_v23 = vcvt.f32.s32 %v4753_v36  ;;  %v7501_v45 = vsub.f32 1.0, %v6634_v18  ;;  %v6672_v57 = vrot.slane %v6630_v0, %v5287_v8  ;;  %v4757_v7 = vtrunc.f32 %v1889_v20 }
 0x784   :  { %v6638_v58 = vrot.slane %v6623_v3, %v5287_v8  ;;  %v6679_v15 = vrot.slane %v7503_v39, %v5287_v8  ;;  %vm2217_vm8 = vcmp.eq.s32.totalorder %v5278_v5, %v6645_v16  ;;  %v6691_v42 = vrot.slane %v6652_v27, %v5287_v8 }
 0x785   :  { %v6628_v35 = vadd.s32 1, %v6620_v23  ;;  %v6668_v40 = vrot.slane %v6620_v23, %v5287_v8  ;;  %v6700_v46 = vrot.slane %v7501_v45, %v5287_v8  ;;  %v6704_v9 = vrot.slane %v6634_v18, %v5287_v8 }
 0x786   :  { %vm2343_vm1 = vcmp.eq.s32.totalorder %v5278_v5, %v6638_v58  ;;  %v6709_v52 = vrot.slane %v7502_v1, %v5287_v8  ;;  %vm2218_vm5 = vcmp.eq.s32.totalorder %v5278_v5, %v6672_v57  ;;  %v2280_v11 = vsel %vm2217_vm8, %v6679_v15, 0.0 }
 0x787   :  { %v6649_v10 = vrot.slane %v6628_v35, %v5287_v8  ;;  %v2399_v56 = vsel %vm2343_vm1, %v6683_v26, 0.0  ;;  %vm2219_vm4 = vcmp.eq.s32.totalorder %v5278_v5, %v6668_v40  ;;  %v6720_v22 = vrot.slane %v6632_v37, %v5287_v8 }
 0x788   :  { %v6726_v19 = vadd.f32 %v2399_v56, %v2280_v11  ;;  %vm2344_vm6 = vcmp.eq.s32.totalorder %v5278_v5, %v6691_v42  ;;  %v6732_v24 = vrot.slane %v6694_v59, %v5287_v8  ;;  %vm2350_vm7 = vcmp.eq.s32.totalorder %v5905_v54, %v6638_v58 }
 0x789   :  { %vm2345_vm2 = vcmp.eq.s32.totalorder %v5278_v5, %v6649_v10  ;;  %v2282_v50 = vsel %vm2219_vm4, %v6700_v46, 0.0  ;;  %v2281_v34 = vsel %vm2218_vm5, %v6709_v52, 0.0  ;;  %vm2224_vm9 = vcmp.eq.s32.totalorder %v5905_v54, %v6645_v16 }
 0x78a   :  { %v2401_v12 = vsel %vm2345_vm2, %v6704_v9, 0.0  ;;  %vm2352_vm10 = vcmp.eq.s32.totalorder %v5905_v54, %v6649_v10  ;;  %v6751_v43 = vrot.slane %v6640_v14, %v5287_v8  ;;  %vm2351_vm11 = vcmp.eq.s32.totalorder %v5905_v54, %v6691_v42 }
 0x78b   :  { %v6742_v29 = vadd.f32 %v2401_v12, %v2282_v50  ;;  %v2400_v36 = vsel %vm2344_vm6, %v6720_v22, 0.0  ;;  %vm2220_vm12 = vcmp.eq.s32.totalorder %v5278_v5, %v6724_v61  ;;  %v2406_v63 = vsel %vm2350_vm7, %v6683_v26, 0.0 }
 0x78c   :  { %vm2226_vm13 = vcmp.eq.s32.totalorder %v5905_v54, %v6668_v40  ;;  %vm2346_vm14 = vcmp.eq.s32.totalorder %v5278_v5, %v6732_v24  ;;  %v2287_v21 = vsel %vm2224_vm9, %v6679_v15, 0.0  ;;  %v2408_v4 = vsel %vm2352_vm10, %v6704_v9, 0.0 }
 0x78d   :  { %vm2225_vm15 = vcmp.eq.s32.totalorder %v5905_v54, %v6672_v57  ;;  %v2407_v30 = vsel %vm2351_vm11, %v6720_v22, 0.0  ;;  %vm2227_vm0 = vcmp.eq.s32.totalorder %v5905_v54, %v6724_v61  ;;  %vm2353_vm1 = vcmp.eq.s32.totalorder %v5905_v54, %v6732_v24 }
 0x78e   :  { %vm2357_vm8 = vcmp.eq.s32.totalorder %v5908_v55, %v6638_v58  ;;  %v6774_v31 = vadd.f32 %v2400_v36, %v2281_v34  ;;  %v2283_v32 = vsel %vm2220_vm12, %v6747_v53, 0.0  ;;  %v6777_v28 = vadd.f32 %v2406_v63, %v2287_v21 }
 0x78f   :  { %v2289_v38 = vsel %vm2226_vm13, %v6700_v46, 0.0  ;;  %v2402_v48 = vsel %vm2346_vm14, %v6751_v43, 0.0  ;;  %v2288_v25 = vsel %vm2225_vm15, %v6709_v52, 0.0  ;;  %vm2231_vm2 = vcmp.eq.s32.totalorder %v5908_v55, %v6645_v16 }
 0x790   :  { %v6781_v20 = vadd.f32 %v2408_v4, %v2289_v38  ;;  %v6786_v44 = vadd.f32 %v2407_v30, %v2288_v25  ;;  %v2290_v56 = vsel %vm2227_vm0, %v6747_v53, 0.0  ;;  %v2409_v11 = vsel %vm2353_vm1, %v6751_v43, 0.0 }
 0x791   :  { %v2413_v12 = vsel %vm2357_vm8, %v6683_v26, 0.0  ;;  %vm2233_vm4 = vcmp.eq.s32.totalorder %v5908_v55, %v6668_v40  ;;  %vm2359_vm5 = vcmp.eq.s32.totalorder %v5908_v55, %v6649_v10  ;;  %vm2358_vm6 = vcmp.eq.s32.totalorder %v5908_v55, %v6691_v42 }
 0x792   :  { %v6797_v50 = vcvt.f32.s32 %v4757_v7  ;;  %v6799_v34 = vadd.f32 %v2402_v48, %v2283_v32  ;;  %v2294_v36 = vsel %vm2231_vm2, %v6679_v15, 0.0  ;;  %vm2360_vm7 = vcmp.eq.s32.totalorder %v5908_v55, %v6732_v24 }
 0x793   :  { %v6804_v63 = vcvt.f32.s32 %v4761_v51  ;;  %v6806_v21 = vadd.f32 %v2409_v11, %v2290_v56  ;;  %v6808_v4 = vadd.f32 %v2413_v12, %v2294_v36  ;;  %vm2232_vm9 = vcmp.eq.s32.totalorder %v5908_v55, %v6672_v57 }
 0x794   :  { %vm2364_vm10 = vcmp.eq.s32.totalorder %v5916_v60, %v6638_v58  ;;  %v2296_v7 = vsel %vm2233_vm4, %v6700_v46, 0.0  ;;  %v2415_v30 = vsel %vm2359_vm5, %v6704_v9, 0.0  ;;  %v2414_v32 = vsel %vm2358_vm6, %v6720_v22, 0.0 }
 0x795   :  { %7523 = vst [vmem:[#allocation4_spill] sm:$0xff] %v6804_v63  ;;  %vm2234_vm11 = vcmp.eq.s32.totalorder %v5908_v55, %v6724_v61  ;;  %v2416_v51 = vsel %vm2360_vm7, %v6751_v43, 0.0  ;;  %vm2238_vm12 = vcmp.eq.s32.totalorder %v5916_v60, %v6645_v16  ;;  %v6823_v38 = vadd.s32 1, %v6797_v50 }
 0x796   :  { %v6826_v48 = vcvt.f32.s32 %v6674_v47  ;;  %v2295_v58 = vsel %vm2232_vm9, %v6709_v52, 0.0  ;;  %v2420_v25 = vsel %vm2364_vm10, %v6683_v26, 0.0  ;;  %vm2366_vm13 = vcmp.eq.s32.totalorder %v5916_v60, %v6649_v10 }
 0x797   :  { %v6833_v56 = vadd.s32 1, %v6804_v63  ;;  %v6835_v11 = vadd.f32 %v2415_v30, %v2296_v7  ;;  %v6837_v12 = vadd.f32 %v2414_v32, %v2295_v58  ;;  %v2297_v16 = vsel %vm2234_vm11, %v6747_v53, 0.0 }
 0x798   :  { %7524 = vst [vmem:[#allocation5_spill] sm:$0xff] %v6826_v48  ;;  %vm2240_vm14 = vcmp.eq.s32.totalorder %v5916_v60, %v6668_v40  ;;  %v6842_v47 = vadd.f32 %v2416_v51, %v2297_v16  ;;  %v2301_v36 = vsel %vm2238_vm12, %v6679_v15, 0.0  ;;  %vm2239_vm15 = vcmp.eq.s32.totalorder %v5916_v60, %v6672_v57 }
 0x799   :  { %7525 = vst [vmem:[#allocation6_spill] sm:$0xff] %v6833_v56  ;;  %vm2365_vm0 = vcmp.eq.s32.totalorder %v5916_v60, %v6691_v42  ;;  %v6849_v10 = vadd.f32 %v2420_v25, %v2301_v36  ;;  %v2422_v26 = vsel %vm2366_vm13, %v6704_v9, 0.0  ;;  %v6854_v7 = vrot.slane %v6823_v38, %v5287_v8 }
 0x79a   :  { %v6857_v40 = vadd.s32 1, %v6826_v48  ;;  %v2303_v30 = vsel %vm2240_vm14, %v6700_v46, 0.0  ;;  %vm2241_vm1 = vcmp.eq.s32.totalorder %v5916_v60, %v6724_v61  ;;  %v7498_v57 = vsub.f32 1.0, %v6656_v41 }
 0x79b   :  { %v2342_v15 = vrot.slane %v6833_v56, %v5287_v8  ;;  %v2302_v42 = vsel %vm2239_vm15, %v6709_v52, 0.0  ;;  %v2421_v9 = vsel %vm2365_vm0, %v6720_v22, 0.0  ;;  %v6869_v32 = vrot.slane %v6797_v50, %v5287_v8 }
 0x79c   :  { %7526 = vst [vmem:[#allocation7_spill] sm:$0xff] %v6857_v40  ;;  %v7497_v51 = vsub.f32 1.0, %v6662_v62  ;;  %v6872_v58 = vadd.f32 %v2422_v26, %v2303_v30  ;;  %vm2367_vm8 = vcmp.eq.s32.totalorder %v5916_v60, %v6732_v24  ;;  %v2216_v46 = vrot.slane %v6804_v63, %v5287_v8 }
 0x79d   :  { %v7499_v61 = vsub.f32 1.0, %v6658_v17  ;;  %v2304_v52 = vsel %vm2241_vm1, %v6747_v53, 0.0  ;;  %vm2347_vm2 = vcmp.eq.s32.totalorder %v5278_v5, %v6854_v7  ;;  %v6884_v22 = vrot.slane %v6826_v48, %v5287_v8 }
 0x79e   :  { %v6888_v25 = vrot.slane %v6857_v40, %v5287_v8  ;;  %v6890_v16 = vadd.f32 %v2421_v9, %v2302_v42  ;;  %v6895_v24 = vrot.slane %v7498_v57, %v5287_v8  ;;  %v6899_v53 = vrot.slane %v6656_v41, %v5287_v8 }
 0x79f   :  { %vm2356_vm4 = vcmp.eq.s32.totalorder %v5905_v54, %v2342_v15  ;;  %v2423_v36 = vsel %vm2367_vm8, %v6751_v43, 0.0  ;;  %vm2221_vm5 = vcmp.eq.s32.totalorder %v5278_v5, %v6869_v32  ;;  %v2279_v26 = vrot.slane %v7497_v51, %v5287_v8 }
 0x7a0   :  { %v2398_v30 = vrot.slane %v6662_v62, %v5287_v8  ;;  %v2403_v42 = vsel %vm2347_vm2, %v6899_v53, 0.0  ;;  %vm2230_vm6 = vcmp.eq.s32.totalorder %v5905_v54, %v2216_v46  ;;  %v6915_v9 = vrot.slane %v7499_v61, %v5287_v8 }
 0x7a1   :  { %vm2349_vm7 = vcmp.eq.s32.totalorder %v5278_v5, %v2342_v15  ;;  %vm2222_vm9 = vcmp.eq.s32.totalorder %v5278_v5, %v6884_v22  ;;  %vm2348_vm10 = vcmp.eq.s32.totalorder %v5278_v5, %v6888_v25  ;;  %vm2354_vm11 = vcmp.eq.s32.totalorder %v5905_v54, %v6854_v7 }
 0x7a2   :  { %v2412_v43 = vsel %vm2356_vm4, %v2398_v30, 0.0  ;;  %v2284_v51 = vsel %vm2221_vm5, %v6895_v24, 0.0  ;;  %v6927_v57 = vrot.slane %v6658_v17, %v5287_v8  ;;  %vm2223_vm12 = vcmp.eq.s32.totalorder %v5278_v5, %v2216_v46 }
 0x7a3   :  { %vm2228_vm13 = vcmp.eq.s32.totalorder %v5905_v54, %v6869_v32  ;;  %v6932_v61 = vadd.f32 %v2423_v36, %v2304_v52  ;;  %v6934_v33 = vadd.f32 %v2403_v42, %v2284_v51  ;;  %v2293_v45 = vsel %vm2230_vm6, %v2279_v26, 0.0 }
 0x7a4   :  { %v2405_v1 = vsel %vm2349_vm7, %v2398_v30, 0.0  ;;  %v6936_v39 = vadd.f32 %v2412_v43, %v2293_v45  ;;  %v2285_v62 = vsel %vm2222_vm9, %v6915_v9, 0.0  ;;  %v2404_v56 = vsel %vm2348_vm10, %v6927_v57, 0.0 }
 0x7a5   :  { %v2410_v8 = vsel %vm2354_vm11, %v6899_v53, 0.0  ;;  %v2286_v63 = vsel %vm2223_vm12, %v2279_v26, 0.0  ;;  %v2291_v17 = vsel %vm2228_vm13, %v6895_v24, 0.0  ;;  %vm2370_vm14 = vcmp.eq.s32.totalorder %v5916_v60, %v2342_v15 }
 0x7a6   :  { %vm2355_vm15 = vcmp.eq.s32.totalorder %v5905_v54, %v6888_v25  ;;  %v6945_v51 = vadd.f32 %v2405_v1, %v2286_v63  ;;  %vm2244_vm0 = vcmp.eq.s32.totalorder %v5916_v60, %v2216_v46  ;;  %vm2363_vm1 = vcmp.eq.s32.totalorder %v5908_v55, %v2342_v15 }
 0x7a7   :  { %v6951_v45 = vrot.slane %v6618_v49, %v5281_v6  ;;  %v6953_v52 = vadd.f32 %v2404_v56, %v2285_v62  ;;  %v6955_v36 = vadd.f32 %v2410_v8, %v2291_v17  ;;  %vm2229_vm8 = vcmp.eq.s32.totalorder %v5905_v54, %v6884_v22 }
 0x7a8   :  { %vm2361_vm2 = vcmp.eq.s32.totalorder %v5908_v55, %v6854_v7  ;;  %v2426_v1 = vsel %vm2370_vm14, %v2398_v30, 0.0  ;;  %v2411_v63 = vsel %vm2355_vm15, %v6927_v57, 0.0  ;;  %vm2237_vm4 = vcmp.eq.s32.totalorder %v5908_v55, %v2216_v46 }
 0x7a9   :  { %v6965_v15 = vrot.slane %v6623_v3, %v5281_v6  ;;  %v2307_v49 = vsel %vm2244_vm0, %v2279_v26, 0.0  ;;  %v2419_v62 = vsel %vm2363_vm1, %v2398_v30, 0.0  ;;  %vm2235_vm5 = vcmp.eq.s32.totalorder %v5908_v55, %v6869_v32 }
 0x7aa   :  { %v7527_v17 = vsub.f32 1.0, %v6625_v2  ;;  %v2292_v42 = vsel %vm2229_vm8, %v6915_v9, 0.0  ;;  %v2417_v43 = vsel %vm2361_vm2, %v6899_v53, 0.0  ;;  %vm3284_vm6 = vcmp.eq.s32.totalorder %v5278_v5, %v6951_v45 }
 0x7ab   :  { %v6980_v3 = vrot.slane %v6652_v27, %v5281_v6  ;;  %v6982_v46 = vadd.f32 %v2426_v1, %v2307_v49  ;;  %v6984_v30 = vadd.f32 %v2411_v63, %v2292_v42  ;;  %v2300_v8 = vsel %vm2237_vm4, %v2279_v26, 0.0 }
 0x7ac   :  { %v6972_v56 = vrot.slane %v7527_v17, %v5281_v6  ;;  %vm2362_vm7 = vcmp.eq.s32.totalorder %v5908_v55, %v6888_v25  ;;  %v6988_v17 = vadd.f32 %v2419_v62, %v2300_v8  ;;  %v2298_v40 = vsel %vm2235_vm5, %v6895_v24, 0.0 }
 0x7ad   :  { %vm3396_vm9 = vcmp.eq.s32.totalorder %v5278_v5, %v6965_v15  ;;  %v6995_v48 = vrot.slane %v6630_v0, %v5281_v6  ;;  %v6997_v27 = vadd.f32 %v2417_v43, %v2298_v40  ;;  %v7002_v26 = vrot.slane %v6625_v2, %v5281_v6 }
 0x7ae   :  { %v3340_v1 = vsel %vm3284_vm6, %v6972_v56, 0.0  ;;  %vm2236_vm10 = vcmp.eq.s32.totalorder %v5908_v55, %v6884_v22  ;;  %v2418_v63 = vsel %vm2362_vm7, %v6927_v57, 0.0  ;;  %vm3397_vm11 = vcmp.eq.s32.totalorder %v5278_v5, %v6980_v3 }
 0x7af   :  { %7528 = vst [vmem:[#allocation8_spill] sm:$0xff] %v6997_v27  ;;  %vm2368_vm12 = vcmp.eq.s32.totalorder %v5916_v60, %v6854_v7  ;;  %v3452_v0 = vsel %vm3396_vm9, %v7002_v26, 0.0  ;;  %v7529_v40 = vsub.f32 1.0, %v6632_v37  ;;  %v7019_v2 = vrot.slane %v6632_v37, %v5281_v6 }
 0x7b0   :  { %vm2242_vm13 = vcmp.eq.s32.totalorder %v5916_v60, %v6869_v32  ;;  %v2299_v62 = vsel %vm2236_vm10, %v6915_v9, 0.0  ;;  %vm3285_vm14 = vcmp.eq.s32.totalorder %v5278_v5, %v6995_v48  ;;  %vm3403_vm15 = vcmp.eq.s32.totalorder %v5905_v54, %v6965_v15 }
 0x7b1   :  { %v7015_v49 = vrot.slane %v7529_v40, %v5281_v6  ;;  %vm2369_vm0 = vcmp.eq.s32.totalorder %v5916_v60, %v6888_v25  ;;  %v4790_v7 = vmov 1966171168   ;;  %v3453_v43 = vsel %vm3397_vm11, %v7019_v2, 0.0 }
 0x7b2   :  { %v2954_v42 = vunpack.c.l.s4 %v4790_v7  ;;  %v2424_v37 = vsel %vm2368_vm12, %v6899_v53, 0.0  ;;  %vm3291_vm1 = vcmp.eq.s32.totalorder %v5905_v54, %v6951_v45  ;;  %v7034_v32 = vadd.f32 %v3452_v0, %v3340_v1 }
 0x7b3   :  { %v7036_v8 = vadd.f32 %v2418_v63, %v2299_v62  ;;  %v2305_v40 = vsel %vm2242_vm13, %v6895_v24, 0.0  ;;  %vm2243_vm8 = vcmp.eq.s32.totalorder %v5916_v60, %v6884_v22  ;;  %v3341_v25 = vsel %vm3285_vm14, %v7015_v49, 0.0 }
 0x7b4   :  { %7530 = vst [vmem:[#allocation9_spill] sm:$0xff] %v7034_v32  ;;  %v3459_v7 = vsel %vm3403_vm15, %v7002_v26, 0.0  ;;  %v2425_v27 = vsel %vm2369_vm0, %v6927_v57, 0.0  ;;  %vm3404_vm2 = vcmp.eq.s32.totalorder %v5905_v54, %v6980_v3  ;;  %v7046_v53 = vadd.f32 %v3453_v43, %v3341_v25 }
 0x7b5   :  { %v7048_v1 = vadd.f32 %v2424_v37, %v2305_v40  ;;  %v3347_v63 = vsel %vm3291_vm1, %v6972_v56, 0.0  ;;  %v7053_v24 = vrot.slane %v6620_v23, %v5281_v6  ;;  %v2955_v22 = vunpack.c.0.s8 %v2954_v42 }
 0x7b6   :  { %7531 = vst [vmem:[#allocation10_spill] sm:$0xff] %v7046_v53  ;;  %v2306_v0 = vsel %vm2243_vm8, %v6915_v9, 0.0  ;;  %vm3292_vm4 = vcmp.eq.s32.totalorder %v5905_v54, %v6995_v48  ;;  %vm3410_vm5 = vcmp.eq.s32.totalorder %v5908_v55, %v6965_v15  ;;  %v7060_v62 = vadd.f32 %v3459_v7, %v3347_v63 }
 0x7b7   :  { %7532 = vst [vmem:[#allocation11_spill] sm:$0xff] %v7048_v1  ;;  %v7062_v43 = vadd.f32 %v2425_v27, %v2306_v0  ;;  %v3460_v37 = vsel %vm3404_vm2, %v7019_v2, 0.0  ;;  %v7067_v23 = vrot.slane %v6628_v35, %v5281_v6  ;;  %vm3298_vm6 = vcmp.eq.s32.totalorder %v5908_v55, %v6951_v45 }
 0x7b8   :  { %7533 = vst [vmem:[#allocation12_spill] sm:$0xff] %v7060_v62  ;;  %v7535_v40 = vsub.f32 1.0, %v6634_v18  ;;  %vm3411_vm7 = vcmp.eq.s32.totalorder %v5908_v55, %v6980_v3  ;;  %v3348_v35 = vsel %vm3292_vm4, %v7015_v49, 0.0  ;;  %v3466_v63 = vsel %vm3410_vm5, %v7002_v26, 0.0 }
 0x7b9   :  { %7534 = vst [vmem:[#allocation13_spill] sm:$0xff] %v7062_v43  ;;  %vm3286_vm9 = vcmp.eq.s32.totalorder %v5278_v5, %v7053_v24  ;;  %vm3299_vm10 = vcmp.eq.s32.totalorder %v5908_v55, %v6995_v48  ;;  %v3354_v62 = vsel %vm3298_vm6, %v6972_v56, 0.0  ;;  %vm3398_vm11 = vcmp.eq.s32.totalorder %v5278_v5, %v7067_v23 }
 0x7ba   :  { %v7075_v25 = vrot.slane %v7535_v40, %v5281_v6  ;;  %v7088_v40 = vadd.f32 %v3460_v37, %v3348_v35  ;;  %v3467_v53 = vsel %vm3411_vm7, %v7019_v2, 0.0  ;;  %v7103_v35 = vrot.slane %v6634_v18, %v5281_v6 }
 0x7bb   :  { %v7109_v32 = vrot.slane %v6654_v13, %v5281_v6  ;;  %v7538_v13 = vsub.f32 1.0, %v6640_v14  ;;  %vm3417_vm12 = vcmp.eq.s32.totalorder %v5916_v60, %v6965_v15  ;;  %vm3305_vm13 = vcmp.eq.s32.totalorder %v5916_v60, %v6951_v45 }
 0x7bc   :  { %7536 = vst [vmem:[#allocation14_spill] sm:$0xff] %v7088_v40  ;;  %v3342_v37 = vsel %vm3286_vm9, %v7075_v25, 0.0  ;;  %v3355_v40 = vsel %vm3299_vm10, %v7015_v49, 0.0  ;;  %v3454_v18 = vsel %vm3398_vm11, %v7103_v35, 0.0  ;;  %vm3293_vm0 = vcmp.eq.s32.totalorder %v5905_v54, %v7053_v24 }
 0x7bd   :  { %v7123_v1 = vrot.slane %v7538_v13, %v5281_v6  ;;  %vm3287_vm14 = vcmp.eq.s32.totalorder %v5278_v5, %v7109_v32  ;;  %vm3405_vm1 = vcmp.eq.s32.totalorder %v5905_v54, %v7067_v23  ;;  %vm3306_vm8 = vcmp.eq.s32.totalorder %v5916_v60, %v6995_v48 }
 0x7be   :  { %vm3418_vm2 = vcmp.eq.s32.totalorder %v5916_v60, %v6980_v3  ;;  %vm3294_vm5 = vcmp.eq.s32.totalorder %v5905_v54, %v7109_v32  ;;  %vm3300_vm6 = vcmp.eq.s32.totalorder %v5908_v55, %v7053_v24  ;;  %vm3412_vm7 = vcmp.eq.s32.totalorder %v5908_v55, %v7067_v23 }
 0x7bf   :  { %v3474_v3 = vsel %vm3418_vm2, %v7019_v2, 0.0  ;;  %vm3301_vm10 = vcmp.eq.s32.totalorder %v5908_v55, %v7109_v32 }
 0x7ff   :  { %v2559_v57 = vpop.f32.mrb[54].mxu0 }
 0x800   :  { %v2845_v42 = vmul.f32 %v2559_v57, %v6726_v19  ;;  %v2561_v9 = vpop.f32.mrb[55].mxu0  ;;  %v7086_v57 = vsub.s32 %v2955_v22, %v5278_v5  ;;  %v7098_v22 = vadd.f32 %v3466_v63, %v3354_v62 }
 0x801   :  { %v2846_v7 = vmul.f32 %v2561_v9, %v6774_v31 }
 0x802   :  { %v2648_v27 = vpop.f32.mrb[54].mxu1  ;;  %7537 = vst [vmem:[#allocation15_spill] sm:$0xff] %v7098_v22  ;;  %v7117_v22 = vadd.f32 %v3467_v53, %v3355_v40  ;;  %v7130_v53 = vrot.slane %v6640_v14, %v5281_v6  ;;  %v3473_v14 = vsel %vm3417_vm12, %v7002_v26, 0.0 }
 0x803   :  { %v2847_v19 = vmul.f32 %v2648_v27, %v6742_v29  ;;  %v2650_v0 = vpop.f32.mrb[55].mxu1  ;;  %v2565_v9 = vpop.f32.mrb[56].mxu0 }
 0x804   :  { %v2848_v31 = vmul.f32 %v2650_v0, %v6799_v34  ;;  %v2852_v29 = vmul.f32 %v2565_v9, %v6777_v28  ;;  %v2567_v27 = vpop.f32.mrb[57].mxu0  ;;  %v7113_v28 = vrot.slane %v6694_v59, %v5281_v6 }
 0x805   :  { %v2853_v0 = vmul.f32 %v2567_v27, %v6786_v44 }
 0x806   :  { %v2654_v34 = vpop.f32.mrb[56].mxu1  ;;  %v2873_v62 = vadd.f32 %v2852_v29, %v2845_v42  ;;  %vm3399_vm15 = vcmp.eq.s32.totalorder %v5278_v5, %v7113_v28  ;;  %vm3406_vm4 = vcmp.eq.s32.totalorder %v5905_v54, %v7113_v28  ;;  %vm3413_vm12 = vcmp.eq.s32.totalorder %v5908_v55, %v7113_v28 }
 0x807   :  { %v2854_v63 = vmul.f32 %v2654_v34, %v6781_v20  ;;  %v2656_v9 = vpop.f32.mrb[57].mxu1  ;;  %v2883_v43 = vadd.f32 %v2853_v0, %v2846_v7  ;;  %v2571_v27 = vpop.f32.mrb[58].mxu0  ;;  %v3361_v34 = vsel %vm3305_vm13, %v6972_v56, 0.0  ;;  %vm3307_vm13 = vcmp.eq.s32.totalorder %v5916_v60, %v7053_v24 }
 0x808   :  { %v2855_v44 = vmul.f32 %v2656_v9, %v6806_v21  ;;  %v2859_v20 = vmul.f32 %v2571_v27, %v6808_v4  ;;  %v2573_v42 = vpop.f32.mrb[59].mxu0  ;;  %v3455_v9 = vsel %vm3399_vm15, %v7130_v53, 0.0  ;;  %vm3420_vm2 = vcmp.eq.s32.totalorder %v5916_v60, %v7113_v28 }
 0x809   :  { %v2893_v59 = vadd.f32 %v2854_v63, %v2847_v19  ;;  %v2860_v40 = vmul.f32 %v2573_v42, %v6837_v12  ;;  %v7144_v12 = vadd.f32 %v3454_v18, %v3342_v37 }
 0x80a   :  { %v2903_v21 = vadd.f32 %v2855_v44, %v2848_v31  ;;  %v2660_v7 = vpop.f32.mrb[58].mxu1  ;;  %v2874_v15 = vadd.f32 %v2873_v62, %v2859_v20 }
 0x80b   :  { %v2861_v4 = vmul.f32 %v2660_v7, %v6835_v11  ;;  %v2662_v19 = vpop.f32.mrb[59].mxu1  ;;  %v2884_v45 = vadd.f32 %v2883_v43, %v2860_v40  ;;  %v2577_v29 = vpop.f32.mrb[60].mxu0  ;;  %v3343_v11 = vsel %vm3287_vm14, %v7123_v1, 0.0  ;;  %v7151_v43 = vadd.f32 %v3473_v14, %v3361_v34 }
 0x80c   :  { %v2862_v31 = vmul.f32 %v2662_v19, %v6842_v47  ;;  %v2866_v63 = vmul.f32 %v2577_v29, %v6849_v10  ;;  %v2579_v62 = vpop.f32.mrb[61].mxu0  ;;  %v3349_v47 = vsel %vm3293_vm0, %v7075_v25, 0.0  ;;  %v3461_v7 = vsel %vm3405_vm1, %v7103_v35, 0.0 }
 0x80d   :  { %v2894_v0 = vadd.f32 %v2893_v59, %v2861_v4  ;;  %v2867_v27 = vmul.f32 %v2579_v62, %v6890_v16  ;;  %v7162_v59 = vadd.f32 %v3455_v9, %v3343_v11  ;;  %v3462_v14 = vsel %vm3406_vm4, %v7130_v53, 0.0 }
 0x80e   :  { %v2904_v26 = vadd.f32 %v2903_v21, %v2862_v31  ;;  %v2666_v44 = vpop.f32.mrb[60].mxu1  ;;  %v2875_v37 = vsel %vm952_vm3, %v2866_v63, 0.0  ;;  %v7176_v29 = vadd.f32 %v3461_v7, %v3349_v47  ;;  %v7190_v47 = vrot.slane %v6797_v50, %v5281_v6 }
 0x80f   :  { %v2868_v56 = vmul.f32 %v2666_v44, %v6872_v58  ;;  %v2668_v18 = vpop.f32.mrb[61].mxu1  ;;  %v2876_v10 = vadd.f32 %v2875_v37, %v2874_v15  ;;  %v2885_v13 = vsel %vm952_vm3, %v2867_v27, 0.0  ;;  %v3356_v27 = vsel %vm3300_vm6, %v7075_v25, 0.0 }
 0x810   :  { %v2869_v16 = vmul.f32 %v2668_v18, %v6932_v61  ;;  %v2886_v42 = vadd.f32 %v2885_v13, %v2884_v45  ;;  %v3362_v61 = vsel %vm3306_vm8, %v7015_v49, 0.0  ;;  %v3350_v49 = vsel %vm3294_vm5, %v7123_v1, 0.0 }
 0x811   :  { %v2895_v20 = vsel %vm952_vm3, %v2868_v56, 0.0  ;;  %v2877_v58 = vrot.slane %v2876_v10, 4  ;;  %v7183_v11 = vadd.f32 %v3474_v3, %v3362_v61  ;;  %v7185_v2 = vadd.f32 %v3462_v14, %v3350_v49 }
 0x812   :  { %v2896_v21 = vadd.f32 %v2895_v20, %v2894_v0  ;;  %v2905_v48 = vsel %vm952_vm3, %v2869_v16, 0.0  ;;  %v2887_v40 = vrot.slane %v2886_v42, 4  ;;  %v3468_v13 = vsel %vm3412_vm7, %v7103_v35, 0.0 }
 0x813   :  { %v2906_v15 = vadd.f32 %v2905_v48, %v2904_v26  ;;  %v2878_v4 = vadd.f32 %v2877_v58, %v2876_v10  ;;  %vm3288_vm9 = vcmp.eq.s32.totalorder %v5278_v5, %v7190_v47  ;;  %vm3419_vm0 = vcmp.eq.s32.totalorder %v5916_v60, %v7067_v23 }
 0x814   :  { %v2897_v19 = vrot.slane %v2896_v21, 4  ;;  %v2888_v45 = vadd.f32 %v2887_v40, %v2886_v42  ;;  %vm3295_vm1 = vcmp.eq.s32.totalorder %v5905_v54, %v7190_v47  ;;  %vm3308_vm4 = vcmp.eq.s32.totalorder %v5916_v60, %v7109_v32 }
 0x815   :  { %v2907_v31 = vrot.slane %v2906_v15, 4  ;;  %v2879_v34 = vrot.slane %v2878_v4, 2 }
 0x816   :  { %v2898_v0 = vadd.f32 %v2897_v19, %v2896_v21  ;;  %v2889_v63 = vrot.slane %v2888_v45, 2  ;;  %v7539_v21 = vsub.f32 1.0, %v6656_v41 }
 0x817   :  { %v2908_v62 = vadd.f32 %v2907_v31, %v2906_v15  ;;  %v2880_v9 = vadd.f32 %v2879_v34, %v2878_v4 }
 0x818   :  { %v2899_v26 = vrot.slane %v2898_v0, 2  ;;  %v4333_v44 = vpop.f32.mrb[62].mxu1  ;;  %v2890_v37 = vadd.f32 %v2889_v63, %v2888_v45  ;;  %v7198_v48 = vrot.slane %v7539_v21, %v5281_v6  ;;  %v7212_v63 = vadd.f32 %v3468_v13, %v3356_v27  ;;  %v7541_v13 = vld [vmem:[#allocation7_spill] sm:$0xff] }
 0x819   :  { %v2909_v56 = vrot.slane %v2908_v62, 2  ;;  %v2858_v18 = vmul.f32 %v4333_v44, %v6936_v39  ;;  %v2826_v10 = vpop.f32.mrb[63].mxu1  ;;  %v2881_v16 = vrot.slane %v2880_v9, 1  ;;  %v7203_v39 = vrot.slane %v6823_v38, %v5281_v6 }
 0x81a   :  { %v2900_v20 = vadd.f32 %v2899_v26, %v2898_v0  ;;  %v2737_v42 = vpop.f32.mrb[62].mxu0  ;;  %v2851_v58 = vmul.f32 %v2826_v10, %v6945_v51  ;;  %v2891_v7 = vrot.slane %v2890_v37, 1  ;;  %v7209_v0 = vrot.slane %v6656_v41, %v5281_v6  ;;  %v7540_v10 = vld [vmem:[#allocation5_spill] sm:$0xff] }
 0x81b   :  { %v2910_v50 = vadd.f32 %v2909_v56, %v2908_v62  ;;  %v2849_v40 = vmul.f32 %v2737_v42, %v6934_v33  ;;  %v2739_v15 = vpop.f32.mrb[63].mxu0  ;;  %v2882_v61 = vadd.f32 %v2881_v16, %v2880_v9  ;;  %vm3400_vm11 = vcmp.eq.s32.totalorder %v5278_v5, %v7203_v39  ;;  %v7542_v42 = vld [vmem:[#allocation8_spill] sm:$0xff] }
 0x81c   :  { %v2901_v4 = vrot.slane %v2900_v20, 1  ;;  %v2850_v19 = vmul.f32 %v2739_v15, %v6953_v52  ;;  %v2933_v3 = vadd.f32 %v2858_v18, %v2851_v58  ;;  %v4336_v51 = vpop.f32.mrb[64].mxu1  ;;  %v2892_v14 = vadd.f32 %v2891_v7, %v2890_v37 }
 0x81d   :  { %v2911_v45 = vrot.slane %v2910_v50, 1  ;;  %v2872_v31 = vmul.f32 %v4336_v51, %v6982_v46  ;;  %v2836_v34 = vpop.f32.mrb[65].mxu1  ;;  %v7234_v16 = vrot.slane %v7541_v13, %v5281_v6  ;;  %v3344_v7 = vsel %vm3288_vm9, %v7198_v48, 0.0  ;;  %v7543_v51 = vld [vmem:[#allocation2_spill] sm:$0xff] }
 0x81e   :  { %v2902_v33 = vadd.f32 %v2901_v4, %v2900_v20  ;;  %v2743_v49 = vpop.f32.mrb[64].mxu0  ;;  %v2865_v38 = vmul.f32 %v2836_v34, %v6988_v17  ;;  %v2950_v52 = vcombine.low %v2882_v61, %v2892_v14  ;;  %v3456_v61 = vsel %vm3400_vm11, %v7209_v0, 0.0 }
 0x81f   :  { %v2912_v62 = vadd.f32 %v2911_v45, %v2910_v50  ;;  %v2856_v9 = vmul.f32 %v2743_v49, %v6955_v36  ;;  %v2745_v26 = vpop.f32.mrb[65].mxu0  ;;  %v2935_v36 = vsel %vm952_vm3, %v2872_v31, 0.0  ;;  %v3357_v50 = vsel %vm3301_vm10, %v7123_v1, 0.0 }
 0x820   :  { %v2857_v41 = vmul.f32 %v2745_v26, %v6984_v30  ;;  %v2934_v46 = vadd.f32 %v2933_v3, %v2865_v38  ;;  %v7225_v17 = vrot.slane %v2950_v52, %v7086_v57  ;;  %v7230_v30 = vrot.slane %v7540_v10, %v5281_v6 }
 0x821   :  { %v2951_v44 = vcombine.low %v2902_v33, %v2912_v62  ;;  %v2913_v27 = vadd.f32 %v2856_v9, %v2849_v40  ;;  %v3469_v4 = vsel %vm3413_vm12, %v7130_v53, 0.0  ;;  %v7544_v14 = vsub.f32 1.0, %v7543_v51  ;;  %v7545_v33 = vld [vmem:[#allocation11_spill] sm:$0xff]  ;;  %v7546_v62 = vld [vmem:[#allocation13_spill] sm:$0xff] }
 0x822   :  { %v2923_v37 = vadd.f32 %v2857_v41, %v2850_v19  ;;  %v2936_v56 = vadd.f32 %v2935_v36, %v2934_v46  ;;  %v2749_v18 = vpop.f32.mrb[66].mxu0  ;;  %vm3289_vm14 = vcmp.eq.s32.totalorder %v5278_v5, %v7230_v30  ;;  %vm3401_vm15 = vcmp.eq.s32.totalorder %v5278_v5, %v7234_v16 }
 0x823   :  { %v7237_v20 = vrot.slane %v2951_v44, %v7086_v57  ;;  %v2863_v58 = vmul.f32 %v2749_v18, %v7542_v42  ;;  %v2751_v21 = vpop.f32.mrb[67].mxu0  ;;  %v7262_v45 = vrot.slane %v7544_v14, %v5281_v6  ;;  %v7273_v52 = vadd.f32 %v3469_v4, %v3357_v50 }
 0x824   :  { %v2937_v40 = vrot.slane %v2936_v56, 4  ;;  %v2864_v15 = vmul.f32 %v2751_v21, %v7036_v8  ;;  %v7277_v24 = vrot.slane %v7543_v51, %v5281_v6  ;;  %v7280_v26 = vadd.f32 %v3456_v61, %v3344_v7 }
 0x825   :  { %v2981_v19 = vcombine.low %v7225_v17, %v7237_v20  ;;  %v2914_v3 = vadd.f32 %v2913_v27, %v2863_v58  ;;  %v3363_v41 = vsel %vm3307_vm13, %v7075_v25, 0.0  ;;  %v3345_v46 = vsel %vm3289_vm14, %v7262_v45, 0.0 }
 0x826   :  { %v2924_v8 = vadd.f32 %v2923_v37, %v2864_v15  ;;  %v2755_v31 = vpop.f32.mrb[68].mxu0  ;;  %v2938_v34 = vadd.f32 %v2937_v40, %v2936_v56  ;;  %v3457_v44 = vsel %vm3401_vm15, %v7277_v24, 0.0  ;;  %v3475_v27 = vsel %vm3419_vm0, %v7103_v35, 0.0  ;;  %v7547_v15 = vld [vmem:[#allocation4_spill] sm:$0xff] }
 0x827   :  { %v2870_v49 = vmul.f32 %v2755_v31, %v7545_v33  ;;  %v2757_v38 = vpop.f32.mrb[69].mxu0  ;;  %vm3407_vm8 = vcmp.eq.s32.totalorder %v5905_v54, %v7203_v39  ;;  %vm3408_vm5 = vcmp.eq.s32.totalorder %v5905_v54, %v7234_v16  ;;  %v7298_v10 = vadd.f32 %v3457_v44, %v3345_v46 }
 0x828   :  { %v2871_v9 = vmul.f32 %v2757_v38, %v7546_v62  ;;  %v2939_v25 = vrot.slane %v2938_v34, 2  ;;  %v7300_v35 = vadd.f32 %v3475_v27, %v3363_v41  ;;  %v3351_v13 = vsel %vm3295_vm1, %v7198_v48, 0.0 }
 0x829   :  { %v2915_v23 = vsel %vm952_vm3, %v2870_v49, 0.0  ;;  %v3463_v28 = vsel %vm3407_vm8, %v7209_v0, 0.0  ;;  %v3476_v58 = vsel %vm3420_vm2, %v7130_v53, 0.0  ;;  %vm3296_vm6 = vcmp.eq.s32.totalorder %v5905_v54, %v7230_v30  ;;  %v7549_v49 = vld [vmem:[#allocation9_spill] sm:$0xff] }
 0x82a   :  { %v2916_v36 = vadd.f32 %v2915_v23, %v2914_v3  ;;  %v2925_v37 = vsel %vm952_vm3, %v2871_v9, 0.0  ;;  %v3364_v21 = vsel %vm3308_vm4, %v7123_v1, 0.0  ;;  %v3464_v7 = vsel %vm3408_vm5, %v7277_v24, 0.0  ;;  %v7550_v23 = vld [vmem:[#allocation3_spill] sm:$0xff] }
 0x82b   :  { %v2926_v56 = vadd.f32 %v2925_v37, %v2924_v8  ;;  %vm3414_vm7 = vcmp.eq.s32.totalorder %v5908_v55, %v7203_v39  ;;  %v2940_v50 = vadd.f32 %v2939_v25, %v2938_v34  ;;  %vm3302_vm9 = vcmp.eq.s32.totalorder %v5908_v55, %v7190_v47  ;;  %v7548_v34 = vld [vmem:[#allocation6_spill] sm:$0xff] }
 0x82c   :  { %v2917_v18 = vrot.slane %v2916_v36, 4  ;;  %v7318_v61 = vrot.slane %v7547_v15, %v5281_v6  ;;  %v7320_v4 = vadd.f32 %v3463_v28, %v3351_v13  ;;  %v7322_v3 = vadd.f32 %v3476_v58, %v3364_v21 }
 0x82d   :  { %v2927_v42 = vrot.slane %v2926_v56, 4  ;;  %v3352_v1 = vsel %vm3296_vm6, %v7262_v45, 0.0  ;;  %v3470_v31 = vsel %vm3414_vm7, %v7209_v0, 0.0  ;;  %v7330_v33 = vrot.slane %v7548_v34, %v5281_v6 }
 0x82e   :  { %v2918_v32 = vadd.f32 %v2917_v18, %v2916_v36  ;;  %v7325_v8 = vadd.f32 %v3464_v7, %v3352_v1  ;;  %v3358_v41 = vsel %vm3302_vm9, %v7198_v48, 0.0  ;;  %v7551_v46 = vsub.f32 1.0, %v7550_v23  ;;  %v7552_v36 = vld [vmem:[#allocation10_spill] sm:$0xff] }
 0x82f   :  { %v2928_v40 = vadd.f32 %v2927_v42, %v2926_v56  ;;  %v2941_v27 = vrot.slane %v2940_v50, 1  ;;  %vm3297_vm10 = vcmp.eq.s32.totalorder %v5905_v54, %v7318_v61  ;;  %v7342_v13 = vadd.f32 %v3470_v31, %v3358_v41 }
 0x830   :  { %v2919_v53 = vrot.slane %v2918_v32, 2  ;;  %v7337_v44 = vrot.slane %v7551_v46, %v5281_v6  ;;  %v7346_v42 = vrot.slane %v7550_v23, %v5281_v6  ;;  %vm3303_vm11 = vcmp.eq.s32.totalorder %v5908_v55, %v7230_v30 }
 0x831   :  { %v2929_v14 = vrot.slane %v2928_v40, 2  ;;  %vm3409_vm12 = vcmp.eq.s32.totalorder %v5905_v54, %v7330_v33  ;;  %vm3415_vm13 = vcmp.eq.s32.totalorder %v5908_v55, %v7234_v16  ;;  %v3359_v34 = vsel %vm3303_vm11, %v7262_v45, 0.0 }
 0x832   :  { %v3611_v51 = vpop.f32.mrb[66].mxu1  ;;  %v2920_v9 = vadd.f32 %v2919_v53, %v2918_v32  ;;  %v3353_v1 = vsel %vm3297_vm10, %v7337_v44, 0.0  ;;  %v3471_v23 = vsel %vm3415_vm13, %v7277_v24, 0.0  ;;  %vm3290_vm15 = vcmp.eq.s32.totalorder %v5278_v5, %v7318_v61 }
 0x833   :  { %v3897_v38 = vmul.f32 %v3611_v51, %v7549_v49  ;;  %v3613_v62 = vpop.f32.mrb[67].mxu1  ;;  %v2930_v25 = vadd.f32 %v2929_v14, %v2928_v40  ;;  %v7553_v40 = vld [vmem:[#allocation12_spill] sm:$0xff]  ;;  %v2942_v51 = vadd.f32 %v2941_v27, %v2940_v50  ;;  %v7554_v14 = vld [vmem:[#allocation14_spill] sm:$0xff]  ;;  %vm3402_vm0 = vcmp.eq.s32.totalorder %v5278_v5, %v7330_v33 }
 0x834   :  { %v3898_v37 = vmul.f32 %v3613_v62, %v7552_v36  ;;  %v2921_v56 = vrot.slane %v2920_v9, 1  ;;  %v7555_v62 = vlaneseq  ;;  %vm3309_vm1 = vcmp.eq.s32.totalorder %v5916_v60, %v7190_v47 }
 0x835   :  { %v3700_v18 = vpop.f32.mrb[70].mxu0  ;;  %v2931_v58 = vrot.slane %v2930_v25, 1  ;;  %vm3421_vm8 = vcmp.eq.s32.totalorder %v5916_v60, %v7203_v39  ;;  %vm3311_vm2 = vcmp.eq.s32.totalorder %v5916_v60, %v7318_v61  ;;  %vm3423_vm4 = vcmp.eq.s32.totalorder %v5916_v60, %v7330_v33 }
 0x836   :  { %v3617_v28 = vpop.f32.mrb[68].mxu1  ;;  %v3899_v32 = vmul.f32 %v3700_v18, %v7144_v12  ;;  %v3702_v21 = vpop.f32.mrb[71].mxu0  ;;  %v2922_v7 = vadd.f32 %v2921_v56, %v2920_v9  ;;  %vm7364_vm14 = vcmp.lt.s32.totalorder %v7555_v62, 896  ;;  %vm3310_vm5 = vcmp.eq.s32.totalorder %v5916_v60, %v7230_v30 }
 0x837   :  { %v3904_v15 = vmul.f32 %v3617_v28, %v7553_v40  ;;  %v3619_v53 = vpop.f32.mrb[69].mxu1  ;;  %v3900_v6 = vmul.f32 %v3702_v21, %v7162_v59  ;;  %v2932_v12 = vadd.f32 %v2931_v58, %v2930_v25  ;;  %v3465_v59 = vsel %vm3409_vm12, %v7346_v42, 0.0 }
 0x838   :  { %v3905_v31 = vmul.f32 %v3619_v53, %v7554_v14  ;;  %v7384_v53 = vadd.f32 %v3471_v23, %v3359_v34  ;;  %vm3422_vm6 = vcmp.eq.s32.totalorder %v5916_v60, %v7234_v16  ;;  %vm3304_vm7 = vcmp.eq.s32.totalorder %v5908_v55, %v7318_v61 }
 0x839   :  { %v3925_v49 = vadd.f32 %v3904_v15, %v3897_v38  ;;  %v3706_v41 = vpop.f32.mrb[72].mxu0  ;;  %v2952_v46 = vcombine.low %v2922_v7, %v2932_v12  ;;  %v7558_v38 = vld [vmem:[#allocation15_spill] sm:$0xff]  ;;  %v7382_v15 = vadd.f32 %v3465_v59, %v3353_v1  ;;  %vm3416_vm9 = vcmp.eq.s32.totalorder %v5908_v55, %v7330_v33 }
 0x83a   :  { %v3935_v54 = vadd.f32 %v3905_v31, %v3898_v37  ;;  %v3623_v36 = vpop.f32.mrb[70].mxu1  ;;  %v3906_v50 = vmul.f32 %v3706_v41, %v7176_v29  ;;  %v3708_v27 = vpop.f32.mrb[73].mxu0  ;;  %v2980_v37 = vrot.slane %v2942_v51, %v7086_v57  ;;  %v3346_v51 = vsel %vm3290_vm15, %v7337_v44, 0.0 }
 0x83b   :  { %v3911_v25 = vmul.f32 %v3623_v36, %v7558_v38  ;;  %v3625_v56 = vpop.f32.mrb[71].mxu1  ;;  %v3907_v18 = vmul.f32 %v3708_v27, %v7185_v2  ;;  %v2973_v28 = vrot.slane %v2952_v46, %v7086_v57  ;;  %v7423_v46 = vsel %vm3421_vm8, %v7209_v0, 0.0 }
 0x83c   :  { %v3912_v29 = vmul.f32 %v3625_v56, %v7117_v22  ;;  %v3945_v58 = vadd.f32 %v3906_v50, %v3899_v32  ;;  %v3458_v32 = vsel %vm3402_vm0, %v7346_v42, 0.0  ;;  %v3367_v36 = vsel %vm3311_vm2, %v7337_v44, 0.0 }
 0x83d   :  { %v3926_v21 = vadd.f32 %v3925_v49, %v3911_v25  ;;  %v3955_v7 = vadd.f32 %v3907_v18, %v3900_v6  ;;  %v3712_v40 = vpop.f32.mrb[74].mxu0  ;;  %v2982_v2 = vcombine.low %v2973_v28, %v2980_v37  ;;  %v7400_v6 = vsel %vm3309_vm1, %v7198_v48, 0.0 }
 0x83e   :  { %v3936_v12 = vadd.f32 %v3935_v54, %v3912_v29  ;;  %v3913_v14 = vmul.f32 %v3712_v40, %v7212_v63  ;;  %v3714_v31 = vpop.f32.mrb[75].mxu0  ;;  %v3629_v62 = vpop.f32.mrb[72].mxu1  ;;  %v2989_v63 = vrot.slane %v2981_v19, %v7086_v57  ;;  %v3486_v59 = vadd.f32 %v3458_v32, %v3346_v51 }
 0x83f   :  { %v3914_v22 = vmul.f32 %v3714_v31, %v7273_v52  ;;  %v2996_v52 = vrot.slane %v2982_v2, %v7086_v57  ;;  %v3918_v1 = vmul.f32 %v3629_v62, %v7151_v43  ;;  %v3631_v5 = vpop.f32.mrb[73].mxu1  ;;  %v3479_v50 = vsel %vm3423_vm4, %v7346_v42, 0.0 }
 0x840   :  { %v3946_v34 = vadd.f32 %v3945_v58, %v3913_v14  ;;  %v3919_v49 = vmul.f32 %v3631_v5, %v7183_v11  ;;  %v3366_v16 = vsel %vm3310_vm5, %v7262_v45, 0.0  ;;  %v3472_v33 = vsel %vm3416_vm9, %v7346_v42, 0.0 }
 0x841   :  { %v3956_v41 = vadd.f32 %v3955_v7, %v3914_v22  ;;  %v3718_v47 = vpop.f32.mrb[76].mxu0  ;;  %v2997_v48 = vcombine.low %v2989_v63, %v2996_v52  ;;  %v3927_v17 = vsel %vm952_vm3, %v3918_v1, 0.0  ;;  %v3507_v7 = vadd.f32 %v3479_v50, %v3367_v36 }
 0x842   :  { %v3920_v20 = vmul.f32 %v3718_v47, %v7300_v35  ;;  %v3720_v19 = vpop.f32.mrb[77].mxu0  ;;  %v3928_v43 = vadd.f32 %v3927_v17, %v3926_v21  ;;  %v3937_v23 = vsel %vm952_vm3, %v3919_v49, 0.0  ;;  %v3505_v36 = vadd.f32 %v7423_v46, %v7400_v6 }
 0x843   :  { %v3921_v11 = vmul.f32 %v3720_v19, %v7322_v3  ;;  %3003 = vst.msk [vmem:[%s7488_s13] ss:$2 sm:$0x7f] %vm7364_vm14, %v2997_v48  ;;  %v3938_v35 = vadd.f32 %v3937_v23, %v3936_v12  ;;  %v3478_v12 = vsel %vm3422_vm6, %v7277_v24, 0.0 }
 0x844   :  { %v3947_v54 = vsel %vm952_vm3, %v3920_v20, 0.0  ;;  %v3929_v3 = vrot.slane %v3928_v43, 4  ;;  %v3506_v50 = vadd.f32 %v3478_v12, %v3366_v16 }
 0x845   :  { %v3948_v27 = vadd.f32 %v3947_v54, %v3946_v34  ;;  %v3957_v38 = vsel %vm952_vm3, %v3921_v11, 0.0  ;;  %v3939_v39 = vrot.slane %v3938_v35, 4 }
 0x846   :  { %v3958_v25 = vadd.f32 %v3957_v38, %v3956_v41  ;;  %v3930_v56 = vadd.f32 %v3929_v3, %v3928_v43 }
 0x847   :  { %v3789_v0 = vpop.f32.mrb[74].mxu1  ;;  %v3949_v28 = vrot.slane %v3948_v27, 4  ;;  %v3940_v29 = vadd.f32 %v3939_v39, %v3938_v35 }
 0x848   :  { %v3901_v18 = vmul.f32 %v3789_v0, %v7280_v26  ;;  %v3791_v37 = vpop.f32.mrb[75].mxu1  ;;  %v3959_v21 = vrot.slane %v3958_v25, 4  ;;  %v3931_v40 = vrot.slane %v3930_v56, 2 }
 0x849   :  { %v3902_v58 = vmul.f32 %v3791_v37, %v7298_v10  ;;  %v3950_v2 = vadd.f32 %v3949_v28, %v3948_v27  ;;  %v3941_v26 = vrot.slane %v3940_v29, 2  ;;  %v3360_v10 = vsel %vm3304_vm7, %v7337_v44, 0.0 }
 0x84a   :  { %v3960_v31 = vadd.f32 %v3959_v21, %v3958_v25  ;;  %v4347_v51 = vpop.f32.mrb[78].mxu0  ;;  %v3932_v62 = vadd.f32 %v3931_v40, %v3930_v56  ;;  %v3500_v55 = vadd.f32 %v3472_v33, %v3360_v10 }
 0x84b   :  { %v3795_v14 = vpop.f32.mrb[76].mxu1  ;;  %v3951_v22 = vrot.slane %v3950_v2, 2  ;;  %v3910_v60 = vmul.f32 %v4347_v51, %v7382_v15  ;;  %v3878_v30 = vpop.f32.mrb[79].mxu0  ;;  %v3942_v45 = vadd.f32 %v3941_v26, %v3940_v29 }
 0x84c   :  { %v3908_v32 = vmul.f32 %v3795_v14, %v7320_v4  ;;  %v3797_v63 = vpop.f32.mrb[77].mxu1  ;;  %v3961_v24 = vrot.slane %v3960_v31, 2  ;;  %v3903_v1 = vmul.f32 %v3878_v30, %v3486_v59  ;;  %v3933_v5 = vrot.slane %v3932_v62, 1 }
 0x84d   :  { %v3909_v52 = vmul.f32 %v3797_v63, %v7325_v8  ;;  %v3952_v34 = vadd.f32 %v3951_v22, %v3950_v2  ;;  %v3943_v61 = vrot.slane %v3942_v45, 1 }
 0x84e   :  { %v3965_v49 = vadd.f32 %v3908_v32, %v3901_v18  ;;  %v3962_v44 = vadd.f32 %v3961_v24, %v3960_v31  ;;  %v3985_v47 = vadd.f32 %v3910_v60, %v3903_v1  ;;  %v4350_v48 = vpop.f32.mrb[80].mxu0  ;;  %v3934_v4 = vadd.f32 %v3933_v5, %v3932_v62 }
 0x84f   :  { %v3975_v42 = vadd.f32 %v3909_v52, %v3902_v58  ;;  %v3801_v41 = vpop.f32.mrb[78].mxu1  ;;  %v3953_v17 = vrot.slane %v3952_v34, 1  ;;  %v3924_v19 = vmul.f32 %v4350_v48, %v3507_v7  ;;  %v3888_v43 = vpop.f32.mrb[81].mxu0  ;;  %v3944_v23 = vadd.f32 %v3943_v61, %v3942_v45 }
 0x850   :  { %v3915_v15 = vmul.f32 %v3801_v41, %v7342_v13  ;;  %v3803_v20 = vpop.f32.mrb[79].mxu1  ;;  %v3963_v8 = vrot.slane %v3962_v44, 1  ;;  %v3917_v11 = vmul.f32 %v3888_v43, %v3500_v55 }
 0x851   :  { %v3916_v59 = vmul.f32 %v3803_v20, %v7384_v53  ;;  %v3954_v35 = vadd.f32 %v3953_v17, %v3952_v34  ;;  %v4002_v3 = vcombine.low %v3934_v4, %v3944_v23  ;;  %v3987_v25 = vsel %vm952_vm3, %v3924_v19, 0.0 }
 0x852   :  { %v3966_v54 = vadd.f32 %v3965_v49, %v3915_v15  ;;  %v3964_v27 = vadd.f32 %v3963_v8, %v3962_v44  ;;  %v3986_v0 = vadd.f32 %v3985_v47, %v3917_v11 }
 0x853   :  { %v3976_v38 = vadd.f32 %v3975_v42, %v3916_v59  ;;  %v3807_v39 = vpop.f32.mrb[80].mxu1  ;;  %v4011_v53 = vrot.slane %v4002_v3, %v7086_v57 }
 0x854   :  { %v3922_v13 = vmul.f32 %v3807_v39, %v3505_v36  ;;  %v3809_v56 = vpop.f32.mrb[81].mxu1  ;;  %v4003_v18 = vcombine.low %v3954_v35, %v3964_v27  ;;  %v3988_v28 = vadd.f32 %v3987_v25, %v3986_v0 }
 0x855   :  { %v3923_v37 = vmul.f32 %v3809_v56, %v3506_v50 }
 0x856   :  { %v3967_v29 = vsel %vm952_vm3, %v3922_v13, 0.0  ;;  %v4018_v58 = vrot.slane %v4003_v18, %v7086_v57  ;;  %v3989_v21 = vrot.slane %v3988_v28, 4 }
 0x857   :  { %v3968_v6 = vadd.f32 %v3967_v29, %v3966_v54  ;;  %v3977_v46 = vsel %vm952_vm3, %v3923_v37, 0.0 }
 0x858   :  { %v3978_v7 = vadd.f32 %v3977_v46, %v3976_v38  ;;  %v4033_v40 = vcombine.low %v4011_v53, %v4018_v58  ;;  %v3990_v16 = vadd.f32 %v3989_v21, %v3988_v28 }
 0x859   :  { %v3969_v2 = vrot.slane %v3968_v6, 4 }
 0x85a   :  { %v3979_v12 = vrot.slane %v3978_v7, 4  ;;  %v3991_v14 = vrot.slane %v3990_v16, 2  ;;  %v4041_v49 = vrot.slane %v4033_v40, %v7086_v57 }
 0x85b   :  { %v3970_v26 = vadd.f32 %v3969_v2, %v3968_v6 }
 0x85c   :  { %v3980_v31 = vadd.f32 %v3979_v12, %v3978_v7  ;;  %v3992_v10 = vadd.f32 %v3991_v14, %v3990_v16 }
 0x85d   :  { %v3971_v51 = vrot.slane %v3970_v26, 2 }
 0x85e   :  { %v3981_v33 = vrot.slane %v3980_v31, 2  ;;  %v3993_v22 = vrot.slane %v3992_v10, 1 }
 0x85f   :  { %v3972_v62 = vadd.f32 %v3971_v51, %v3970_v26 }
 0x860   :  { %v3982_v32 = vadd.f32 %v3981_v33, %v3980_v31  ;;  %v3994_v30 = vadd.f32 %v3993_v22, %v3992_v10 }
 0x861   :  { %v3973_v63 = vrot.slane %v3972_v62, 1 }
 0x862   :  { %v3983_v60 = vrot.slane %v3982_v32, 1  ;;  %v4032_v1 = vrot.slane %v3994_v30, %v7086_v57 }
 0x863   :  { %v3974_v45 = vadd.f32 %v3973_v63, %v3972_v62 }
 0x864   :  { %v3984_v24 = vadd.f32 %v3983_v60, %v3982_v32 }
 0x866   :  { %v4004_v52 = vcombine.low %v3974_v45, %v3984_v24 }
 0x868   :  { %v4025_v5 = vrot.slane %v4004_v52, %v7086_v57 }
 0x86a   :  { %v4034_v34 = vcombine.low %v4025_v5, %v4032_v1 }
 0x86c   :  { %v4048_v55 = vrot.slane %v4034_v34, %v7086_v57 }
 0x86e   :  { %v4049_v61 = vcombine.low %v4041_v49, %v4048_v55 }
 0x870   :  { %4140 = vst.msk [vmem:[%s7488_s13 + $0x1] ss:$2 sm:$0x7f] %vm7364_vm14, %v4049_v61 }

</bundles_post_ra>
